<compile_context>
chip_gen: v7x
topology: tpu7x:2x2x1
jax: 0.10.0
libtpu: 0.0.40
codegen_flags: <defaults>
</compile_context>

<pallas_src>
import jax
import jax.numpy as jnp
from jax.experimental import pallas as pl
from jax.experimental.pallas import tpu as pltpu

NEG_SLOPE = 0.1  # nn.LeakyReLU(0.1) in the PyTorch module


def _leaky_relu(x):
    return jnp.where(x >= 0, x, NEG_SLOPE * x)


def _round_up(a, b):
    return -(-a // b) * b


def _cdiv(a, b):
    return -(-a // b)


# ------------------------------------------------------------- weight packing


def _pack_weight_slab(params, dilations, in_channels):
    """Pack every layer's (w0, w1, ws, bd, bs) plus (w_out, b_out) into one
    (8k, 128m)-padded f32 slab; returns (slab, metadata with static offsets)."""
    F = params["w_out"].shape[0]
    nb_layers = len(dilations)
    chans = [in_channels] + [F] * (nb_layers - 1)

    cols, layer_offs, off = [], [], 0
    for i, p in enumerate(params["layers"]):
        C = chans[i]
        layer_offs.append(off)
        cols += [p["w0"], p["w1"], p["ws"], p["bd"], p["bs"]]
        off += 3 * C + 2
    out_off = off
    b_col = jnp.zeros((F, 1), jnp.float32).at[0, 0].set(params["b_out"][0, 0])
    cols += [params["w_out"], b_col]
    off += 2

    slab = jnp.concatenate([c.astype(jnp.float32) for c in cols], axis=1)
    rows_pad = _round_up(F, 8)
    cols_pad = _round_up(off, 128)
    slab = jnp.pad(slab, ((0, rows_pad - F), (0, cols_pad - off)))
    meta = dict(F=F, chans=tuple(chans), layer_offs=tuple(layer_offs),
                out_off=out_off)
    return slab, meta


# ------------------------------------------------------------------ kernel


def _make_fused_kernel(dilations, meta, compute_dtype):
    """Whole-network kernel: all layers + output conv on one (Bt, L-tile)."""
    F = meta["F"]
    chans = meta["chans"]
    layer_offs = meta["layer_offs"]
    out_off = meta["out_off"]
    halo = sum(dilations)

    def kernel(xc_ref, xn_ref, w_ref, o_ref):
        slab = w_ref[...]                                    # one packed slab

        # Hoist all static weight/bias slices once (shared across batch loop).
        layer_w = []
        for i, d in enumerate(dilations):
            C = chans[i]
            off = layer_offs[i]
            w0 = slab[:F, off:off + C].astype(compute_dtype)          # (F, C)
            w1 = slab[:F, off + C:off + 2 * C].astype(compute_dtype)  # (F, C)
            ws = slab[:F, off + 2 * C:off + 3 * C].astype(compute_dtype)
            bd = slab[:F, off + 3 * C:off + 3 * C + 1]                # (F, 1)
            bs = slab[:F, off + 3 * C + 1:off + 3 * C + 2]            # (F, 1)
            layer_w.append((d, C, w0, w1, ws, bd, bs))
        w_out = slab[:F, out_off:out_off + 1].astype(compute_dtype)   # (F, 1)
        b_out = slab[0:1, out_off + 1:out_off + 2]                    # (1, 1)

        Bt = xc_ref.shape[0]
        for b in range(Bt):                                  # static unroll
            # Overlapping input window: this tile's TILE_L lanes + the first
            # `halo` lanes of the next tile.
            h = jnp.concatenate(
                [xc_ref[b], xn_ref[b, :, :halo]], axis=-1
            ).astype(compute_dtype)                          # (C, TILE_L+halo)

            for (d, C, w0, w1, ws, bd, bs) in layer_w:
                Wn = h.shape[-1] - d
                hl = h[:, :Wn]                               # x[t]
                hr = h[:, d:d + Wn]                          # x[t + d]
                acc = jnp.zeros((F, Wn), jnp.float32)
                skip = jnp.zeros((F, Wn), jnp.float32)
                # Tiny channel counts -> unrolled VPU broadcast-FMAs (no MXU).
                # Products in compute_dtype (bf16 on v6e/v7x), f32 accumulate.
                for c in range(C):
                    hlc = hl[c:c + 1, :]
                    hrc = hr[c:c + 1, :]
                    acc = acc + w0[:, c:c + 1] * hlc + w1[:, c:c + 1] * hrc
                    skip = skip + ws[:, c:c + 1] * hrc
                h = (_leaky_relu(acc + bd) + skip + bs).astype(compute_dtype)

            # Output 1x1 conv F -> 1; lane-dense (1, TILE_L) store.
            y = jnp.zeros((1, h.shape[-1]), jnp.float32)
            for f in range(F):
                y = y + w_out[f:f + 1, :] * h[f:f + 1, :]
            y = _leaky_relu(y + b_out)
            o_ref[b] = y.astype(o_ref.dtype)

    return kernel


# ------------------------------------------------------------------ wrapper


def _default_tile_l():
    # Per-generation tile policy: v7x has 64 MiB VMEM vs 128 MiB on v5e/v6e,
    # so halve the default L tile there.  Sweep 8K-64K for peak on real audio.
    try:
        kind = jax.devices()[0].device_kind.lower()
    except Exception:  # pragma: no cover
        kind = ""
    return 4096 if "v7" in kind else 8192


def wavenet_forward(x_ncl, params, dilations, *, tile_l=None, batch_tile=None,
                    compute_dtype=jnp.float32):
    """x_ncl: (B, C_in, L) -> (B, 1, L - sum(dilations)), NCL layout."""
    B, C_in, L = x_ncl.shape
    halo = sum(dilations)
    L_out = L - halo
    if L_out <= 0:
        raise ValueError("input too short for the dilation stack")
    F = params["w_out"].shape[0]

    if tile_l is None:
        tile_l = _default_tile_l()
    tile_l = max(128, (tile_l // 128) * 128)
    TILE_L = min(tile_l, _round_up(L_out, 128))       # lane-dense output tiles
    TILE_L = max(TILE_L, _round_up(halo, 128))        # halo must fit next tile
    n_tiles = _cdiv(L_out, TILE_L)
    L_out_pad = n_tiles * TILE_L
    # One extra tile of zero padding so block index (t + 1) is always valid;
    # the padded outputs are sliced off below and never alias real samples.
    L_in_pad = (n_tiles + 1) * TILE_L
    x_pad = jnp.pad(x_ncl, ((0, 0), (0, 0), (0, L_in_pad - L)))

    if batch_tile is None:
        batch_tile = B   # collapse batch into one grid step (v5e/v6e shapes);
                         # pass batch_tile=1 for a (B, L_tiles) grid on v7x.
    assert B % batch_tile == 0, (B, batch_tile)
    n_b = B // batch_tile

    slab, meta = _pack_weight_slab(params, dilations, C_in)
    kernel = _make_fused_kernel(tuple(dilations), meta, compute_dtype)

    # VMEM footprint estimate: double-buffered x blocks (2 specs) + out block
    # + weight slab + live intermediates of the layer stack.
    itemsz = 4
    w0w = TILE_L + halo
    est = (2 * 2 * batch_tile * C_in * TILE_L * itemsz
           + 2 * batch_tile * TILE_L * itemsz
           + 2 * slab.size * itemsz
           + 8 * batch_tile * F * w0w * itemsz)
    vmem_limit = int(min(64 * 2 ** 20, max(32 * 2 ** 20, 2 * est)))

    flops = int(2 * B * L_out * (sum(3 * F * c for c in meta["chans"]) + F))
    cost = pl.CostEstimate(
        flops=flops, transcendentals=0,
        bytes_accessed=int((x_ncl.size + slab.size + B * L_out) * itemsz))

    out = pl.pallas_call(
        kernel,
        out_shape=jax.ShapeDtypeStruct((B, 1, L_out_pad), x_ncl.dtype),
        grid=(n_b, n_tiles),
        in_specs=[
            # current L tile
            pl.BlockSpec((batch_tile, C_in, TILE_L), lambda b, t: (b, 0, t)),
            # next L tile (only its first `halo` lanes are read in-kernel)
            pl.BlockSpec((batch_tile, C_in, TILE_L), lambda b, t: (b, 0, t + 1)),
            # packed weight slab, resident across the whole grid
            pl.BlockSpec(slab.shape, lambda b, t: (0, 0)),
        ],
        out_specs=pl.BlockSpec((batch_tile, 1, TILE_L), lambda b, t: (b, 0, t)),
        compiler_params=pltpu.CompilerParams(
            dimension_semantics=("parallel", "parallel"),
            vmem_limit_bytes=vmem_limit),
        cost_estimate=cost,
    )(x_pad, x_pad, slab)
    return out[:, :, :L_out]


# ------------------------------------------------------------------ params


def init_wavenet_params(key, in_channels, nb_layers, nb_filters, kernel_size=2):
    # kaiming_normal_ (fan_in, gain=sqrt(2)) on conv weights, zero biases.
    assert kernel_size == 2, "WaveNet forward only adds up if kernel_size == 2"
    dilations = [2 ** i for i in range(nb_layers)]
    chans = [in_channels] + [nb_filters] * nb_layers
    layers = []
    for i in range(nb_layers):
        cin = chans[i]
        key, k1, k2 = jax.random.split(key, 3)
        std_d = (2.0 / (cin * kernel_size)) ** 0.5
        wd = jax.random.normal(k1, (nb_filters, cin, kernel_size), jnp.float32) * std_d
        std_s = (2.0 / (cin * 1)) ** 0.5
        ws = jax.random.normal(k2, (nb_filters, cin, 1), jnp.float32) * std_s
        layers.append(dict(
            # (F, C) layouts, matching the in-kernel VPU FMA loop
            w0=wd[:, :, 0],
            w1=wd[:, :, 1],
            bd=jnp.zeros((nb_filters, 1), jnp.float32),
            ws=ws[:, :, 0],
            bs=jnp.zeros((nb_filters, 1), jnp.float32),
            # original OIH layouts kept for the lax.conv reference check
            wd_full=wd,
            ws_full=ws,
        ))
    key, ko = jax.random.split(key)
    std_o = (2.0 / nb_filters) ** 0.5
    w_out_full = jax.random.normal(ko, (1, nb_filters, 1), jnp.float32) * std_o
    params = dict(
        layers=layers,
        w_out=w_out_full[0],                         # (F, 1)
        b_out=jnp.zeros((1, 1), jnp.float32),
        w_out_full=w_out_full,
    )
    return params, dilations


# ------------------------------------------------------------------ reference


def ref_forward(x, params, dilations):
    """Pure-JAX reference of the PyTorch forward, NCL layout."""
    for d, p in zip(dilations, params["layers"]):
        x1 = jax.lax.conv_general_dilated(
            x, p["wd_full"], window_strides=(1,), padding="VALID",
            rhs_dilation=(d,), dimension_numbers=("NCH", "OIH", "NCH"))
        x1 = _leaky_relu(x1 + p["bd"].reshape(1, -1, 1))
        x2 = jax.lax.conv_general_dilated(
            x[:, :, d:], p["ws_full"], window_strides=(1,), padding="VALID",
            dimension_numbers=("NCH", "OIH", "NCH"))
        x2 = x2 + p["bs"].reshape(1, -1, 1)
        x = x1 + x2
    y = jax.lax.conv_general_dilated(
        x, params["w_out_full"], window_strides=(1,), padding="VALID",
        dimension_numbers=("NCH", "OIH", "NCH"))
    return _leaky_relu(y + params["b_out"].reshape(1, 1, 1))


# ------------------------------------------------------------------ main


if __name__ == "__main__":
    hyperparams = dict(nb_layers=3, nb_filters=8, kernel_size=2)
    in_channels = 4
    B, L = 2, 32

    key = jax.random.PRNGKey(0)
    key, kx = jax.random.split(key)
    x = jax.random.normal(kx, (B, in_channels, L), jnp.float32)  # NCL layout

    params, dilations = init_wavenet_params(
        key, in_channels, hyperparams["nb_layers"],
        hyperparams["nb_filters"], hyperparams["kernel_size"])

    ref = jax.block_until_ready(ref_forward(x, params, dilations))
    expected_len = L - sum(dilations)                 # 32 - (1+2+4) = 25
    assert ref.shape == (B, 1, expected_len)

    # 1) f32, batch collapsed into a single grid step (v5e/v6e small-shape path).
    out = jax.block_until_ready(wavenet_forward(x, params, dilations))
    assert out.shape == (B, 1, expected_len), out.shape
    assert jnp.allclose(out, ref, atol=1e-4, rtol=1e-4), \
        float(jnp.max(jnp.abs(out - ref)))

    # 2) f32, batch on the grid (the v7x all-parallel (B, L_tiles) path).
    out_bg = jax.block_until_ready(
        wavenet_forward(x, params, dilations, batch_tile=1))
    assert jnp.allclose(out_bg, ref, atol=1e-4, rtol=1e-4), \
        float(jnp.max(jnp.abs(out_bg - ref)))

    # 3) Multi-L-tile path (forced small tile) to exercise the halo logic.
    L2 = 300
    key, kx2 = jax.random.split(key)
    x2 = jax.random.normal(kx2, (B, in_channels, L2), jnp.float32)
    ref2 = jax.block_until_ready(ref_forward(x2, params, dilations))
    out2 = jax.block_until_ready(
        wavenet_forward(x2, params, dilations, tile_l=128))
    assert out2.shape == ref2.shape, (out2.shape, ref2.shape)
    assert jnp.allclose(out2, ref2, atol=1e-4, rtol=1e-4), \
        float(jnp.max(jnp.abs(out2 - ref2)))

    # 4) bf16 VPU products + f32 accumulators (v6e/v7x fast path); loose check.
    out_bf = jax.block_until_ready(
        wavenet_forward(x, params, dilations, compute_dtype=jnp.bfloat16))
    err = float(jnp.max(jnp.abs(out_bf - ref)))
    scale = float(jnp.max(jnp.abs(ref)))
    assert err <= 0.1 * scale + 0.1, (err, scale)

    print("KERNEL_OK")
</pallas_src>

<mosaic_0001>
module attributes {stable_mosaic.version = 11 : i64} {
  func.func @kernel(%arg0: i32, %arg1: i32, %arg2: memref<2x4x128xf32, #tpu.memory_space<vmem>>, %arg3: memref<2x4x128xf32, #tpu.memory_space<vmem>>, %arg4: memref<8x128xf32, #tpu.memory_space<vmem>>, %arg5: memref<2x1x128xf32, #tpu.memory_space<vmem>>) attributes {dimension_semantics = [#tpu.dimension_semantics<parallel>, #tpu.dimension_semantics<parallel>], iteration_bounds = array<i64: 1, 1>, scalar_prefetch = 0 : i64, scratch_operands = 0 : i64, tpu.core_type = #tpu.core_type<tc>, window_params = [{transform_indices = @transform_0, window_bounds = array<i64: 2, 4, 128>}, {transform_indices = @transform_1, window_bounds = array<i64: 2, 4, 128>}, {pipeline_mode = #tpu.pipeline_mode<synchronous>, transform_indices = @transform_2, window_bounds = array<i64: 8, 128>}, {transform_indices = @transform_3, window_bounds = array<i64: 2, 1, 128>}]} {
    %c0 = arith.constant 0 : index
    %c0_0 = arith.constant 0 : index
    %0 = vector.load %arg4[%c0, %c0_0] : memref<8x128xf32, #tpu.memory_space<vmem>>, vector<8x128xf32>
    %1 = vector.extract_strided_slice %0 {offsets = [0, 0], sizes = [8, 4], strides = [1, 1]} : vector<8x128xf32> to vector<8x4xf32>
    %2 = vector.extract_strided_slice %0 {offsets = [0, 4], sizes = [8, 4], strides = [1, 1]} : vector<8x128xf32> to vector<8x4xf32>
    %3 = vector.extract_strided_slice %0 {offsets = [0, 8], sizes = [8, 4], strides = [1, 1]} : vector<8x128xf32> to vector<8x4xf32>
    %4 = vector.extract_strided_slice %0 {offsets = [0, 12], sizes = [8, 1], strides = [1, 1]} : vector<8x128xf32> to vector<8x1xf32>
    %5 = vector.extract_strided_slice %0 {offsets = [0, 13], sizes = [8, 1], strides = [1, 1]} : vector<8x128xf32> to vector<8x1xf32>
    %6 = vector.extract_strided_slice %0 {offsets = [0, 14], sizes = [8, 8], strides = [1, 1]} : vector<8x128xf32> to vector<8x8xf32>
    %7 = vector.extract_strided_slice %0 {offsets = [0, 22], sizes = [8, 8], strides = [1, 1]} : vector<8x128xf32> to vector<8x8xf32>
    %8 = vector.extract_strided_slice %0 {offsets = [0, 30], sizes = [8, 8], strides = [1, 1]} : vector<8x128xf32> to vector<8x8xf32>
    %9 = vector.extract_strided_slice %0 {offsets = [0, 38], sizes = [8, 1], strides = [1, 1]} : vector<8x128xf32> to vector<8x1xf32>
    %10 = vector.extract_strided_slice %0 {offsets = [0, 39], sizes = [8, 1], strides = [1, 1]} : vector<8x128xf32> to vector<8x1xf32>
    %11 = vector.extract_strided_slice %0 {offsets = [0, 40], sizes = [8, 8], strides = [1, 1]} : vector<8x128xf32> to vector<8x8xf32>
    %12 = vector.extract_strided_slice %0 {offsets = [0, 48], sizes = [8, 8], strides = [1, 1]} : vector<8x128xf32> to vector<8x8xf32>
    %13 = vector.extract_strided_slice %0 {offsets = [0, 56], sizes = [8, 8], strides = [1, 1]} : vector<8x128xf32> to vector<8x8xf32>
    %14 = vector.extract_strided_slice %0 {offsets = [0, 64], sizes = [8, 1], strides = [1, 1]} : vector<8x128xf32> to vector<8x1xf32>
    %15 = vector.extract_strided_slice %0 {offsets = [0, 65], sizes = [8, 1], strides = [1, 1]} : vector<8x128xf32> to vector<8x1xf32>
    %16 = vector.extract_strided_slice %0 {offsets = [0, 66], sizes = [8, 1], strides = [1, 1]} : vector<8x128xf32> to vector<8x1xf32>
    %17 = vector.extract_strided_slice %0 {offsets = [0, 67], sizes = [1, 1], strides = [1, 1]} : vector<8x128xf32> to vector<1x1xf32>
    %c0_1 = arith.constant 0 : index
    %c0_2 = arith.constant 0 : index
    %c0_3 = arith.constant 0 : index
    %18 = vector.load %arg2[%c0_1, %c0_2, %c0_3] : memref<2x4x128xf32, #tpu.memory_space<vmem>>, vector<1x4x128xf32>
    %19 = vector.shape_cast %18 : vector<1x4x128xf32> to vector<4x128xf32>
    %c0_4 = arith.constant 0 : index
    %c0_5 = arith.constant 0 : index
    %c0_6 = arith.constant 0 : index
    %20 = vector.load %arg3[%c0_4, %c0_5, %c0_6] : memref<2x4x128xf32, #tpu.memory_space<vmem>>, vector<1x4x7xf32>
    %21 = vector.shape_cast %20 : vector<1x4x7xf32> to vector<4x7xf32>
    %22 = tpu.concatenate %19, %21 in 1 : vector<4x128xf32>, vector<4x7xf32> -> vector<4x135xf32>
    %23 = vector.extract_strided_slice %22 {offsets = [0, 0], sizes = [4, 134], strides = [1, 1]} : vector<4x135xf32> to vector<4x134xf32>
    %24 = vector.extract_strided_slice %22 {offsets = [0, 1], sizes = [4, 134], strides = [1, 1]} : vector<4x135xf32> to vector<4x134xf32>
    %cst = arith.constant 0.000000e+00 : f32
    %25 = vector.broadcast %cst : f32 to vector<8x134xf32>
    %cst_7 = arith.constant 0.000000e+00 : f32
    %26 = vector.broadcast %cst_7 : f32 to vector<8x134xf32>
    %27 = vector.extract_strided_slice %23 {offsets = [0, 0], sizes = [1, 134], strides = [1, 1]} : vector<4x134xf32> to vector<1x134xf32>
    %28 = vector.extract_strided_slice %24 {offsets = [0, 0], sizes = [1, 134], strides = [1, 1]} : vector<4x134xf32> to vector<1x134xf32>
    %29 = vector.extract_strided_slice %1 {offsets = [0, 0], sizes = [8, 1], strides = [1, 1]} : vector<8x4xf32> to vector<8x1xf32>
    %30 = vector.broadcast %29 : vector<8x1xf32> to vector<8x134xf32>
    %31 = vector.broadcast %27 : vector<1x134xf32> to vector<8x134xf32>
    %32 = arith.mulf %30, %31 : vector<8x134xf32>
    %33 = arith.addf %25, %32 : vector<8x134xf32>
    %34 = vector.extract_strided_slice %2 {offsets = [0, 0], sizes = [8, 1], strides = [1, 1]} : vector<8x4xf32> to vector<8x1xf32>
    %35 = vector.broadcast %34 : vector<8x1xf32> to vector<8x134xf32>
    %36 = vector.broadcast %28 : vector<1x134xf32> to vector<8x134xf32>
    %37 = arith.mulf %35, %36 : vector<8x134xf32>
    %38 = arith.addf %33, %37 : vector<8x134xf32>
    %39 = vector.extract_strided_slice %3 {offsets = [0, 0], sizes = [8, 1], strides = [1, 1]} : vector<8x4xf32> to vector<8x1xf32>
    %40 = vector.broadcast %39 : vector<8x1xf32> to vector<8x134xf32>
    %41 = vector.broadcast %28 : vector<1x134xf32> to vector<8x134xf32>
    %42 = arith.mulf %40, %41 : vector<8x134xf32>
    %43 = arith.addf %26, %42 : vector<8x134xf32>
    %44 = vector.extract_strided_slice %23 {offsets = [1, 0], sizes = [1, 134], strides = [1, 1]} : vector<4x134xf32> to vector<1x134xf32>
    %45 = vector.extract_strided_slice %24 {offsets = [1, 0], sizes = [1, 134], strides = [1, 1]} : vector<4x134xf32> to vector<1x134xf32>
    %46 = vector.extract_strided_slice %1 {offsets = [0, 1], sizes = [8, 1], strides = [1, 1]} : vector<8x4xf32> to vector<8x1xf32>
    %47 = vector.broadcast %46 : vector<8x1xf32> to vector<8x134xf32>
    %48 = vector.broadcast %44 : vector<1x134xf32> to vector<8x134xf32>
    %49 = arith.mulf %47, %48 : vector<8x134xf32>
    %50 = arith.addf %38, %49 : vector<8x134xf32>
    %51 = vector.extract_strided_slice %2 {offsets = [0, 1], sizes = [8, 1], strides = [1, 1]} : vector<8x4xf32> to vector<8x1xf32>
    %52 = vector.broadcast %51 : vector<8x1xf32> to vector<8x134xf32>
    %53 = vector.broadcast %45 : vector<1x134xf32> to vector<8x134xf32>
    %54 = arith.mulf %52, %53 : vector<8x134xf32>
    %55 = arith.addf %50, %54 : vector<8x134xf32>
    %56 = vector.extract_strided_slice %3 {offsets = [0, 1], sizes = [8, 1], strides = [1, 1]} : vector<8x4xf32> to vector<8x1xf32>
    %57 = vector.broadcast %56 : vector<8x1xf32> to vector<8x134xf32>
    %58 = vector.broadcast %45 : vector<1x134xf32> to vector<8x134xf32>
    %59 = arith.mulf %57, %58 : vector<8x134xf32>
    %60 = arith.addf %43, %59 : vector<8x134xf32>
    %61 = vector.extract_strided_slice %23 {offsets = [2, 0], sizes = [1, 134], strides = [1, 1]} : vector<4x134xf32> to vector<1x134xf32>
    %62 = vector.extract_strided_slice %24 {offsets = [2, 0], sizes = [1, 134], strides = [1, 1]} : vector<4x134xf32> to vector<1x134xf32>
    %63 = vector.extract_strided_slice %1 {offsets = [0, 2], sizes = [8, 1], strides = [1, 1]} : vector<8x4xf32> to vector<8x1xf32>
    %64 = vector.broadcast %63 : vector<8x1xf32> to vector<8x134xf32>
    %65 = vector.broadcast %61 : vector<1x134xf32> to vector<8x134xf32>
    %66 = arith.mulf %64, %65 : vector<8x134xf32>
    %67 = arith.addf %55, %66 : vector<8x134xf32>
    %68 = vector.extract_strided_slice %2 {offsets = [0, 2], sizes = [8, 1], strides = [1, 1]} : vector<8x4xf32> to vector<8x1xf32>
    %69 = vector.broadcast %68 : vector<8x1xf32> to vector<8x134xf32>
    %70 = vector.broadcast %62 : vector<1x134xf32> to vector<8x134xf32>
    %71 = arith.mulf %69, %70 : vector<8x134xf32>
    %72 = arith.addf %67, %71 : vector<8x134xf32>
    %73 = vector.extract_strided_slice %3 {offsets = [0, 2], sizes = [8, 1], strides = [1, 1]} : vector<8x4xf32> to vector<8x1xf32>
    %74 = vector.broadcast %73 : vector<8x1xf32> to vector<8x134xf32>
    %75 = vector.broadcast %62 : vector<1x134xf32> to vector<8x134xf32>
    %76 = arith.mulf %74, %75 : vector<8x134xf32>
    %77 = arith.addf %60, %76 : vector<8x134xf32>
    %78 = vector.extract_strided_slice %23 {offsets = [3, 0], sizes = [1, 134], strides = [1, 1]} : vector<4x134xf32> to vector<1x134xf32>
    %79 = vector.extract_strided_slice %24 {offsets = [3, 0], sizes = [1, 134], strides = [1, 1]} : vector<4x134xf32> to vector<1x134xf32>
    %80 = vector.extract_strided_slice %1 {offsets = [0, 3], sizes = [8, 1], strides = [1, 1]} : vector<8x4xf32> to vector<8x1xf32>
    %81 = vector.broadcast %80 : vector<8x1xf32> to vector<8x134xf32>
    %82 = vector.broadcast %78 : vector<1x134xf32> to vector<8x134xf32>
    %83 = arith.mulf %81, %82 : vector<8x134xf32>
    %84 = arith.addf %72, %83 : vector<8x134xf32>
    %85 = vector.extract_strided_slice %2 {offsets = [0, 3], sizes = [8, 1], strides = [1, 1]} : vector<8x4xf32> to vector<8x1xf32>
    %86 = vector.broadcast %85 : vector<8x1xf32> to vector<8x134xf32>
    %87 = vector.broadcast %79 : vector<1x134xf32> to vector<8x134xf32>
    %88 = arith.mulf %86, %87 : vector<8x134xf32>
    %89 = arith.addf %84, %88 : vector<8x134xf32>
    %90 = vector.extract_strided_slice %3 {offsets = [0, 3], sizes = [8, 1], strides = [1, 1]} : vector<8x4xf32> to vector<8x1xf32>
    %91 = vector.broadcast %90 : vector<8x1xf32> to vector<8x134xf32>
    %92 = vector.broadcast %79 : vector<1x134xf32> to vector<8x134xf32>
    %93 = arith.mulf %91, %92 : vector<8x134xf32>
    %94 = arith.addf %77, %93 : vector<8x134xf32>
    %95 = vector.broadcast %4 : vector<8x1xf32> to vector<8x134xf32>
    %96 = arith.addf %89, %95 : vector<8x134xf32>
    %cst_8 = arith.constant 0.000000e+00 : f32
    %97 = vector.broadcast %cst_8 : f32 to vector<8x134xf32>
    %98 = arith.cmpf oge, %96, %97 : vector<8x134xf32>
    %cst_9 = arith.constant 1.000000e-01 : f32
    %99 = vector.broadcast %cst_9 : f32 to vector<8x134xf32>
    %100 = arith.mulf %99, %96 : vector<8x134xf32>
    %101 = arith.select %98, %96, %100 : vector<8x134xi1>, vector<8x134xf32>
    %102 = arith.addf %101, %94 : vector<8x134xf32>
    %103 = vector.broadcast %5 : vector<8x1xf32> to vector<8x134xf32>
    %104 = arith.addf %102, %103 : vector<8x134xf32>
    %105 = vector.extract_strided_slice %104 {offsets = [0, 0], sizes = [8, 132], strides = [1, 1]} : vector<8x134xf32> to vector<8x132xf32>
    %106 = vector.extract_strided_slice %104 {offsets = [0, 2], sizes = [8, 132], strides = [1, 1]} : vector<8x134xf32> to vector<8x132xf32>
    %cst_10 = arith.constant 0.000000e+00 : f32
    %107 = vector.broadcast %cst_10 : f32 to vector<8x132xf32>
    %cst_11 = arith.constant 0.000000e+00 : f32
    %108 = vector.broadcast %cst_11 : f32 to vector<8x132xf32>
    %109 = vector.extract_strided_slice %105 {offsets = [0, 0], sizes = [1, 132], strides = [1, 1]} : vector<8x132xf32> to vector<1x132xf32>
    %110 = vector.extract_strided_slice %106 {offsets = [0, 0], sizes = [1, 132], strides = [1, 1]} : vector<8x132xf32> to vector<1x132xf32>
    %111 = vector.extract_strided_slice %6 {offsets = [0, 0], sizes = [8, 1], strides = [1, 1]} : vector<8x8xf32> to vector<8x1xf32>
    %112 = vector.broadcast %111 : vector<8x1xf32> to vector<8x132xf32>
    %113 = vector.broadcast %109 : vector<1x132xf32> to vector<8x132xf32>
    %114 = arith.mulf %112, %113 : vector<8x132xf32>
    %115 = arith.addf %107, %114 : vector<8x132xf32>
    %116 = vector.extract_strided_slice %7 {offsets = [0, 0], sizes = [8, 1], strides = [1, 1]} : vector<8x8xf32> to vector<8x1xf32>
    %117 = vector.broadcast %116 : vector<8x1xf32> to vector<8x132xf32>
    %118 = vector.broadcast %110 : vector<1x132xf32> to vector<8x132xf32>
    %119 = arith.mulf %117, %118 : vector<8x132xf32>
    %120 = arith.addf %115, %119 : vector<8x132xf32>
    %121 = vector.extract_strided_slice %8 {offsets = [0, 0], sizes = [8, 1], strides = [1, 1]} : vector<8x8xf32> to vector<8x1xf32>
    %122 = vector.broadcast %121 : vector<8x1xf32> to vector<8x132xf32>
    %123 = vector.broadcast %110 : vector<1x132xf32> to vector<8x132xf32>
    %124 = arith.mulf %122, %123 : vector<8x132xf32>
    %125 = arith.addf %108, %124 : vector<8x132xf32>
    %126 = vector.extract_strided_slice %105 {offsets = [1, 0], sizes = [1, 132], strides = [1, 1]} : vector<8x132xf32> to vector<1x132xf32>
    %127 = vector.extract_strided_slice %106 {offsets = [1, 0], sizes = [1, 132], strides = [1, 1]} : vector<8x132xf32> to vector<1x132xf32>
    %128 = vector.extract_strided_slice %6 {offsets = [0, 1], sizes = [8, 1], strides = [1, 1]} : vector<8x8xf32> to vector<8x1xf32>
    %129 = vector.broadcast %128 : vector<8x1xf32> to vector<8x132xf32>
    %130 = vector.broadcast %126 : vector<1x132xf32> to vector<8x132xf32>
    %131 = arith.mulf %129, %130 : vector<8x132xf32>
    %132 = arith.addf %120, %131 : vector<8x132xf32>
    %133 = vector.extract_strided_slice %7 {offsets = [0, 1], sizes = [8, 1], strides = [1, 1]} : vector<8x8xf32> to vector<8x1xf32>
    %134 = vector.broadcast %133 : vector<8x1xf32> to vector<8x132xf32>
    %135 = vector.broadcast %127 : vector<1x132xf32> to vector<8x132xf32>
    %136 = arith.mulf %134, %135 : vector<8x132xf32>
    %137 = arith.addf %132, %136 : vector<8x132xf32>
    %138 = vector.extract_strided_slice %8 {offsets = [0, 1], sizes = [8, 1], strides = [1, 1]} : vector<8x8xf32> to vector<8x1xf32>
    %139 = vector.broadcast %138 : vector<8x1xf32> to vector<8x132xf32>
    %140 = vector.broadcast %127 : vector<1x132xf32> to vector<8x132xf32>
    %141 = arith.mulf %139, %140 : vector<8x132xf32>
    %142 = arith.addf %125, %141 : vector<8x132xf32>
    %143 = vector.extract_strided_slice %105 {offsets = [2, 0], sizes = [1, 132], strides = [1, 1]} : vector<8x132xf32> to vector<1x132xf32>
    %144 = vector.extract_strided_slice %106 {offsets = [2, 0], sizes = [1, 132], strides = [1, 1]} : vector<8x132xf32> to vector<1x132xf32>
    %145 = vector.extract_strided_slice %6 {offsets = [0, 2], sizes = [8, 1], strides = [1, 1]} : vector<8x8xf32> to vector<8x1xf32>
    %146 = vector.broadcast %145 : vector<8x1xf32> to vector<8x132xf32>
    %147 = vector.broadcast %143 : vector<1x132xf32> to vector<8x132xf32>
    %148 = arith.mulf %146, %147 : vector<8x132xf32>
    %149 = arith.addf %137, %148 : vector<8x132xf32>
    %150 = vector.extract_strided_slice %7 {offsets = [0, 2], sizes = [8, 1], strides = [1, 1]} : vector<8x8xf32> to vector<8x1xf32>
    %151 = vector.broadcast %150 : vector<8x1xf32> to vector<8x132xf32>
    %152 = vector.broadcast %144 : vector<1x132xf32> to vector<8x132xf32>
    %153 = arith.mulf %151, %152 : vector<8x132xf32>
    %154 = arith.addf %149, %153 : vector<8x132xf32>
    %155 = vector.extract_strided_slice %8 {offsets = [0, 2], sizes = [8, 1], strides = [1, 1]} : vector<8x8xf32> to vector<8x1xf32>
    %156 = vector.broadcast %155 : vector<8x1xf32> to vector<8x132xf32>
    %157 = vector.broadcast %144 : vector<1x132xf32> to vector<8x132xf32>
    %158 = arith.mulf %156, %157 : vector<8x132xf32>
    %159 = arith.addf %142, %158 : vector<8x132xf32>
    %160 = vector.extract_strided_slice %105 {offsets = [3, 0], sizes = [1, 132], strides = [1, 1]} : vector<8x132xf32> to vector<1x132xf32>
    %161 = vector.extract_strided_slice %106 {offsets = [3, 0], sizes = [1, 132], strides = [1, 1]} : vector<8x132xf32> to vector<1x132xf32>
    %162 = vector.extract_strided_slice %6 {offsets = [0, 3], sizes = [8, 1], strides = [1, 1]} : vector<8x8xf32> to vector<8x1xf32>
    %163 = vector.broadcast %162 : vector<8x1xf32> to vector<8x132xf32>
    %164 = vector.broadcast %160 : vector<1x132xf32> to vector<8x132xf32>
    %165 = arith.mulf %163, %164 : vector<8x132xf32>
    %166 = arith.addf %154, %165 : vector<8x132xf32>
    %167 = vector.extract_strided_slice %7 {offsets = [0, 3], sizes = [8, 1], strides = [1, 1]} : vector<8x8xf32> to vector<8x1xf32>
    %168 = vector.broadcast %167 : vector<8x1xf32> to vector<8x132xf32>
    %169 = vector.broadcast %161 : vector<1x132xf32> to vector<8x132xf32>
    %170 = arith.mulf %168, %169 : vector<8x132xf32>
    %171 = arith.addf %166, %170 : vector<8x132xf32>
    %172 = vector.extract_strided_slice %8 {offsets = [0, 3], sizes = [8, 1], strides = [1, 1]} : vector<8x8xf32> to vector<8x1xf32>
    %173 = vector.broadcast %172 : vector<8x1xf32> to vector<8x132xf32>
    %174 = vector.broadcast %161 : vector<1x132xf32> to vector<8x132xf32>
    %175 = arith.mulf %173, %174 : vector<8x132xf32>
    %176 = arith.addf %159, %175 : vector<8x132xf32>
    %177 = vector.extract_strided_slice %105 {offsets = [4, 0], sizes = [1, 132], strides = [1, 1]} : vector<8x132xf32> to vector<1x132xf32>
    %178 = vector.extract_strided_slice %106 {offsets = [4, 0], sizes = [1, 132], strides = [1, 1]} : vector<8x132xf32> to vector<1x132xf32>
    %179 = vector.extract_strided_slice %6 {offsets = [0, 4], sizes = [8, 1], strides = [1, 1]} : vector<8x8xf32> to vector<8x1xf32>
    %180 = vector.broadcast %179 : vector<8x1xf32> to vector<8x132xf32>
    %181 = vector.broadcast %177 : vector<1x132xf32> to vector<8x132xf32>
    %182 = arith.mulf %180, %181 : vector<8x132xf32>
    %183 = arith.addf %171, %182 : vector<8x132xf32>
    %184 = vector.extract_strided_slice %7 {offsets = [0, 4], sizes = [8, 1], strides = [1, 1]} : vector<8x8xf32> to vector<8x1xf32>
    %185 = vector.broadcast %184 : vector<8x1xf32> to vector<8x132xf32>
    %186 = vector.broadcast %178 : vector<1x132xf32> to vector<8x132xf32>
    %187 = arith.mulf %185, %186 : vector<8x132xf32>
    %188 = arith.addf %183, %187 : vector<8x132xf32>
    %189 = vector.extract_strided_slice %8 {offsets = [0, 4], sizes = [8, 1], strides = [1, 1]} : vector<8x8xf32> to vector<8x1xf32>
    %190 = vector.broadcast %189 : vector<8x1xf32> to vector<8x132xf32>
    %191 = vector.broadcast %178 : vector<1x132xf32> to vector<8x132xf32>
    %192 = arith.mulf %190, %191 : vector<8x132xf32>
    %193 = arith.addf %176, %192 : vector<8x132xf32>
    %194 = vector.extract_strided_slice %105 {offsets = [5, 0], sizes = [1, 132], strides = [1, 1]} : vector<8x132xf32> to vector<1x132xf32>
    %195 = vector.extract_strided_slice %106 {offsets = [5, 0], sizes = [1, 132], strides = [1, 1]} : vector<8x132xf32> to vector<1x132xf32>
    %196 = vector.extract_strided_slice %6 {offsets = [0, 5], sizes = [8, 1], strides = [1, 1]} : vector<8x8xf32> to vector<8x1xf32>
    %197 = vector.broadcast %196 : vector<8x1xf32> to vector<8x132xf32>
    %198 = vector.broadcast %194 : vector<1x132xf32> to vector<8x132xf32>
    %199 = arith.mulf %197, %198 : vector<8x132xf32>
    %200 = arith.addf %188, %199 : vector<8x132xf32>
    %201 = vector.extract_strided_slice %7 {offsets = [0, 5], sizes = [8, 1], strides = [1, 1]} : vector<8x8xf32> to vector<8x1xf32>
    %202 = vector.broadcast %201 : vector<8x1xf32> to vector<8x132xf32>
    %203 = vector.broadcast %195 : vector<1x132xf32> to vector<8x132xf32>
    %204 = arith.mulf %202, %203 : vector<8x132xf32>
    %205 = arith.addf %200, %204 : vector<8x132xf32>
    %206 = vector.extract_strided_slice %8 {offsets = [0, 5], sizes = [8, 1], strides = [1, 1]} : vector<8x8xf32> to vector<8x1xf32>
    %207 = vector.broadcast %206 : vector<8x1xf32> to vector<8x132xf32>
    %208 = vector.broadcast %195 : vector<1x132xf32> to vector<8x132xf32>
    %209 = arith.mulf %207, %208 : vector<8x132xf32>
    %210 = arith.addf %193, %209 : vector<8x132xf32>
    %211 = vector.extract_strided_slice %105 {offsets = [6, 0], sizes = [1, 132], strides = [1, 1]} : vector<8x132xf32> to vector<1x132xf32>
    %212 = vector.extract_strided_slice %106 {offsets = [6, 0], sizes = [1, 132], strides = [1, 1]} : vector<8x132xf32> to vector<1x132xf32>
    %213 = vector.extract_strided_slice %6 {offsets = [0, 6], sizes = [8, 1], strides = [1, 1]} : vector<8x8xf32> to vector<8x1xf32>
    %214 = vector.broadcast %213 : vector<8x1xf32> to vector<8x132xf32>
    %215 = vector.broadcast %211 : vector<1x132xf32> to vector<8x132xf32>
    %216 = arith.mulf %214, %215 : vector<8x132xf32>
    %217 = arith.addf %205, %216 : vector<8x132xf32>
    %218 = vector.extract_strided_slice %7 {offsets = [0, 6], sizes = [8, 1], strides = [1, 1]} : vector<8x8xf32> to vector<8x1xf32>
    %219 = vector.broadcast %218 : vector<8x1xf32> to vector<8x132xf32>
    %220 = vector.broadcast %212 : vector<1x132xf32> to vector<8x132xf32>
    %221 = arith.mulf %219, %220 : vector<8x132xf32>
    %222 = arith.addf %217, %221 : vector<8x132xf32>
    %223 = vector.extract_strided_slice %8 {offsets = [0, 6], sizes = [8, 1], strides = [1, 1]} : vector<8x8xf32> to vector<8x1xf32>
    %224 = vector.broadcast %223 : vector<8x1xf32> to vector<8x132xf32>
    %225 = vector.broadcast %212 : vector<1x132xf32> to vector<8x132xf32>
    %226 = arith.mulf %224, %225 : vector<8x132xf32>
    %227 = arith.addf %210, %226 : vector<8x132xf32>
    %228 = vector.extract_strided_slice %105 {offsets = [7, 0], sizes = [1, 132], strides = [1, 1]} : vector<8x132xf32> to vector<1x132xf32>
    %229 = vector.extract_strided_slice %106 {offsets = [7, 0], sizes = [1, 132], strides = [1, 1]} : vector<8x132xf32> to vector<1x132xf32>
    %230 = vector.extract_strided_slice %6 {offsets = [0, 7], sizes = [8, 1], strides = [1, 1]} : vector<8x8xf32> to vector<8x1xf32>
    %231 = vector.broadcast %230 : vector<8x1xf32> to vector<8x132xf32>
    %232 = vector.broadcast %228 : vector<1x132xf32> to vector<8x132xf32>
    %233 = arith.mulf %231, %232 : vector<8x132xf32>
    %234 = arith.addf %222, %233 : vector<8x132xf32>
    %235 = vector.extract_strided_slice %7 {offsets = [0, 7], sizes = [8, 1], strides = [1, 1]} : vector<8x8xf32> to vector<8x1xf32>
    %236 = vector.broadcast %235 : vector<8x1xf32> to vector<8x132xf32>
    %237 = vector.broadcast %229 : vector<1x132xf32> to vector<8x132xf32>
    %238 = arith.mulf %236, %237 : vector<8x132xf32>
    %239 = arith.addf %234, %238 : vector<8x132xf32>
    %240 = vector.extract_strided_slice %8 {offsets = [0, 7], sizes = [8, 1], strides = [1, 1]} : vector<8x8xf32> to vector<8x1xf32>
    %241 = vector.broadcast %240 : vector<8x1xf32> to vector<8x132xf32>
    %242 = vector.broadcast %229 : vector<1x132xf32> to vector<8x132xf32>
    %243 = arith.mulf %241, %242 : vector<8x132xf32>
    %244 = arith.addf %227, %243 : vector<8x132xf32>
    %245 = vector.broadcast %9 : vector<8x1xf32> to vector<8x132xf32>
    %246 = arith.addf %239, %245 : vector<8x132xf32>
    %cst_12 = arith.constant 0.000000e+00 : f32
    %247 = vector.broadcast %cst_12 : f32 to vector<8x132xf32>
    %248 = arith.cmpf oge, %246, %247 : vector<8x132xf32>
    %cst_13 = arith.constant 1.000000e-01 : f32
    %249 = vector.broadcast %cst_13 : f32 to vector<8x132xf32>
    %250 = arith.mulf %249, %246 : vector<8x132xf32>
    %251 = arith.select %248, %246, %250 : vector<8x132xi1>, vector<8x132xf32>
    %252 = arith.addf %251, %244 : vector<8x132xf32>
    %253 = vector.broadcast %10 : vector<8x1xf32> to vector<8x132xf32>
    %254 = arith.addf %252, %253 : vector<8x132xf32>
    %255 = vector.extract_strided_slice %254 {offsets = [0, 0], sizes = [8, 128], strides = [1, 1]} : vector<8x132xf32> to vector<8x128xf32>
    %256 = vector.extract_strided_slice %254 {offsets = [0, 4], sizes = [8, 128], strides = [1, 1]} : vector<8x132xf32> to vector<8x128xf32>
    %cst_14 = arith.constant 0.000000e+00 : f32
    %257 = vector.broadcast %cst_14 : f32 to vector<8x128xf32>
    %cst_15 = arith.constant 0.000000e+00 : f32
    %258 = vector.broadcast %cst_15 : f32 to vector<8x128xf32>
    %259 = vector.extract_strided_slice %255 {offsets = [0, 0], sizes = [1, 128], strides = [1, 1]} : vector<8x128xf32> to vector<1x128xf32>
    %260 = vector.extract_strided_slice %256 {offsets = [0, 0], sizes = [1, 128], strides = [1, 1]} : vector<8x128xf32> to vector<1x128xf32>
    %261 = vector.extract_strided_slice %11 {offsets = [0, 0], sizes = [8, 1], strides = [1, 1]} : vector<8x8xf32> to vector<8x1xf32>
    %262 = vector.broadcast %261 : vector<8x1xf32> to vector<8x128xf32>
    %263 = vector.broadcast %259 : vector<1x128xf32> to vector<8x128xf32>
    %264 = arith.mulf %262, %263 : vector<8x128xf32>
    %265 = arith.addf %257, %264 : vector<8x128xf32>
    %266 = vector.extract_strided_slice %12 {offsets = [0, 0], sizes = [8, 1], strides = [1, 1]} : vector<8x8xf32> to vector<8x1xf32>
    %267 = vector.broadcast %266 : vector<8x1xf32> to vector<8x128xf32>
    %268 = vector.broadcast %260 : vector<1x128xf32> to vector<8x128xf32>
    %269 = arith.mulf %267, %268 : vector<8x128xf32>
    %270 = arith.addf %265, %269 : vector<8x128xf32>
    %271 = vector.extract_strided_slice %13 {offsets = [0, 0], sizes = [8, 1], strides = [1, 1]} : vector<8x8xf32> to vector<8x1xf32>
    %272 = vector.broadcast %271 : vector<8x1xf32> to vector<8x128xf32>
    %273 = vector.broadcast %260 : vector<1x128xf32> to vector<8x128xf32>
    %274 = arith.mulf %272, %273 : vector<8x128xf32>
    %275 = arith.addf %258, %274 : vector<8x128xf32>
    %276 = vector.extract_strided_slice %255 {offsets = [1, 0], sizes = [1, 128], strides = [1, 1]} : vector<8x128xf32> to vector<1x128xf32>
    %277 = vector.extract_strided_slice %256 {offsets = [1, 0], sizes = [1, 128], strides = [1, 1]} : vector<8x128xf32> to vector<1x128xf32>
    %278 = vector.extract_strided_slice %11 {offsets = [0, 1], sizes = [8, 1], strides = [1, 1]} : vector<8x8xf32> to vector<8x1xf32>
    %279 = vector.broadcast %278 : vector<8x1xf32> to vector<8x128xf32>
    %280 = vector.broadcast %276 : vector<1x128xf32> to vector<8x128xf32>
    %281 = arith.mulf %279, %280 : vector<8x128xf32>
    %282 = arith.addf %270, %281 : vector<8x128xf32>
    %283 = vector.extract_strided_slice %12 {offsets = [0, 1], sizes = [8, 1], strides = [1, 1]} : vector<8x8xf32> to vector<8x1xf32>
    %284 = vector.broadcast %283 : vector<8x1xf32> to vector<8x128xf32>
    %285 = vector.broadcast %277 : vector<1x128xf32> to vector<8x128xf32>
    %286 = arith.mulf %284, %285 : vector<8x128xf32>
    %287 = arith.addf %282, %286 : vector<8x128xf32>
    %288 = vector.extract_strided_slice %13 {offsets = [0, 1], sizes = [8, 1], strides = [1, 1]} : vector<8x8xf32> to vector<8x1xf32>
    %289 = vector.broadcast %288 : vector<8x1xf32> to vector<8x128xf32>
    %290 = vector.broadcast %277 : vector<1x128xf32> to vector<8x128xf32>
    %291 = arith.mulf %289, %290 : vector<8x128xf32>
    %292 = arith.addf %275, %291 : vector<8x128xf32>
    %293 = vector.extract_strided_slice %255 {offsets = [2, 0], sizes = [1, 128], strides = [1, 1]} : vector<8x128xf32> to vector<1x128xf32>
    %294 = vector.extract_strided_slice %256 {offsets = [2, 0], sizes = [1, 128], strides = [1, 1]} : vector<8x128xf32> to vector<1x128xf32>
    %295 = vector.extract_strided_slice %11 {offsets = [0, 2], sizes = [8, 1], strides = [1, 1]} : vector<8x8xf32> to vector<8x1xf32>
    %296 = vector.broadcast %295 : vector<8x1xf32> to vector<8x128xf32>
    %297 = vector.broadcast %293 : vector<1x128xf32> to vector<8x128xf32>
    %298 = arith.mulf %296, %297 : vector<8x128xf32>
    %299 = arith.addf %287, %298 : vector<8x128xf32>
    %300 = vector.extract_strided_slice %12 {offsets = [0, 2], sizes = [8, 1], strides = [1, 1]} : vector<8x8xf32> to vector<8x1xf32>
    %301 = vector.broadcast %300 : vector<8x1xf32> to vector<8x128xf32>
    %302 = vector.broadcast %294 : vector<1x128xf32> to vector<8x128xf32>
    %303 = arith.mulf %301, %302 : vector<8x128xf32>
    %304 = arith.addf %299, %303 : vector<8x128xf32>
    %305 = vector.extract_strided_slice %13 {offsets = [0, 2], sizes = [8, 1], strides = [1, 1]} : vector<8x8xf32> to vector<8x1xf32>
    %306 = vector.broadcast %305 : vector<8x1xf32> to vector<8x128xf32>
    %307 = vector.broadcast %294 : vector<1x128xf32> to vector<8x128xf32>
    %308 = arith.mulf %306, %307 : vector<8x128xf32>
    %309 = arith.addf %292, %308 : vector<8x128xf32>
    %310 = vector.extract_strided_slice %255 {offsets = [3, 0], sizes = [1, 128], strides = [1, 1]} : vector<8x128xf32> to vector<1x128xf32>
    %311 = vector.extract_strided_slice %256 {offsets = [3, 0], sizes = [1, 128], strides = [1, 1]} : vector<8x128xf32> to vector<1x128xf32>
    %312 = vector.extract_strided_slice %11 {offsets = [0, 3], sizes = [8, 1], strides = [1, 1]} : vector<8x8xf32> to vector<8x1xf32>
    %313 = vector.broadcast %312 : vector<8x1xf32> to vector<8x128xf32>
    %314 = vector.broadcast %310 : vector<1x128xf32> to vector<8x128xf32>
    %315 = arith.mulf %313, %314 : vector<8x128xf32>
    %316 = arith.addf %304, %315 : vector<8x128xf32>
    %317 = vector.extract_strided_slice %12 {offsets = [0, 3], sizes = [8, 1], strides = [1, 1]} : vector<8x8xf32> to vector<8x1xf32>
    %318 = vector.broadcast %317 : vector<8x1xf32> to vector<8x128xf32>
    %319 = vector.broadcast %311 : vector<1x128xf32> to vector<8x128xf32>
    %320 = arith.mulf %318, %319 : vector<8x128xf32>
    %321 = arith.addf %316, %320 : vector<8x128xf32>
    %322 = vector.extract_strided_slice %13 {offsets = [0, 3], sizes = [8, 1], strides = [1, 1]} : vector<8x8xf32> to vector<8x1xf32>
    %323 = vector.broadcast %322 : vector<8x1xf32> to vector<8x128xf32>
    %324 = vector.broadcast %311 : vector<1x128xf32> to vector<8x128xf32>
    %325 = arith.mulf %323, %324 : vector<8x128xf32>
    %326 = arith.addf %309, %325 : vector<8x128xf32>
    %327 = vector.extract_strided_slice %255 {offsets = [4, 0], sizes = [1, 128], strides = [1, 1]} : vector<8x128xf32> to vector<1x128xf32>
    %328 = vector.extract_strided_slice %256 {offsets = [4, 0], sizes = [1, 128], strides = [1, 1]} : vector<8x128xf32> to vector<1x128xf32>
    %329 = vector.extract_strided_slice %11 {offsets = [0, 4], sizes = [8, 1], strides = [1, 1]} : vector<8x8xf32> to vector<8x1xf32>
    %330 = vector.broadcast %329 : vector<8x1xf32> to vector<8x128xf32>
    %331 = vector.broadcast %327 : vector<1x128xf32> to vector<8x128xf32>
    %332 = arith.mulf %330, %331 : vector<8x128xf32>
    %333 = arith.addf %321, %332 : vector<8x128xf32>
    %334 = vector.extract_strided_slice %12 {offsets = [0, 4], sizes = [8, 1], strides = [1, 1]} : vector<8x8xf32> to vector<8x1xf32>
    %335 = vector.broadcast %334 : vector<8x1xf32> to vector<8x128xf32>
    %336 = vector.broadcast %328 : vector<1x128xf32> to vector<8x128xf32>
    %337 = arith.mulf %335, %336 : vector<8x128xf32>
    %338 = arith.addf %333, %337 : vector<8x128xf32>
    %339 = vector.extract_strided_slice %13 {offsets = [0, 4], sizes = [8, 1], strides = [1, 1]} : vector<8x8xf32> to vector<8x1xf32>
    %340 = vector.broadcast %339 : vector<8x1xf32> to vector<8x128xf32>
    %341 = vector.broadcast %328 : vector<1x128xf32> to vector<8x128xf32>
    %342 = arith.mulf %340, %341 : vector<8x128xf32>
    %343 = arith.addf %326, %342 : vector<8x128xf32>
    %344 = vector.extract_strided_slice %255 {offsets = [5, 0], sizes = [1, 128], strides = [1, 1]} : vector<8x128xf32> to vector<1x128xf32>
    %345 = vector.extract_strided_slice %256 {offsets = [5, 0], sizes = [1, 128], strides = [1, 1]} : vector<8x128xf32> to vector<1x128xf32>
    %346 = vector.extract_strided_slice %11 {offsets = [0, 5], sizes = [8, 1], strides = [1, 1]} : vector<8x8xf32> to vector<8x1xf32>
    %347 = vector.broadcast %346 : vector<8x1xf32> to vector<8x128xf32>
    %348 = vector.broadcast %344 : vector<1x128xf32> to vector<8x128xf32>
    %349 = arith.mulf %347, %348 : vector<8x128xf32>
    %350 = arith.addf %338, %349 : vector<8x128xf32>
    %351 = vector.extract_strided_slice %12 {offsets = [0, 5], sizes = [8, 1], strides = [1, 1]} : vector<8x8xf32> to vector<8x1xf32>
    %352 = vector.broadcast %351 : vector<8x1xf32> to vector<8x128xf32>
    %353 = vector.broadcast %345 : vector<1x128xf32> to vector<8x128xf32>
    %354 = arith.mulf %352, %353 : vector<8x128xf32>
    %355 = arith.addf %350, %354 : vector<8x128xf32>
    %356 = vector.extract_strided_slice %13 {offsets = [0, 5], sizes = [8, 1], strides = [1, 1]} : vector<8x8xf32> to vector<8x1xf32>
    %357 = vector.broadcast %356 : vector<8x1xf32> to vector<8x128xf32>
    %358 = vector.broadcast %345 : vector<1x128xf32> to vector<8x128xf32>
    %359 = arith.mulf %357, %358 : vector<8x128xf32>
    %360 = arith.addf %343, %359 : vector<8x128xf32>
    %361 = vector.extract_strided_slice %255 {offsets = [6, 0], sizes = [1, 128], strides = [1, 1]} : vector<8x128xf32> to vector<1x128xf32>
    %362 = vector.extract_strided_slice %256 {offsets = [6, 0], sizes = [1, 128], strides = [1, 1]} : vector<8x128xf32> to vector<1x128xf32>
    %363 = vector.extract_strided_slice %11 {offsets = [0, 6], sizes = [8, 1], strides = [1, 1]} : vector<8x8xf32> to vector<8x1xf32>
    %364 = vector.broadcast %363 : vector<8x1xf32> to vector<8x128xf32>
    %365 = vector.broadcast %361 : vector<1x128xf32> to vector<8x128xf32>
    %366 = arith.mulf %364, %365 : vector<8x128xf32>
    %367 = arith.addf %355, %366 : vector<8x128xf32>
    %368 = vector.extract_strided_slice %12 {offsets = [0, 6], sizes = [8, 1], strides = [1, 1]} : vector<8x8xf32> to vector<8x1xf32>
    %369 = vector.broadcast %368 : vector<8x1xf32> to vector<8x128xf32>
    %370 = vector.broadcast %362 : vector<1x128xf32> to vector<8x128xf32>
    %371 = arith.mulf %369, %370 : vector<8x128xf32>
    %372 = arith.addf %367, %371 : vector<8x128xf32>
    %373 = vector.extract_strided_slice %13 {offsets = [0, 6], sizes = [8, 1], strides = [1, 1]} : vector<8x8xf32> to vector<8x1xf32>
    %374 = vector.broadcast %373 : vector<8x1xf32> to vector<8x128xf32>
    %375 = vector.broadcast %362 : vector<1x128xf32> to vector<8x128xf32>
    %376 = arith.mulf %374, %375 : vector<8x128xf32>
    %377 = arith.addf %360, %376 : vector<8x128xf32>
    %378 = vector.extract_strided_slice %255 {offsets = [7, 0], sizes = [1, 128], strides = [1, 1]} : vector<8x128xf32> to vector<1x128xf32>
    %379 = vector.extract_strided_slice %256 {offsets = [7, 0], sizes = [1, 128], strides = [1, 1]} : vector<8x128xf32> to vector<1x128xf32>
    %380 = vector.extract_strided_slice %11 {offsets = [0, 7], sizes = [8, 1], strides = [1, 1]} : vector<8x8xf32> to vector<8x1xf32>
    %381 = vector.broadcast %380 : vector<8x1xf32> to vector<8x128xf32>
    %382 = vector.broadcast %378 : vector<1x128xf32> to vector<8x128xf32>
    %383 = arith.mulf %381, %382 : vector<8x128xf32>
    %384 = arith.addf %372, %383 : vector<8x128xf32>
    %385 = vector.extract_strided_slice %12 {offsets = [0, 7], sizes = [8, 1], strides = [1, 1]} : vector<8x8xf32> to vector<8x1xf32>
    %386 = vector.broadcast %385 : vector<8x1xf32> to vector<8x128xf32>
    %387 = vector.broadcast %379 : vector<1x128xf32> to vector<8x128xf32>
    %388 = arith.mulf %386, %387 : vector<8x128xf32>
    %389 = arith.addf %384, %388 : vector<8x128xf32>
    %390 = vector.extract_strided_slice %13 {offsets = [0, 7], sizes = [8, 1], strides = [1, 1]} : vector<8x8xf32> to vector<8x1xf32>
    %391 = vector.broadcast %390 : vector<8x1xf32> to vector<8x128xf32>
    %392 = vector.broadcast %379 : vector<1x128xf32> to vector<8x128xf32>
    %393 = arith.mulf %391, %392 : vector<8x128xf32>
    %394 = arith.addf %377, %393 : vector<8x128xf32>
    %395 = vector.broadcast %14 : vector<8x1xf32> to vector<8x128xf32>
    %396 = arith.addf %389, %395 : vector<8x128xf32>
    %cst_16 = arith.constant 0.000000e+00 : f32
    %397 = vector.broadcast %cst_16 : f32 to vector<8x128xf32>
    %398 = arith.cmpf oge, %396, %397 : vector<8x128xf32>
    %cst_17 = arith.constant 1.000000e-01 : f32
    %399 = vector.broadcast %cst_17 : f32 to vector<8x128xf32>
    %400 = arith.mulf %399, %396 : vector<8x128xf32>
    %401 = arith.select %398, %396, %400 : vector<8x128xi1>, vector<8x128xf32>
    %402 = arith.addf %401, %394 : vector<8x128xf32>
    %403 = vector.broadcast %15 : vector<8x1xf32> to vector<8x128xf32>
    %404 = arith.addf %402, %403 : vector<8x128xf32>
    %cst_18 = arith.constant 0.000000e+00 : f32
    %405 = vector.broadcast %cst_18 : f32 to vector<1x128xf32>
    %406 = vector.extract_strided_slice %16 {offsets = [0, 0], sizes = [1, 1], strides = [1, 1]} : vector<8x1xf32> to vector<1x1xf32>
    %407 = vector.extract_strided_slice %404 {offsets = [0, 0], sizes = [1, 128], strides = [1, 1]} : vector<8x128xf32> to vector<1x128xf32>
    %408 = vector.broadcast %406 : vector<1x1xf32> to vector<1x128xf32>
    %409 = arith.mulf %408, %407 : vector<1x128xf32>
    %410 = arith.addf %405, %409 : vector<1x128xf32>
    %411 = vector.extract_strided_slice %16 {offsets = [1, 0], sizes = [1, 1], strides = [1, 1]} : vector<8x1xf32> to vector<1x1xf32>
    %412 = vector.extract_strided_slice %404 {offsets = [1, 0], sizes = [1, 128], strides = [1, 1]} : vector<8x128xf32> to vector<1x128xf32>
    %413 = vector.broadcast %411 : vector<1x1xf32> to vector<1x128xf32>
    %414 = arith.mulf %413, %412 : vector<1x128xf32>
    %415 = arith.addf %410, %414 : vector<1x128xf32>
    %416 = vector.extract_strided_slice %16 {offsets = [2, 0], sizes = [1, 1], strides = [1, 1]} : vector<8x1xf32> to vector<1x1xf32>
    %417 = vector.extract_strided_slice %404 {offsets = [2, 0], sizes = [1, 128], strides = [1, 1]} : vector<8x128xf32> to vector<1x128xf32>
    %418 = vector.broadcast %416 : vector<1x1xf32> to vector<1x128xf32>
    %419 = arith.mulf %418, %417 : vector<1x128xf32>
    %420 = arith.addf %415, %419 : vector<1x128xf32>
    %421 = vector.extract_strided_slice %16 {offsets = [3, 0], sizes = [1, 1], strides = [1, 1]} : vector<8x1xf32> to vector<1x1xf32>
    %422 = vector.extract_strided_slice %404 {offsets = [3, 0], sizes = [1, 128], strides = [1, 1]} : vector<8x128xf32> to vector<1x128xf32>
    %423 = vector.broadcast %421 : vector<1x1xf32> to vector<1x128xf32>
    %424 = arith.mulf %423, %422 : vector<1x128xf32>
    %425 = arith.addf %420, %424 : vector<1x128xf32>
    %426 = vector.extract_strided_slice %16 {offsets = [4, 0], sizes = [1, 1], strides = [1, 1]} : vector<8x1xf32> to vector<1x1xf32>
    %427 = vector.extract_strided_slice %404 {offsets = [4, 0], sizes = [1, 128], strides = [1, 1]} : vector<8x128xf32> to vector<1x128xf32>
    %428 = vector.broadcast %426 : vector<1x1xf32> to vector<1x128xf32>
    %429 = arith.mulf %428, %427 : vector<1x128xf32>
    %430 = arith.addf %425, %429 : vector<1x128xf32>
    %431 = vector.extract_strided_slice %16 {offsets = [5, 0], sizes = [1, 1], strides = [1, 1]} : vector<8x1xf32> to vector<1x1xf32>
    %432 = vector.extract_strided_slice %404 {offsets = [5, 0], sizes = [1, 128], strides = [1, 1]} : vector<8x128xf32> to vector<1x128xf32>
    %433 = vector.broadcast %431 : vector<1x1xf32> to vector<1x128xf32>
    %434 = arith.mulf %433, %432 : vector<1x128xf32>
    %435 = arith.addf %430, %434 : vector<1x128xf32>
    %436 = vector.extract_strided_slice %16 {offsets = [6, 0], sizes = [1, 1], strides = [1, 1]} : vector<8x1xf32> to vector<1x1xf32>
    %437 = vector.extract_strided_slice %404 {offsets = [6, 0], sizes = [1, 128], strides = [1, 1]} : vector<8x128xf32> to vector<1x128xf32>
    %438 = vector.broadcast %436 : vector<1x1xf32> to vector<1x128xf32>
    %439 = arith.mulf %438, %437 : vector<1x128xf32>
    %440 = arith.addf %435, %439 : vector<1x128xf32>
    %441 = vector.extract_strided_slice %16 {offsets = [7, 0], sizes = [1, 1], strides = [1, 1]} : vector<8x1xf32> to vector<1x1xf32>
    %442 = vector.extract_strided_slice %404 {offsets = [7, 0], sizes = [1, 128], strides = [1, 1]} : vector<8x128xf32> to vector<1x128xf32>
    %443 = vector.broadcast %441 : vector<1x1xf32> to vector<1x128xf32>
    %444 = arith.mulf %443, %442 : vector<1x128xf32>
    %445 = arith.addf %440, %444 : vector<1x128xf32>
    %446 = vector.broadcast %17 : vector<1x1xf32> to vector<1x128xf32>
    %447 = arith.addf %445, %446 : vector<1x128xf32>
    %cst_19 = arith.constant 0.000000e+00 : f32
    %448 = vector.broadcast %cst_19 : f32 to vector<1x128xf32>
    %449 = arith.cmpf oge, %447, %448 : vector<1x128xf32>
    %cst_20 = arith.constant 1.000000e-01 : f32
    %450 = vector.broadcast %cst_20 : f32 to vector<1x128xf32>
    %451 = arith.mulf %450, %447 : vector<1x128xf32>
    %452 = arith.select %449, %447, %451 : vector<1x128xi1>, vector<1x128xf32>
    %c0_21 = arith.constant 0 : index
    %c0_22 = arith.constant 0 : index
    %c0_23 = arith.constant 0 : index
    %453 = vector.load %arg5[%c0_21, %c0_22, %c0_23] : memref<2x1x128xf32, #tpu.memory_space<vmem>>, vector<1x1x128xf32>
    %454 = vector.shape_cast %453 : vector<1x1x128xf32> to vector<1x128xf32>
    %455 = vector.shape_cast %452 : vector<1x128xf32> to vector<1x1x128xf32>
    tpu.vector_store %arg5[%c0_21, %c0_22, %c0_23], %455 {strides = array<i32>} : memref<2x1x128xf32, #tpu.memory_space<vmem>>, vector<1x1x128xf32>,
    %c1 = arith.constant 1 : index
    %c0_24 = arith.constant 0 : index
    %c0_25 = arith.constant 0 : index
    %456 = vector.load %arg2[%c1, %c0_24, %c0_25] : memref<2x4x128xf32, #tpu.memory_space<vmem>>, vector<1x4x128xf32>
    %457 = vector.shape_cast %456 : vector<1x4x128xf32> to vector<4x128xf32>
    %c1_26 = arith.constant 1 : index
    %c0_27 = arith.constant 0 : index
    %c0_28 = arith.constant 0 : index
    %458 = vector.load %arg3[%c1_26, %c0_27, %c0_28] : memref<2x4x128xf32, #tpu.memory_space<vmem>>, vector<1x4x7xf32>
    %459 = vector.shape_cast %458 : vector<1x4x7xf32> to vector<4x7xf32>
    %460 = tpu.concatenate %457, %459 in 1 : vector<4x128xf32>, vector<4x7xf32> -> vector<4x135xf32>
    %461 = vector.extract_strided_slice %460 {offsets = [0, 0], sizes = [4, 134], strides = [1, 1]} : vector<4x135xf32> to vector<4x134xf32>
    %462 = vector.extract_strided_slice %460 {offsets = [0, 1], sizes = [4, 134], strides = [1, 1]} : vector<4x135xf32> to vector<4x134xf32>
    %cst_29 = arith.constant 0.000000e+00 : f32
    %463 = vector.broadcast %cst_29 : f32 to vector<8x134xf32>
    %cst_30 = arith.constant 0.000000e+00 : f32
    %464 = vector.broadcast %cst_30 : f32 to vector<8x134xf32>
    %465 = vector.extract_strided_slice %461 {offsets = [0, 0], sizes = [1, 134], strides = [1, 1]} : vector<4x134xf32> to vector<1x134xf32>
    %466 = vector.extract_strided_slice %462 {offsets = [0, 0], sizes = [1, 134], strides = [1, 1]} : vector<4x134xf32> to vector<1x134xf32>
    %467 = vector.extract_strided_slice %1 {offsets = [0, 0], sizes = [8, 1], strides = [1, 1]} : vector<8x4xf32> to vector<8x1xf32>
    %468 = vector.broadcast %467 : vector<8x1xf32> to vector<8x134xf32>
    %469 = vector.broadcast %465 : vector<1x134xf32> to vector<8x134xf32>
    %470 = arith.mulf %468, %469 : vector<8x134xf32>
    %471 = arith.addf %463, %470 : vector<8x134xf32>
    %472 = vector.extract_strided_slice %2 {offsets = [0, 0], sizes = [8, 1], strides = [1, 1]} : vector<8x4xf32> to vector<8x1xf32>
    %473 = vector.broadcast %472 : vector<8x1xf32> to vector<8x134xf32>
    %474 = vector.broadcast %466 : vector<1x134xf32> to vector<8x134xf32>
    %475 = arith.mulf %473, %474 : vector<8x134xf32>
    %476 = arith.addf %471, %475 : vector<8x134xf32>
    %477 = vector.extract_strided_slice %3 {offsets = [0, 0], sizes = [8, 1], strides = [1, 1]} : vector<8x4xf32> to vector<8x1xf32>
    %478 = vector.broadcast %477 : vector<8x1xf32> to vector<8x134xf32>
    %479 = vector.broadcast %466 : vector<1x134xf32> to vector<8x134xf32>
    %480 = arith.mulf %478, %479 : vector<8x134xf32>
    %481 = arith.addf %464, %480 : vector<8x134xf32>
    %482 = vector.extract_strided_slice %461 {offsets = [1, 0], sizes = [1, 134], strides = [1, 1]} : vector<4x134xf32> to vector<1x134xf32>
    %483 = vector.extract_strided_slice %462 {offsets = [1, 0], sizes = [1, 134], strides = [1, 1]} : vector<4x134xf32> to vector<1x134xf32>
    %484 = vector.extract_strided_slice %1 {offsets = [0, 1], sizes = [8, 1], strides = [1, 1]} : vector<8x4xf32> to vector<8x1xf32>
    %485 = vector.broadcast %484 : vector<8x1xf32> to vector<8x134xf32>
    %486 = vector.broadcast %482 : vector<1x134xf32> to vector<8x134xf32>
    %487 = arith.mulf %485, %486 : vector<8x134xf32>
    %488 = arith.addf %476, %487 : vector<8x134xf32>
    %489 = vector.extract_strided_slice %2 {offsets = [0, 1], sizes = [8, 1], strides = [1, 1]} : vector<8x4xf32> to vector<8x1xf32>
    %490 = vector.broadcast %489 : vector<8x1xf32> to vector<8x134xf32>
    %491 = vector.broadcast %483 : vector<1x134xf32> to vector<8x134xf32>
    %492 = arith.mulf %490, %491 : vector<8x134xf32>
    %493 = arith.addf %488, %492 : vector<8x134xf32>
    %494 = vector.extract_strided_slice %3 {offsets = [0, 1], sizes = [8, 1], strides = [1, 1]} : vector<8x4xf32> to vector<8x1xf32>
    %495 = vector.broadcast %494 : vector<8x1xf32> to vector<8x134xf32>
    %496 = vector.broadcast %483 : vector<1x134xf32> to vector<8x134xf32>
    %497 = arith.mulf %495, %496 : vector<8x134xf32>
    %498 = arith.addf %481, %497 : vector<8x134xf32>
    %499 = vector.extract_strided_slice %461 {offsets = [2, 0], sizes = [1, 134], strides = [1, 1]} : vector<4x134xf32> to vector<1x134xf32>
    %500 = vector.extract_strided_slice %462 {offsets = [2, 0], sizes = [1, 134], strides = [1, 1]} : vector<4x134xf32> to vector<1x134xf32>
    %501 = vector.extract_strided_slice %1 {offsets = [0, 2], sizes = [8, 1], strides = [1, 1]} : vector<8x4xf32> to vector<8x1xf32>
    %502 = vector.broadcast %501 : vector<8x1xf32> to vector<8x134xf32>
    %503 = vector.broadcast %499 : vector<1x134xf32> to vector<8x134xf32>
    %504 = arith.mulf %502, %503 : vector<8x134xf32>
    %505 = arith.addf %493, %504 : vector<8x134xf32>
    %506 = vector.extract_strided_slice %2 {offsets = [0, 2], sizes = [8, 1], strides = [1, 1]} : vector<8x4xf32> to vector<8x1xf32>
    %507 = vector.broadcast %506 : vector<8x1xf32> to vector<8x134xf32>
    %508 = vector.broadcast %500 : vector<1x134xf32> to vector<8x134xf32>
    %509 = arith.mulf %507, %508 : vector<8x134xf32>
    %510 = arith.addf %505, %509 : vector<8x134xf32>
    %511 = vector.extract_strided_slice %3 {offsets = [0, 2], sizes = [8, 1], strides = [1, 1]} : vector<8x4xf32> to vector<8x1xf32>
    %512 = vector.broadcast %511 : vector<8x1xf32> to vector<8x134xf32>
    %513 = vector.broadcast %500 : vector<1x134xf32> to vector<8x134xf32>
    %514 = arith.mulf %512, %513 : vector<8x134xf32>
    %515 = arith.addf %498, %514 : vector<8x134xf32>
    %516 = vector.extract_strided_slice %461 {offsets = [3, 0], sizes = [1, 134], strides = [1, 1]} : vector<4x134xf32> to vector<1x134xf32>
    %517 = vector.extract_strided_slice %462 {offsets = [3, 0], sizes = [1, 134], strides = [1, 1]} : vector<4x134xf32> to vector<1x134xf32>
    %518 = vector.extract_strided_slice %1 {offsets = [0, 3], sizes = [8, 1], strides = [1, 1]} : vector<8x4xf32> to vector<8x1xf32>
    %519 = vector.broadcast %518 : vector<8x1xf32> to vector<8x134xf32>
    %520 = vector.broadcast %516 : vector<1x134xf32> to vector<8x134xf32>
    %521 = arith.mulf %519, %520 : vector<8x134xf32>
    %522 = arith.addf %510, %521 : vector<8x134xf32>
    %523 = vector.extract_strided_slice %2 {offsets = [0, 3], sizes = [8, 1], strides = [1, 1]} : vector<8x4xf32> to vector<8x1xf32>
    %524 = vector.broadcast %523 : vector<8x1xf32> to vector<8x134xf32>
    %525 = vector.broadcast %517 : vector<1x134xf32> to vector<8x134xf32>
    %526 = arith.mulf %524, %525 : vector<8x134xf32>
    %527 = arith.addf %522, %526 : vector<8x134xf32>
    %528 = vector.extract_strided_slice %3 {offsets = [0, 3], sizes = [8, 1], strides = [1, 1]} : vector<8x4xf32> to vector<8x1xf32>
    %529 = vector.broadcast %528 : vector<8x1xf32> to vector<8x134xf32>
    %530 = vector.broadcast %517 : vector<1x134xf32> to vector<8x134xf32>
    %531 = arith.mulf %529, %530 : vector<8x134xf32>
    %532 = arith.addf %515, %531 : vector<8x134xf32>
    %533 = vector.broadcast %4 : vector<8x1xf32> to vector<8x134xf32>
    %534 = arith.addf %527, %533 : vector<8x134xf32>
    %cst_31 = arith.constant 0.000000e+00 : f32
    %535 = vector.broadcast %cst_31 : f32 to vector<8x134xf32>
    %536 = arith.cmpf oge, %534, %535 : vector<8x134xf32>
    %cst_32 = arith.constant 1.000000e-01 : f32
    %537 = vector.broadcast %cst_32 : f32 to vector<8x134xf32>
    %538 = arith.mulf %537, %534 : vector<8x134xf32>
    %539 = arith.select %536, %534, %538 : vector<8x134xi1>, vector<8x134xf32>
    %540 = arith.addf %539, %532 : vector<8x134xf32>
    %541 = vector.broadcast %5 : vector<8x1xf32> to vector<8x134xf32>
    %542 = arith.addf %540, %541 : vector<8x134xf32>
    %543 = vector.extract_strided_slice %542 {offsets = [0, 0], sizes = [8, 132], strides = [1, 1]} : vector<8x134xf32> to vector<8x132xf32>
    %544 = vector.extract_strided_slice %542 {offsets = [0, 2], sizes = [8, 132], strides = [1, 1]} : vector<8x134xf32> to vector<8x132xf32>
    %cst_33 = arith.constant 0.000000e+00 : f32
    %545 = vector.broadcast %cst_33 : f32 to vector<8x132xf32>
    %cst_34 = arith.constant 0.000000e+00 : f32
    %546 = vector.broadcast %cst_34 : f32 to vector<8x132xf32>
    %547 = vector.extract_strided_slice %543 {offsets = [0, 0], sizes = [1, 132], strides = [1, 1]} : vector<8x132xf32> to vector<1x132xf32>
    %548 = vector.extract_strided_slice %544 {offsets = [0, 0], sizes = [1, 132], strides = [1, 1]} : vector<8x132xf32> to vector<1x132xf32>
    %549 = vector.extract_strided_slice %6 {offsets = [0, 0], sizes = [8, 1], strides = [1, 1]} : vector<8x8xf32> to vector<8x1xf32>
    %550 = vector.broadcast %549 : vector<8x1xf32> to vector<8x132xf32>
    %551 = vector.broadcast %547 : vector<1x132xf32> to vector<8x132xf32>
    %552 = arith.mulf %550, %551 : vector<8x132xf32>
    %553 = arith.addf %545, %552 : vector<8x132xf32>
    %554 = vector.extract_strided_slice %7 {offsets = [0, 0], sizes = [8, 1], strides = [1, 1]} : vector<8x8xf32> to vector<8x1xf32>
    %555 = vector.broadcast %554 : vector<8x1xf32> to vector<8x132xf32>
    %556 = vector.broadcast %548 : vector<1x132xf32> to vector<8x132xf32>
    %557 = arith.mulf %555, %556 : vector<8x132xf32>
    %558 = arith.addf %553, %557 : vector<8x132xf32>
    %559 = vector.extract_strided_slice %8 {offsets = [0, 0], sizes = [8, 1], strides = [1, 1]} : vector<8x8xf32> to vector<8x1xf32>
    %560 = vector.broadcast %559 : vector<8x1xf32> to vector<8x132xf32>
    %561 = vector.broadcast %548 : vector<1x132xf32> to vector<8x132xf32>
    %562 = arith.mulf %560, %561 : vector<8x132xf32>
    %563 = arith.addf %546, %562 : vector<8x132xf32>
    %564 = vector.extract_strided_slice %543 {offsets = [1, 0], sizes = [1, 132], strides = [1, 1]} : vector<8x132xf32> to vector<1x132xf32>
    %565 = vector.extract_strided_slice %544 {offsets = [1, 0], sizes = [1, 132], strides = [1, 1]} : vector<8x132xf32> to vector<1x132xf32>
    %566 = vector.extract_strided_slice %6 {offsets = [0, 1], sizes = [8, 1], strides = [1, 1]} : vector<8x8xf32> to vector<8x1xf32>
    %567 = vector.broadcast %566 : vector<8x1xf32> to vector<8x132xf32>
    %568 = vector.broadcast %564 : vector<1x132xf32> to vector<8x132xf32>
    %569 = arith.mulf %567, %568 : vector<8x132xf32>
    %570 = arith.addf %558, %569 : vector<8x132xf32>
    %571 = vector.extract_strided_slice %7 {offsets = [0, 1], sizes = [8, 1], strides = [1, 1]} : vector<8x8xf32> to vector<8x1xf32>
    %572 = vector.broadcast %571 : vector<8x1xf32> to vector<8x132xf32>
    %573 = vector.broadcast %565 : vector<1x132xf32> to vector<8x132xf32>
    %574 = arith.mulf %572, %573 : vector<8x132xf32>
    %575 = arith.addf %570, %574 : vector<8x132xf32>
    %576 = vector.extract_strided_slice %8 {offsets = [0, 1], sizes = [8, 1], strides = [1, 1]} : vector<8x8xf32> to vector<8x1xf32>
    %577 = vector.broadcast %576 : vector<8x1xf32> to vector<8x132xf32>
    %578 = vector.broadcast %565 : vector<1x132xf32> to vector<8x132xf32>
    %579 = arith.mulf %577, %578 : vector<8x132xf32>
    %580 = arith.addf %563, %579 : vector<8x132xf32>
    %581 = vector.extract_strided_slice %543 {offsets = [2, 0], sizes = [1, 132], strides = [1, 1]} : vector<8x132xf32> to vector<1x132xf32>
    %582 = vector.extract_strided_slice %544 {offsets = [2, 0], sizes = [1, 132], strides = [1, 1]} : vector<8x132xf32> to vector<1x132xf32>
    %583 = vector.extract_strided_slice %6 {offsets = [0, 2], sizes = [8, 1], strides = [1, 1]} : vector<8x8xf32> to vector<8x1xf32>
    %584 = vector.broadcast %583 : vector<8x1xf32> to vector<8x132xf32>
    %585 = vector.broadcast %581 : vector<1x132xf32> to vector<8x132xf32>
    %586 = arith.mulf %584, %585 : vector<8x132xf32>
    %587 = arith.addf %575, %586 : vector<8x132xf32>
    %588 = vector.extract_strided_slice %7 {offsets = [0, 2], sizes = [8, 1], strides = [1, 1]} : vector<8x8xf32> to vector<8x1xf32>
    %589 = vector.broadcast %588 : vector<8x1xf32> to vector<8x132xf32>
    %590 = vector.broadcast %582 : vector<1x132xf32> to vector<8x132xf32>
    %591 = arith.mulf %589, %590 : vector<8x132xf32>
    %592 = arith.addf %587, %591 : vector<8x132xf32>
    %593 = vector.extract_strided_slice %8 {offsets = [0, 2], sizes = [8, 1], strides = [1, 1]} : vector<8x8xf32> to vector<8x1xf32>
    %594 = vector.broadcast %593 : vector<8x1xf32> to vector<8x132xf32>
    %595 = vector.broadcast %582 : vector<1x132xf32> to vector<8x132xf32>
    %596 = arith.mulf %594, %595 : vector<8x132xf32>
    %597 = arith.addf %580, %596 : vector<8x132xf32>
    %598 = vector.extract_strided_slice %543 {offsets = [3, 0], sizes = [1, 132], strides = [1, 1]} : vector<8x132xf32> to vector<1x132xf32>
    %599 = vector.extract_strided_slice %544 {offsets = [3, 0], sizes = [1, 132], strides = [1, 1]} : vector<8x132xf32> to vector<1x132xf32>
    %600 = vector.extract_strided_slice %6 {offsets = [0, 3], sizes = [8, 1], strides = [1, 1]} : vector<8x8xf32> to vector<8x1xf32>
    %601 = vector.broadcast %600 : vector<8x1xf32> to vector<8x132xf32>
    %602 = vector.broadcast %598 : vector<1x132xf32> to vector<8x132xf32>
    %603 = arith.mulf %601, %602 : vector<8x132xf32>
    %604 = arith.addf %592, %603 : vector<8x132xf32>
    %605 = vector.extract_strided_slice %7 {offsets = [0, 3], sizes = [8, 1], strides = [1, 1]} : vector<8x8xf32> to vector<8x1xf32>
    %606 = vector.broadcast %605 : vector<8x1xf32> to vector<8x132xf32>
    %607 = vector.broadcast %599 : vector<1x132xf32> to vector<8x132xf32>
    %608 = arith.mulf %606, %607 : vector<8x132xf32>
    %609 = arith.addf %604, %608 : vector<8x132xf32>
    %610 = vector.extract_strided_slice %8 {offsets = [0, 3], sizes = [8, 1], strides = [1, 1]} : vector<8x8xf32> to vector<8x1xf32>
    %611 = vector.broadcast %610 : vector<8x1xf32> to vector<8x132xf32>
    %612 = vector.broadcast %599 : vector<1x132xf32> to vector<8x132xf32>
    %613 = arith.mulf %611, %612 : vector<8x132xf32>
    %614 = arith.addf %597, %613 : vector<8x132xf32>
    %615 = vector.extract_strided_slice %543 {offsets = [4, 0], sizes = [1, 132], strides = [1, 1]} : vector<8x132xf32> to vector<1x132xf32>
    %616 = vector.extract_strided_slice %544 {offsets = [4, 0], sizes = [1, 132], strides = [1, 1]} : vector<8x132xf32> to vector<1x132xf32>
    %617 = vector.extract_strided_slice %6 {offsets = [0, 4], sizes = [8, 1], strides = [1, 1]} : vector<8x8xf32> to vector<8x1xf32>
    %618 = vector.broadcast %617 : vector<8x1xf32> to vector<8x132xf32>
    %619 = vector.broadcast %615 : vector<1x132xf32> to vector<8x132xf32>
    %620 = arith.mulf %618, %619 : vector<8x132xf32>
    %621 = arith.addf %609, %620 : vector<8x132xf32>
    %622 = vector.extract_strided_slice %7 {offsets = [0, 4], sizes = [8, 1], strides = [1, 1]} : vector<8x8xf32> to vector<8x1xf32>
    %623 = vector.broadcast %622 : vector<8x1xf32> to vector<8x132xf32>
    %624 = vector.broadcast %616 : vector<1x132xf32> to vector<8x132xf32>
    %625 = arith.mulf %623, %624 : vector<8x132xf32>
    %626 = arith.addf %621, %625 : vector<8x132xf32>
    %627 = vector.extract_strided_slice %8 {offsets = [0, 4], sizes = [8, 1], strides = [1, 1]} : vector<8x8xf32> to vector<8x1xf32>
    %628 = vector.broadcast %627 : vector<8x1xf32> to vector<8x132xf32>
    %629 = vector.broadcast %616 : vector<1x132xf32> to vector<8x132xf32>
    %630 = arith.mulf %628, %629 : vector<8x132xf32>
    %631 = arith.addf %614, %630 : vector<8x132xf32>
    %632 = vector.extract_strided_slice %543 {offsets = [5, 0], sizes = [1, 132], strides = [1, 1]} : vector<8x132xf32> to vector<1x132xf32>
    %633 = vector.extract_strided_slice %544 {offsets = [5, 0], sizes = [1, 132], strides = [1, 1]} : vector<8x132xf32> to vector<1x132xf32>
    %634 = vector.extract_strided_slice %6 {offsets = [0, 5], sizes = [8, 1], strides = [1, 1]} : vector<8x8xf32> to vector<8x1xf32>
    %635 = vector.broadcast %634 : vector<8x1xf32> to vector<8x132xf32>
    %636 = vector.broadcast %632 : vector<1x132xf32> to vector<8x132xf32>
    %637 = arith.mulf %635, %636 : vector<8x132xf32>
    %638 = arith.addf %626, %637 : vector<8x132xf32>
    %639 = vector.extract_strided_slice %7 {offsets = [0, 5], sizes = [8, 1], strides = [1, 1]} : vector<8x8xf32> to vector<8x1xf32>
    %640 = vector.broadcast %639 : vector<8x1xf32> to vector<8x132xf32>
    %641 = vector.broadcast %633 : vector<1x132xf32> to vector<8x132xf32>
    %642 = arith.mulf %640, %641 : vector<8x132xf32>
    %643 = arith.addf %638, %642 : vector<8x132xf32>
    %644 = vector.extract_strided_slice %8 {offsets = [0, 5], sizes = [8, 1], strides = [1, 1]} : vector<8x8xf32> to vector<8x1xf32>
    %645 = vector.broadcast %644 : vector<8x1xf32> to vector<8x132xf32>
    %646 = vector.broadcast %633 : vector<1x132xf32> to vector<8x132xf32>
    %647 = arith.mulf %645, %646 : vector<8x132xf32>
    %648 = arith.addf %631, %647 : vector<8x132xf32>
    %649 = vector.extract_strided_slice %543 {offsets = [6, 0], sizes = [1, 132], strides = [1, 1]} : vector<8x132xf32> to vector<1x132xf32>
    %650 = vector.extract_strided_slice %544 {offsets = [6, 0], sizes = [1, 132], strides = [1, 1]} : vector<8x132xf32> to vector<1x132xf32>
    %651 = vector.extract_strided_slice %6 {offsets = [0, 6], sizes = [8, 1], strides = [1, 1]} : vector<8x8xf32> to vector<8x1xf32>
    %652 = vector.broadcast %651 : vector<8x1xf32> to vector<8x132xf32>
    %653 = vector.broadcast %649 : vector<1x132xf32> to vector<8x132xf32>
    %654 = arith.mulf %652, %653 : vector<8x132xf32>
    %655 = arith.addf %643, %654 : vector<8x132xf32>
    %656 = vector.extract_strided_slice %7 {offsets = [0, 6], sizes = [8, 1], strides = [1, 1]} : vector<8x8xf32> to vector<8x1xf32>
    %657 = vector.broadcast %656 : vector<8x1xf32> to vector<8x132xf32>
    %658 = vector.broadcast %650 : vector<1x132xf32> to vector<8x132xf32>
    %659 = arith.mulf %657, %658 : vector<8x132xf32>
    %660 = arith.addf %655, %659 : vector<8x132xf32>
    %661 = vector.extract_strided_slice %8 {offsets = [0, 6], sizes = [8, 1], strides = [1, 1]} : vector<8x8xf32> to vector<8x1xf32>
    %662 = vector.broadcast %661 : vector<8x1xf32> to vector<8x132xf32>
    %663 = vector.broadcast %650 : vector<1x132xf32> to vector<8x132xf32>
    %664 = arith.mulf %662, %663 : vector<8x132xf32>
    %665 = arith.addf %648, %664 : vector<8x132xf32>
    %666 = vector.extract_strided_slice %543 {offsets = [7, 0], sizes = [1, 132], strides = [1, 1]} : vector<8x132xf32> to vector<1x132xf32>
    %667 = vector.extract_strided_slice %544 {offsets = [7, 0], sizes = [1, 132], strides = [1, 1]} : vector<8x132xf32> to vector<1x132xf32>
    %668 = vector.extract_strided_slice %6 {offsets = [0, 7], sizes = [8, 1], strides = [1, 1]} : vector<8x8xf32> to vector<8x1xf32>
    %669 = vector.broadcast %668 : vector<8x1xf32> to vector<8x132xf32>
    %670 = vector.broadcast %666 : vector<1x132xf32> to vector<8x132xf32>
    %671 = arith.mulf %669, %670 : vector<8x132xf32>
    %672 = arith.addf %660, %671 : vector<8x132xf32>
    %673 = vector.extract_strided_slice %7 {offsets = [0, 7], sizes = [8, 1], strides = [1, 1]} : vector<8x8xf32> to vector<8x1xf32>
    %674 = vector.broadcast %673 : vector<8x1xf32> to vector<8x132xf32>
    %675 = vector.broadcast %667 : vector<1x132xf32> to vector<8x132xf32>
    %676 = arith.mulf %674, %675 : vector<8x132xf32>
    %677 = arith.addf %672, %676 : vector<8x132xf32>
    %678 = vector.extract_strided_slice %8 {offsets = [0, 7], sizes = [8, 1], strides = [1, 1]} : vector<8x8xf32> to vector<8x1xf32>
    %679 = vector.broadcast %678 : vector<8x1xf32> to vector<8x132xf32>
    %680 = vector.broadcast %667 : vector<1x132xf32> to vector<8x132xf32>
    %681 = arith.mulf %679, %680 : vector<8x132xf32>
    %682 = arith.addf %665, %681 : vector<8x132xf32>
    %683 = vector.broadcast %9 : vector<8x1xf32> to vector<8x132xf32>
    %684 = arith.addf %677, %683 : vector<8x132xf32>
    %cst_35 = arith.constant 0.000000e+00 : f32
    %685 = vector.broadcast %cst_35 : f32 to vector<8x132xf32>
    %686 = arith.cmpf oge, %684, %685 : vector<8x132xf32>
    %cst_36 = arith.constant 1.000000e-01 : f32
    %687 = vector.broadcast %cst_36 : f32 to vector<8x132xf32>
    %688 = arith.mulf %687, %684 : vector<8x132xf32>
    %689 = arith.select %686, %684, %688 : vector<8x132xi1>, vector<8x132xf32>
    %690 = arith.addf %689, %682 : vector<8x132xf32>
    %691 = vector.broadcast %10 : vector<8x1xf32> to vector<8x132xf32>
    %692 = arith.addf %690, %691 : vector<8x132xf32>
    %693 = vector.extract_strided_slice %692 {offsets = [0, 0], sizes = [8, 128], strides = [1, 1]} : vector<8x132xf32> to vector<8x128xf32>
    %694 = vector.extract_strided_slice %692 {offsets = [0, 4], sizes = [8, 128], strides = [1, 1]} : vector<8x132xf32> to vector<8x128xf32>
    %cst_37 = arith.constant 0.000000e+00 : f32
    %695 = vector.broadcast %cst_37 : f32 to vector<8x128xf32>
    %cst_38 = arith.constant 0.000000e+00 : f32
    %696 = vector.broadcast %cst_38 : f32 to vector<8x128xf32>
    %697 = vector.extract_strided_slice %693 {offsets = [0, 0], sizes = [1, 128], strides = [1, 1]} : vector<8x128xf32> to vector<1x128xf32>
    %698 = vector.extract_strided_slice %694 {offsets = [0, 0], sizes = [1, 128], strides = [1, 1]} : vector<8x128xf32> to vector<1x128xf32>
    %699 = vector.extract_strided_slice %11 {offsets = [0, 0], sizes = [8, 1], strides = [1, 1]} : vector<8x8xf32> to vector<8x1xf32>
    %700 = vector.broadcast %699 : vector<8x1xf32> to vector<8x128xf32>
    %701 = vector.broadcast %697 : vector<1x128xf32> to vector<8x128xf32>
    %702 = arith.mulf %700, %701 : vector<8x128xf32>
    %703 = arith.addf %695, %702 : vector<8x128xf32>
    %704 = vector.extract_strided_slice %12 {offsets = [0, 0], sizes = [8, 1], strides = [1, 1]} : vector<8x8xf32> to vector<8x1xf32>
    %705 = vector.broadcast %704 : vector<8x1xf32> to vector<8x128xf32>
    %706 = vector.broadcast %698 : vector<1x128xf32> to vector<8x128xf32>
    %707 = arith.mulf %705, %706 : vector<8x128xf32>
    %708 = arith.addf %703, %707 : vector<8x128xf32>
    %709 = vector.extract_strided_slice %13 {offsets = [0, 0], sizes = [8, 1], strides = [1, 1]} : vector<8x8xf32> to vector<8x1xf32>
    %710 = vector.broadcast %709 : vector<8x1xf32> to vector<8x128xf32>
    %711 = vector.broadcast %698 : vector<1x128xf32> to vector<8x128xf32>
    %712 = arith.mulf %710, %711 : vector<8x128xf32>
    %713 = arith.addf %696, %712 : vector<8x128xf32>
    %714 = vector.extract_strided_slice %693 {offsets = [1, 0], sizes = [1, 128], strides = [1, 1]} : vector<8x128xf32> to vector<1x128xf32>
    %715 = vector.extract_strided_slice %694 {offsets = [1, 0], sizes = [1, 128], strides = [1, 1]} : vector<8x128xf32> to vector<1x128xf32>
    %716 = vector.extract_strided_slice %11 {offsets = [0, 1], sizes = [8, 1], strides = [1, 1]} : vector<8x8xf32> to vector<8x1xf32>
    %717 = vector.broadcast %716 : vector<8x1xf32> to vector<8x128xf32>
    %718 = vector.broadcast %714 : vector<1x128xf32> to vector<8x128xf32>
    %719 = arith.mulf %717, %718 : vector<8x128xf32>
    %720 = arith.addf %708, %719 : vector<8x128xf32>
    %721 = vector.extract_strided_slice %12 {offsets = [0, 1], sizes = [8, 1], strides = [1, 1]} : vector<8x8xf32> to vector<8x1xf32>
    %722 = vector.broadcast %721 : vector<8x1xf32> to vector<8x128xf32>
    %723 = vector.broadcast %715 : vector<1x128xf32> to vector<8x128xf32>
    %724 = arith.mulf %722, %723 : vector<8x128xf32>
    %725 = arith.addf %720, %724 : vector<8x128xf32>
    %726 = vector.extract_strided_slice %13 {offsets = [0, 1], sizes = [8, 1], strides = [1, 1]} : vector<8x8xf32> to vector<8x1xf32>
    %727 = vector.broadcast %726 : vector<8x1xf32> to vector<8x128xf32>
    %728 = vector.broadcast %715 : vector<1x128xf32> to vector<8x128xf32>
    %729 = arith.mulf %727, %728 : vector<8x128xf32>
    %730 = arith.addf %713, %729 : vector<8x128xf32>
    %731 = vector.extract_strided_slice %693 {offsets = [2, 0], sizes = [1, 128], strides = [1, 1]} : vector<8x128xf32> to vector<1x128xf32>
    %732 = vector.extract_strided_slice %694 {offsets = [2, 0], sizes = [1, 128], strides = [1, 1]} : vector<8x128xf32> to vector<1x128xf32>
    %733 = vector.extract_strided_slice %11 {offsets = [0, 2], sizes = [8, 1], strides = [1, 1]} : vector<8x8xf32> to vector<8x1xf32>
    %734 = vector.broadcast %733 : vector<8x1xf32> to vector<8x128xf32>
    %735 = vector.broadcast %731 : vector<1x128xf32> to vector<8x128xf32>
    %736 = arith.mulf %734, %735 : vector<8x128xf32>
    %737 = arith.addf %725, %736 : vector<8x128xf32>
    %738 = vector.extract_strided_slice %12 {offsets = [0, 2], sizes = [8, 1], strides = [1, 1]} : vector<8x8xf32> to vector<8x1xf32>
    %739 = vector.broadcast %738 : vector<8x1xf32> to vector<8x128xf32>
    %740 = vector.broadcast %732 : vector<1x128xf32> to vector<8x128xf32>
    %741 = arith.mulf %739, %740 : vector<8x128xf32>
    %742 = arith.addf %737, %741 : vector<8x128xf32>
    %743 = vector.extract_strided_slice %13 {offsets = [0, 2], sizes = [8, 1], strides = [1, 1]} : vector<8x8xf32> to vector<8x1xf32>
    %744 = vector.broadcast %743 : vector<8x1xf32> to vector<8x128xf32>
    %745 = vector.broadcast %732 : vector<1x128xf32> to vector<8x128xf32>
    %746 = arith.mulf %744, %745 : vector<8x128xf32>
    %747 = arith.addf %730, %746 : vector<8x128xf32>
    %748 = vector.extract_strided_slice %693 {offsets = [3, 0], sizes = [1, 128], strides = [1, 1]} : vector<8x128xf32> to vector<1x128xf32>
    %749 = vector.extract_strided_slice %694 {offsets = [3, 0], sizes = [1, 128], strides = [1, 1]} : vector<8x128xf32> to vector<1x128xf32>
    %750 = vector.extract_strided_slice %11 {offsets = [0, 3], sizes = [8, 1], strides = [1, 1]} : vector<8x8xf32> to vector<8x1xf32>
    %751 = vector.broadcast %750 : vector<8x1xf32> to vector<8x128xf32>
    %752 = vector.broadcast %748 : vector<1x128xf32> to vector<8x128xf32>
    %753 = arith.mulf %751, %752 : vector<8x128xf32>
    %754 = arith.addf %742, %753 : vector<8x128xf32>
    %755 = vector.extract_strided_slice %12 {offsets = [0, 3], sizes = [8, 1], strides = [1, 1]} : vector<8x8xf32> to vector<8x1xf32>
    %756 = vector.broadcast %755 : vector<8x1xf32> to vector<8x128xf32>
    %757 = vector.broadcast %749 : vector<1x128xf32> to vector<8x128xf32>
    %758 = arith.mulf %756, %757 : vector<8x128xf32>
    %759 = arith.addf %754, %758 : vector<8x128xf32>
    %760 = vector.extract_strided_slice %13 {offsets = [0, 3], sizes = [8, 1], strides = [1, 1]} : vector<8x8xf32> to vector<8x1xf32>
    %761 = vector.broadcast %760 : vector<8x1xf32> to vector<8x128xf32>
    %762 = vector.broadcast %749 : vector<1x128xf32> to vector<8x128xf32>
    %763 = arith.mulf %761, %762 : vector<8x128xf32>
    %764 = arith.addf %747, %763 : vector<8x128xf32>
    %765 = vector.extract_strided_slice %693 {offsets = [4, 0], sizes = [1, 128], strides = [1, 1]} : vector<8x128xf32> to vector<1x128xf32>
    %766 = vector.extract_strided_slice %694 {offsets = [4, 0], sizes = [1, 128], strides = [1, 1]} : vector<8x128xf32> to vector<1x128xf32>
    %767 = vector.extract_strided_slice %11 {offsets = [0, 4], sizes = [8, 1], strides = [1, 1]} : vector<8x8xf32> to vector<8x1xf32>
    %768 = vector.broadcast %767 : vector<8x1xf32> to vector<8x128xf32>
    %769 = vector.broadcast %765 : vector<1x128xf32> to vector<8x128xf32>
    %770 = arith.mulf %768, %769 : vector<8x128xf32>
    %771 = arith.addf %759, %770 : vector<8x128xf32>
    %772 = vector.extract_strided_slice %12 {offsets = [0, 4], sizes = [8, 1], strides = [1, 1]} : vector<8x8xf32> to vector<8x1xf32>
    %773 = vector.broadcast %772 : vector<8x1xf32> to vector<8x128xf32>
    %774 = vector.broadcast %766 : vector<1x128xf32> to vector<8x128xf32>
    %775 = arith.mulf %773, %774 : vector<8x128xf32>
    %776 = arith.addf %771, %775 : vector<8x128xf32>
    %777 = vector.extract_strided_slice %13 {offsets = [0, 4], sizes = [8, 1], strides = [1, 1]} : vector<8x8xf32> to vector<8x1xf32>
    %778 = vector.broadcast %777 : vector<8x1xf32> to vector<8x128xf32>
    %779 = vector.broadcast %766 : vector<1x128xf32> to vector<8x128xf32>
    %780 = arith.mulf %778, %779 : vector<8x128xf32>
    %781 = arith.addf %764, %780 : vector<8x128xf32>
    %782 = vector.extract_strided_slice %693 {offsets = [5, 0], sizes = [1, 128], strides = [1, 1]} : vector<8x128xf32> to vector<1x128xf32>
    %783 = vector.extract_strided_slice %694 {offsets = [5, 0], sizes = [1, 128], strides = [1, 1]} : vector<8x128xf32> to vector<1x128xf32>
    %784 = vector.extract_strided_slice %11 {offsets = [0, 5], sizes = [8, 1], strides = [1, 1]} : vector<8x8xf32> to vector<8x1xf32>
    %785 = vector.broadcast %784 : vector<8x1xf32> to vector<8x128xf32>
    %786 = vector.broadcast %782 : vector<1x128xf32> to vector<8x128xf32>
    %787 = arith.mulf %785, %786 : vector<8x128xf32>
    %788 = arith.addf %776, %787 : vector<8x128xf32>
    %789 = vector.extract_strided_slice %12 {offsets = [0, 5], sizes = [8, 1], strides = [1, 1]} : vector<8x8xf32> to vector<8x1xf32>
    %790 = vector.broadcast %789 : vector<8x1xf32> to vector<8x128xf32>
    %791 = vector.broadcast %783 : vector<1x128xf32> to vector<8x128xf32>
    %792 = arith.mulf %790, %791 : vector<8x128xf32>
    %793 = arith.addf %788, %792 : vector<8x128xf32>
    %794 = vector.extract_strided_slice %13 {offsets = [0, 5], sizes = [8, 1], strides = [1, 1]} : vector<8x8xf32> to vector<8x1xf32>
    %795 = vector.broadcast %794 : vector<8x1xf32> to vector<8x128xf32>
    %796 = vector.broadcast %783 : vector<1x128xf32> to vector<8x128xf32>
    %797 = arith.mulf %795, %796 : vector<8x128xf32>
    %798 = arith.addf %781, %797 : vector<8x128xf32>
    %799 = vector.extract_strided_slice %693 {offsets = [6, 0], sizes = [1, 128], strides = [1, 1]} : vector<8x128xf32> to vector<1x128xf32>
    %800 = vector.extract_strided_slice %694 {offsets = [6, 0], sizes = [1, 128], strides = [1, 1]} : vector<8x128xf32> to vector<1x128xf32>
    %801 = vector.extract_strided_slice %11 {offsets = [0, 6], sizes = [8, 1], strides = [1, 1]} : vector<8x8xf32> to vector<8x1xf32>
    %802 = vector.broadcast %801 : vector<8x1xf32> to vector<8x128xf32>
    %803 = vector.broadcast %799 : vector<1x128xf32> to vector<8x128xf32>
    %804 = arith.mulf %802, %803 : vector<8x128xf32>
    %805 = arith.addf %793, %804 : vector<8x128xf32>
    %806 = vector.extract_strided_slice %12 {offsets = [0, 6], sizes = [8, 1], strides = [1, 1]} : vector<8x8xf32> to vector<8x1xf32>
    %807 = vector.broadcast %806 : vector<8x1xf32> to vector<8x128xf32>
    %808 = vector.broadcast %800 : vector<1x128xf32> to vector<8x128xf32>
    %809 = arith.mulf %807, %808 : vector<8x128xf32>
    %810 = arith.addf %805, %809 : vector<8x128xf32>
    %811 = vector.extract_strided_slice %13 {offsets = [0, 6], sizes = [8, 1], strides = [1, 1]} : vector<8x8xf32> to vector<8x1xf32>
    %812 = vector.broadcast %811 : vector<8x1xf32> to vector<8x128xf32>
    %813 = vector.broadcast %800 : vector<1x128xf32> to vector<8x128xf32>
    %814 = arith.mulf %812, %813 : vector<8x128xf32>
    %815 = arith.addf %798, %814 : vector<8x128xf32>
    %816 = vector.extract_strided_slice %693 {offsets = [7, 0], sizes = [1, 128], strides = [1, 1]} : vector<8x128xf32> to vector<1x128xf32>
    %817 = vector.extract_strided_slice %694 {offsets = [7, 0], sizes = [1, 128], strides = [1, 1]} : vector<8x128xf32> to vector<1x128xf32>
    %818 = vector.extract_strided_slice %11 {offsets = [0, 7], sizes = [8, 1], strides = [1, 1]} : vector<8x8xf32> to vector<8x1xf32>
    %819 = vector.broadcast %818 : vector<8x1xf32> to vector<8x128xf32>
    %820 = vector.broadcast %816 : vector<1x128xf32> to vector<8x128xf32>
    %821 = arith.mulf %819, %820 : vector<8x128xf32>
    %822 = arith.addf %810, %821 : vector<8x128xf32>
    %823 = vector.extract_strided_slice %12 {offsets = [0, 7], sizes = [8, 1], strides = [1, 1]} : vector<8x8xf32> to vector<8x1xf32>
    %824 = vector.broadcast %823 : vector<8x1xf32> to vector<8x128xf32>
    %825 = vector.broadcast %817 : vector<1x128xf32> to vector<8x128xf32>
    %826 = arith.mulf %824, %825 : vector<8x128xf32>
    %827 = arith.addf %822, %826 : vector<8x128xf32>
    %828 = vector.extract_strided_slice %13 {offsets = [0, 7], sizes = [8, 1], strides = [1, 1]} : vector<8x8xf32> to vector<8x1xf32>
    %829 = vector.broadcast %828 : vector<8x1xf32> to vector<8x128xf32>
    %830 = vector.broadcast %817 : vector<1x128xf32> to vector<8x128xf32>
    %831 = arith.mulf %829, %830 : vector<8x128xf32>
    %832 = arith.addf %815, %831 : vector<8x128xf32>
    %833 = vector.broadcast %14 : vector<8x1xf32> to vector<8x128xf32>
    %834 = arith.addf %827, %833 : vector<8x128xf32>
    %cst_39 = arith.constant 0.000000e+00 : f32
    %835 = vector.broadcast %cst_39 : f32 to vector<8x128xf32>
    %836 = arith.cmpf oge, %834, %835 : vector<8x128xf32>
    %cst_40 = arith.constant 1.000000e-01 : f32
    %837 = vector.broadcast %cst_40 : f32 to vector<8x128xf32>
    %838 = arith.mulf %837, %834 : vector<8x128xf32>
    %839 = arith.select %836, %834, %838 : vector<8x128xi1>, vector<8x128xf32>
    %840 = arith.addf %839, %832 : vector<8x128xf32>
    %841 = vector.broadcast %15 : vector<8x1xf32> to vector<8x128xf32>
    %842 = arith.addf %840, %841 : vector<8x128xf32>
    %cst_41 = arith.constant 0.000000e+00 : f32
    %843 = vector.broadcast %cst_41 : f32 to vector<1x128xf32>
    %844 = vector.extract_strided_slice %16 {offsets = [0, 0], sizes = [1, 1], strides = [1, 1]} : vector<8x1xf32> to vector<1x1xf32>
    %845 = vector.extract_strided_slice %842 {offsets = [0, 0], sizes = [1, 128], strides = [1, 1]} : vector<8x128xf32> to vector<1x128xf32>
    %846 = vector.broadcast %844 : vector<1x1xf32> to vector<1x128xf32>
    %847 = arith.mulf %846, %845 : vector<1x128xf32>
    %848 = arith.addf %843, %847 : vector<1x128xf32>
    %849 = vector.extract_strided_slice %16 {offsets = [1, 0], sizes = [1, 1], strides = [1, 1]} : vector<8x1xf32> to vector<1x1xf32>
    %850 = vector.extract_strided_slice %842 {offsets = [1, 0], sizes = [1, 128], strides = [1, 1]} : vector<8x128xf32> to vector<1x128xf32>
    %851 = vector.broadcast %849 : vector<1x1xf32> to vector<1x128xf32>
    %852 = arith.mulf %851, %850 : vector<1x128xf32>
    %853 = arith.addf %848, %852 : vector<1x128xf32>
    %854 = vector.extract_strided_slice %16 {offsets = [2, 0], sizes = [1, 1], strides = [1, 1]} : vector<8x1xf32> to vector<1x1xf32>
    %855 = vector.extract_strided_slice %842 {offsets = [2, 0], sizes = [1, 128], strides = [1, 1]} : vector<8x128xf32> to vector<1x128xf32>
    %856 = vector.broadcast %854 : vector<1x1xf32> to vector<1x128xf32>
    %857 = arith.mulf %856, %855 : vector<1x128xf32>
    %858 = arith.addf %853, %857 : vector<1x128xf32>
    %859 = vector.extract_strided_slice %16 {offsets = [3, 0], sizes = [1, 1], strides = [1, 1]} : vector<8x1xf32> to vector<1x1xf32>
    %860 = vector.extract_strided_slice %842 {offsets = [3, 0], sizes = [1, 128], strides = [1, 1]} : vector<8x128xf32> to vector<1x128xf32>
    %861 = vector.broadcast %859 : vector<1x1xf32> to vector<1x128xf32>
    %862 = arith.mulf %861, %860 : vector<1x128xf32>
    %863 = arith.addf %858, %862 : vector<1x128xf32>
    %864 = vector.extract_strided_slice %16 {offsets = [4, 0], sizes = [1, 1], strides = [1, 1]} : vector<8x1xf32> to vector<1x1xf32>
    %865 = vector.extract_strided_slice %842 {offsets = [4, 0], sizes = [1, 128], strides = [1, 1]} : vector<8x128xf32> to vector<1x128xf32>
    %866 = vector.broadcast %864 : vector<1x1xf32> to vector<1x128xf32>
    %867 = arith.mulf %866, %865 : vector<1x128xf32>
    %868 = arith.addf %863, %867 : vector<1x128xf32>
    %869 = vector.extract_strided_slice %16 {offsets = [5, 0], sizes = [1, 1], strides = [1, 1]} : vector<8x1xf32> to vector<1x1xf32>
    %870 = vector.extract_strided_slice %842 {offsets = [5, 0], sizes = [1, 128], strides = [1, 1]} : vector<8x128xf32> to vector<1x128xf32>
    %871 = vector.broadcast %869 : vector<1x1xf32> to vector<1x128xf32>
    %872 = arith.mulf %871, %870 : vector<1x128xf32>
    %873 = arith.addf %868, %872 : vector<1x128xf32>
    %874 = vector.extract_strided_slice %16 {offsets = [6, 0], sizes = [1, 1], strides = [1, 1]} : vector<8x1xf32> to vector<1x1xf32>
    %875 = vector.extract_strided_slice %842 {offsets = [6, 0], sizes = [1, 128], strides = [1, 1]} : vector<8x128xf32> to vector<1x128xf32>
    %876 = vector.broadcast %874 : vector<1x1xf32> to vector<1x128xf32>
    %877 = arith.mulf %876, %875 : vector<1x128xf32>
    %878 = arith.addf %873, %877 : vector<1x128xf32>
    %879 = vector.extract_strided_slice %16 {offsets = [7, 0], sizes = [1, 1], strides = [1, 1]} : vector<8x1xf32> to vector<1x1xf32>
    %880 = vector.extract_strided_slice %842 {offsets = [7, 0], sizes = [1, 128], strides = [1, 1]} : vector<8x128xf32> to vector<1x128xf32>
    %881 = vector.broadcast %879 : vector<1x1xf32> to vector<1x128xf32>
    %882 = arith.mulf %881, %880 : vector<1x128xf32>
    %883 = arith.addf %878, %882 : vector<1x128xf32>
    %884 = vector.broadcast %17 : vector<1x1xf32> to vector<1x128xf32>
    %885 = arith.addf %883, %884 : vector<1x128xf32>
    %cst_42 = arith.constant 0.000000e+00 : f32
    %886 = vector.broadcast %cst_42 : f32 to vector<1x128xf32>
    %887 = arith.cmpf oge, %885, %886 : vector<1x128xf32>
    %cst_43 = arith.constant 1.000000e-01 : f32
    %888 = vector.broadcast %cst_43 : f32 to vector<1x128xf32>
    %889 = arith.mulf %888, %885 : vector<1x128xf32>
    %890 = arith.select %887, %885, %889 : vector<1x128xi1>, vector<1x128xf32>
    %c1_44 = arith.constant 1 : index
    %c0_45 = arith.constant 0 : index
    %c0_46 = arith.constant 0 : index
    %891 = vector.load %arg5[%c1_44, %c0_45, %c0_46] : memref<2x1x128xf32, #tpu.memory_space<vmem>>, vector<1x1x128xf32>
    %892 = vector.shape_cast %891 : vector<1x1x128xf32> to vector<1x128xf32>
    %893 = vector.shape_cast %890 : vector<1x128xf32> to vector<1x1x128xf32>
    tpu.vector_store %arg5[%c1_44, %c0_45, %c0_46], %893 {strides = array<i32>} : memref<2x1x128xf32, #tpu.memory_space<vmem>>, vector<1x1x128xf32>,
    return
  }
  func.func @transform_0(%arg0: i32, %arg1: i32) -> (i32, i32, i32) {
    %c0_i32 = arith.constant 0 : i32
    %c0_i32_0 = arith.constant 0 : i32
    return %arg0, %c0_i32, %arg1 : i32, i32, i32
  }
  func.func @transform_1(%arg0: i32, %arg1: i32) -> (i32, i32, i32) {
    %c1_i32 = arith.constant 1 : i32
    %0 = arith.addi %arg1, %c1_i32 : i32
    %c0_i32 = arith.constant 0 : i32
    %c0_i32_0 = arith.constant 0 : i32
    return %arg0, %c0_i32, %0 : i32, i32, i32
  }
  func.func @transform_2(%arg0: i32, %arg1: i32) -> (i32, i32) {
    %c0_i32 = arith.constant 0 : i32
    %c0_i32_0 = arith.constant 0 : i32
    %c0_i32_1 = arith.constant 0 : i32
    return %c0_i32, %c0_i32_0 : i32, i32
  }
  func.func @transform_3(%arg0: i32, %arg1: i32) -> (i32, i32, i32) {
    %c0_i32 = arith.constant 0 : i32
    %c0_i32_0 = arith.constant 0 : i32
    return %arg0, %c0_i32, %arg1 : i32, i32, i32
  }
}

</mosaic_0001>

<bundles_post_ra>
// kernel: tpu_custom_call.1
= control target key start
LH: loop header
LB: loop body
LE: loop exit
PB: predicated region body
PF: predicated region fallthrough
CT: control target
= control target key end

     0   :  { %8 = vsyncpa [#allocation3], 0  ;;  %s3106_s0 = inlined_call_operand.hbm [shape: f32[2,4,256], index: 0, kind: input, shape index: {}]   ;;  %s3107_s1 = inlined_call_operand.hbm [shape: f32[2,4,256], index: 1, kind: input, shape index: {}]   ;;  %s3108_s2 = inlined_call_operand.hbm [shape: f32[8,128], index: 2, kind: input, shape index: {}]   ;;  %s3109_s3 = inlined_call_operand.hbm [shape: f32[2,1,128], index: 3, kind: output, shape index: {}]  }
   0x1   :  { %9 = vsyncpa [#allocation6], 0 }
   0x2   :  { %10 = vsyncpa [#allocation4], 0  ;;  %s1977_s14 = scalar_lea.hbm %s3107_s1, 64  ;;  %s1874_s15 = smov [#allocation5]  }
   0x3   :  { %s31_s16 = sshll.u32 %s1874_s15, 4  ;;  %s1875_s17 = smov [#allocation2]   ;;  %s32_s16 = int_to_ptr.vmem [resolvable:$true] %s31_s16 }
   0x4   :  { %s16_s18 = sshll.u32 %s1875_s17, 4  ;;  %s1801_s21 = scalar_lea.hbm %s3107_s1, 192  ;;  %s1979_s18 = int_to_ptr.vmem [resolvable:$true] %s16_s18 }
   0x5   :  { %p1778_p0 = scmp.ne.s32.totalorder %s1977_s14, %s1801_s21  ;;  %s1779_s24 = scalar_lea.hbm %s3107_s1, 256 }
   0x6   :  { %p1780_p1 = scmp.lt.u32.totalorder %s1977_s14, %s3107_s1  ;;  %p1781_p2 = scmp.lt.u32.totalorder %s1779_s24, %s1801_s21 }
   0x7   :  { %p1783_p4 = scmp.lt.u32.totalorder %s1801_s21, %s1977_s14 }
   0x8   :  { %p1782_p3 = por %p1781_p2, %p1780_p1 }
   0xa   :  { %p1784_p5 = por %p1783_p4, %p1782_p3 }
   0xc   :  { %p1785_p6 = pnand %p1784_p5, %p1778_p0 }
   0xe   :  { %1788 = shalt.err (!%p1785_p6)
}
   0xf   :  { %s1789_s27 = scalar_lea.vmem %s32_s16, 128  ;;  %p1794_p8 = scmp.lt.s32.totalorder %s32_s16, %s32_s16 }
  0x10   :  { %p1790_p7 = scmp.ne.s32.totalorder %s32_s16, %s1789_s27  ;;  %p1795_p9 = scmp.lt.s32.totalorder %s1789_s27, %s1789_s27 }
  0x12   :  { %p1796_p10 = por %p1795_p9, %p1794_p8 }
  0x14   :  { %p1797_p11 = pnand %p1796_p10, %p1790_p7 }
  0x16   :  { %1800 = shalt.err (!%p1797_p11)
}
  0x17   :  { %s1876_s28 = smov 128   ;;  %s1877_s29 = smov 64  }
  0x18   :  { %s1878_s30 = smov 4   ;;  %s1802_s5 = scalar_lea.hbm %s3106_s0, 128 }
  0x19   :  { %37 = dma.hbm_to_vmem [thread:$0]  %s1977_s14, 128, %s32_s16, [#allocation6], %s1876_s28, %s1877_s29, %s1878_s30  }
  0x1a   :  { %p1803_p12 = scmp.ne.s32.totalorder %s3106_s0, %s1802_s5  ;;  %s1804_s10 = scalar_lea.hbm %s3106_s0, 256 }
  0x1b   :  { %p1805_p13 = scmp.lt.u32.totalorder %s1804_s10, %s1802_s5  ;;  %p1806_p0 = scmp.lt.u32.totalorder %s1802_s5, %s3106_s0 }
  0x1d   :  { %p1807_p1 = por %p1806_p0, %p1805_p13 }
  0x1f   :  { %p1808_p2 = pnand %p1807_p1, %p1803_p12 }
  0x21   :  { %1811 = shalt.err (!%p1808_p2)
}
  0x22   :  { %s1812_s13 = scalar_lea.vmem %s1979_s18, 128  ;;  %p1817_p4 = scmp.lt.s32.totalorder %s1979_s18, %s1979_s18 }
  0x23   :  { %p1813_p3 = scmp.ne.s32.totalorder %s1979_s18, %s1812_s13  ;;  %p1818_p5 = scmp.lt.s32.totalorder %s1812_s13, %s1812_s13 }
  0x25   :  { %p1819_p6 = por %p1818_p5, %p1817_p4 }
  0x27   :  { %p1820_p7 = pnand %p1819_p6, %p1813_p3 }
  0x29   :  { %1823 = shalt.err (!%p1820_p7)
}
  0x2a   :  { %22 = dma.hbm_to_vmem [thread:$0]  %s3106_s0, 128, %s1979_s18, [#allocation3], %s1876_s28, %s1877_s29, %s1878_s30  }
  0x2b   :  { %s1879_s16 = smov [#allocation7]   ;;  %s1824_s21 = scalar_lea.hbm %s3108_s2, 128 }
  0x2c   :  { %s44_s17 = sshll.u32 %s1879_s16, 4  ;;  %p1825_p8 = scmp.ne.s32.totalorder %s3108_s2, %s1824_s21  ;;  %s45_s17 = int_to_ptr.vmem [resolvable:$true] %s44_s17 }
  0x2d   :  { %p1828_p9 = scmp.lt.u32.totalorder %s1824_s21, %s3108_s2 }
  0x2f   :  { %p1830_p10 = pnand %p1828_p9, %p1825_p8 }
  0x31   :  { %1833 = shalt.err (!%p1830_p10)
}
  0x32   :  { %s1834_s26 = scalar_lea.vmem %s45_s17, 128  ;;  %p1839_p12 = scmp.lt.s32.totalorder %s45_s17, %s45_s17 }
  0x33   :  { %p1835_p11 = scmp.ne.s32.totalorder %s45_s17, %s1834_s26  ;;  %p1840_p13 = scmp.lt.s32.totalorder %s1834_s26, %s1834_s26 }
  0x35   :  { %p1841_p0 = por %p1840_p13, %p1839_p12 }
  0x37   :  { %p1842_p1 = pnand %p1841_p0, %p1835_p11 }
  0x39   :  { %1845 = shalt.err (!%p1842_p1)
}
  0x3a   :  { %47 = dma.hbm_to_vmem [thread:$0]  %s3108_s2, 128, %s45_s17, [#allocation6]  }
  0x3b   :  { %1868 = dma.done.wait [#allocation3], 128  }
  0x3c   :  { %1869 = vsyncadd [#allocation3], 4294967168 }
  0x3d   :  { %1870 = dma.done.wait [#allocation6], 256  }
  0x3e   :  { %1871 = vsyncadd [#allocation6], 4294967040  ;;  %v1880_v0 = vmov 8   ;;  %v1881_v1 = vmov 0   ;;  %v2026_v2 = vld [vmem:[#allocation7] sm:$0xff]  ;;  %v1882_v3 = vmov 5   ;;  %v66_v40 = vlaneseq }
  0x3f   :  { %1709 = vset.pattern.permute.xlu1 %v1880_v0  ;;  %1707 = vset.pattern.permute.xlu0 %v1881_v1  ;;  %v1883_v4 = vmov 4   ;;  %v1884_v5 = vmov 9   ;;  %v1885_v6 = vmov 1   ;;  %v1886_v7 = vmov 6   ;;  %v59_v46 = vld [vmem:[#allocation2] sm:$0xf] }
  0x40   :  { %97 = vperm.xlu1 %1709, %v2026_v2   ;;  %63 = vperm.xlu0 %1707, %v2026_v2   ;;  %v1887_v8 = vmov 2   ;;  %v1888_v9 = vmov 10   ;;  %v1889_v10 = vmov 3   ;;  %v1890_v11 = vmov 7   ;;  %v60_v47 = vld [vmem:[#allocation5] sm:$0xf] }
  0x41   :  { %v1891_v12 = vmov 12   ;;  %v1892_v13 = vmov 11   ;;  %v1893_v14 = vmov 13   ;;  %v1894_v15 = vmov 14   ;;  %s1919_s2 = smov 127   ;;  %s1940_s27 = smov 126  }
  0x42   :  { %v1895_v16 = vmov 30   ;;  %v1896_v17 = vmov 22   ;;  %v1897_v18 = vmov 31   ;;  %v1898_v19 = vmov 15   ;;  %s1949_s28 = smov 124   ;;  %s1951_s29 = smov [#allocation8]  }
  0x43   :  { %v1899_v20 = vmov 32   ;;  %v1900_v21 = vmov 23   ;;  %v1901_v22 = vmov 33   ;;  %v1902_v23 = vmov 16   ;;  %s1613_s30 = sshll.u32 %s1951_s29, 4  ;;  %s1614_s30 = int_to_ptr.vmem [resolvable:$true] %s1613_s30 }
  0x44   :  { %1711 = vset.pattern.permute.xlu1 %v1882_v3  ;;  %1708 = vset.pattern.permute.xlu0 %v1883_v4  ;;  %v1903_v24 = vmov 34   ;;  %v1904_v25 = vmov 24   ;;  %v1905_v26 = vmov 35   ;;  %v1906_v27 = vmov 17   ;;  %s1846_s4 = scalar_lea.vmem %s1614_s30, 32  ;;  %p1851_p3 = scmp.lt.s32.totalorder %s1614_s30, %s1614_s30 }
  0x45   :  { %121 = vperm.xlu1 %1711, %v2026_v2   ;;  %79 = vperm.xlu0 %1708, %v2026_v2   ;;  %v1907_v28 = vmov 36   ;;  %v1908_v29 = vmov 25   ;;  %v1909_v30 = vmov 21   ;;  %v1910_v31 = vmov 18   ;;  %p1847_p2 = scmp.ne.s32.totalorder %s1614_s30, %s1846_s4  ;;  %p1852_p4 = scmp.lt.s32.totalorder %s1846_s4, %s1846_s4 }
  0x46   :  { %v1911_v32 = vmov 26   ;;  %v1912_v33 = vmov 19   ;;  %v1913_v34 = vmov 27   ;;  %v1914_v35 = vmov 28  }
  0x47   :  { %v1915_v36 = vmov 29   ;;  %v1916_v37 = vmov 37   ;;  %v1917_v38 = vmov 20   ;;  %v1918_v39 = vmov 48   ;;  %p1853_p5 = por %p1852_p4, %p1851_p3 }
  0x48   :  { %v2065_v41 = vshrl.u32 %v66_v40, 7  ;;  %vm90_vm0 = vcmask 1039360   ;;  %vm284_vm5 = vcmask 1031168   ;;  %vm640_vm10 = vcmask 1014784  }
  0x49   :  { %1712 = vset.pattern.permute.xlu1 %v1884_v5  ;;  %1710 = vset.pattern.permute.xlu0 %v1885_v6  ;;  %v971_v6 = vld [vmem:[#allocation2 + $0x4] sm:$0xf]  ;;  %p1854_p6 = pnand %p1853_p5, %p1847_p2 }
  0x4a   :  { %138 = vperm.xlu1 %1712, %v2026_v2   ;;  %105 = vperm.xlu0 %1710, %v2026_v2   ;;  %v2068_v42 = vsub.s32 1, %v2065_v41  ;;  %v2071_v43 = vsub.s32 0, %v2065_v41  ;;  %v2092_v56 = vsub.s32 2, %v2065_v41  ;;  %v2110_v1 = vsub.s32 3, %v2065_v41 }
  0x4c   :  { %3133 = vst [vmem:[#allocation12_spill] sm:$0xff] %v2068_v42  ;;  %3134 = vst [vmem:[#allocation13_spill] sm:$0xff] %v2071_v43  ;;  %v2078_v48 = vrot.slane %v60_v47, %v2068_v42  ;;  %v2081_v49 = vrot.slane %v59_v46, %v2071_v43  ;;  %v2084_v52 = vrot.slane %v60_v47, %v2071_v43 }
  0x4d   :  { %3135 = vst [vmem:[#allocation14_spill] sm:$0xff] %v2092_v56  ;;  %v2095_v57 = vrot.slane %v59_v46, %v2068_v42  ;;  %v2099_v59 = vrot.slane %v60_v47, %v2092_v56  ;;  %v2103_v61 = vrot.slane %v59_v46, %v2092_v56  ;;  %3136 = vst [vmem:[#allocation15_spill] sm:$0xff] %v2110_v1 }
  0x4e   :  { %1714 = vset.pattern.permute.xlu1 %v1886_v7  ;;  %1713 = vset.pattern.permute.xlu0 %v1887_v8  ;;  %v2114_v4 = vrot.slane %v60_v47, %v2110_v1  ;;  %v2117_v5 = vrot.slane %v59_v46, %v2110_v1  ;;  %v973_v7 = vld [vmem:[#allocation5 + $0x4] sm:$0xf] }
  0x4f   :  { %162 = vperm.xlu1 %1714, %v2026_v2   ;;  %146 = vperm.xlu0 %1713, %v2026_v2  }
  0x53   :  { %1715 = vset.pattern.permute.xlu1 %v1888_v9  ;;  %1716 = vset.pattern.permute.xlu0 %v1889_v10 }
  0x54   :  { %179 = vperm.xlu1 %1715, %v2026_v2   ;;  %187 = vperm.xlu0 %1716, %v2026_v2  }
  0x58   :  { %1717 = vset.pattern.permute.xlu1 %v1890_v11  ;;  %1719 = vset.pattern.permute.xlu0 %v1891_v12  ;;  %v2122_v11 = vrot.slane %v971_v6, %v2071_v43  ;;  %v2125_v12 = vrot.slane %v973_v7, %v2071_v43 }
  0x59   :  { %203 = vperm.xlu1 %1717, %v2026_v2   ;;  %228 = vperm.xlu0 %1719, %v2026_v2  }
  0x5d   :  { %1718 = vset.pattern.permute.xlu1 %v1892_v13  ;;  %1720 = vset.pattern.permute.xlu0 %v1893_v14  ;;  %v2130_v13 = vrot.slane %v971_v6, %v2068_v42  ;;  %v2133_v14 = vrot.slane %v973_v7, %v2068_v42 }
  0x5e   :  { %220 = vperm.xlu1 %1718, %v2026_v2   ;;  %251 = vperm.xlu0 %1720, %v2026_v2  }
  0x62   :  { %1721 = vset.pattern.permute.xlu1 %v1894_v15  ;;  %1723 = vset.pattern.permute.xlu0 %v1895_v16 }
  0x63   :  { %257 = vperm.xlu1 %1721, %v2026_v2   ;;  %291 = vperm.xlu0 %1723, %v2026_v2  }
  0x67   :  { %1722 = vset.pattern.permute.xlu1 %v1896_v17  ;;  %1726 = vset.pattern.permute.xlu0 %v1897_v18 }
  0x68   :  { %273 = vperm.xlu1 %1722, %v2026_v2   ;;  %332 = vperm.xlu0 %1726, %v2026_v2  }
  0x6c   :  { %1724 = vset.pattern.permute.xlu1 %v1898_v19  ;;  %1729 = vset.pattern.permute.xlu0 %v1899_v20  ;;  %v2142_v20 = vrot.slane %v971_v6, %v2092_v56 }
  0x6d   :  { %299 = vperm.xlu1 %1724, %v2026_v2   ;;  %373 = vperm.xlu0 %1729, %v2026_v2  }
  0x71   :  { %1725 = vset.pattern.permute.xlu1 %v1900_v21  ;;  %1732 = vset.pattern.permute.xlu0 %v1901_v22  ;;  %v2145_v21 = vrot.slane %v973_v7, %v2092_v56 }
  0x72   :  { %315 = vperm.xlu1 %1725, %v2026_v2   ;;  %414 = vperm.xlu0 %1732, %v2026_v2  }
  0x76   :  { %1727 = vset.pattern.permute.xlu1 %v1902_v23  ;;  %1735 = vset.pattern.permute.xlu0 %v1903_v24  ;;  %v2152_v23 = vrot.slane %v971_v6, %v2110_v1 }
  0x77   :  { %340 = vperm.xlu1 %1727, %v2026_v2   ;;  %455 = vperm.xlu0 %1735, %v2026_v2  }
  0x7b   :  { %1728 = vset.pattern.permute.xlu1 %v1904_v25  ;;  %1738 = vset.pattern.permute.xlu0 %v1905_v26 }
  0x7c   :  { %356 = vperm.xlu1 %1728, %v2026_v2   ;;  %496 = vperm.xlu0 %1738, %v2026_v2  }
  0x80   :  { %1730 = vset.pattern.permute.xlu1 %v1906_v27  ;;  %1741 = vset.pattern.permute.xlu0 %v1907_v28  ;;  %v2158_v27 = vrot.slane %v973_v7, %v2110_v1 }
  0x81   :  { %381 = vperm.xlu1 %1730, %v2026_v2   ;;  %537 = vperm.xlu0 %1741, %v2026_v2  }
  0x85   :  { %1731 = vset.pattern.permute.xlu1 %v1908_v29  ;;  %1744 = vset.pattern.permute.xlu0 %v1909_v30 }
  0x86   :  { %397 = vperm.xlu1 %1731, %v2026_v2  }
  0x8a   :  { %1733 = vset.pattern.permute.xlu1 %v1910_v31 }
  0x8b   :  { %422 = vperm.xlu1 %1733, %v2026_v2  }
  0x8f   :  { %1734 = vset.pattern.permute.xlu1 %v1911_v32 }
  0x90   :  { %438 = vperm.xlu1 %1734, %v2026_v2  }
  0x94   :  { %1736 = vset.pattern.permute.xlu1 %v1912_v33 }
  0x95   :  { %463 = vperm.xlu1 %1736, %v2026_v2  }
  0x99   :  { %1737 = vset.pattern.permute.xlu1 %v1913_v34 }
  0x9a   :  { %479 = vperm.xlu1 %1737, %v2026_v2  }
  0x9e   :  { %1739 = vset.pattern.permute.xlu1 %v1914_v35 }
  0x9f   :  { %520 = vperm.xlu1 %1739, %v2026_v2  }
  0xa3   :  { %1740 = vset.pattern.permute.xlu1 %v1915_v36 }
  0xa4   :  { %561 = vperm.xlu1 %1740, %v2026_v2  }
  0xa8   :  { %1742 = vset.pattern.permute.xlu1 %v1916_v37 }
  0xa9   :  { %578 = vperm.xlu1 %1742, %v2026_v2  }
  0xad   :  { %1743 = vset.pattern.permute.xlu1 %v1917_v38 }
  0xae   :  { %504 = vperm.xlu1 %1743, %v2026_v2  }
  0xb2   :  { %1747 = vset.pattern.permute.xlu1 %v1918_v39 }
  0xbf   :  { %v2073_v44 = vpop.permute.xlu1 %97  ;;  %v2075_v45 = vpop.permute.xlu0 %63 }
  0xc0   :  { %v100_v28 = vmul.f32 %v2073_v44, %v2081_v49  ;;  %v101_v37 = vmul.f32 %v2073_v44, %v2084_v52  ;;  %v1000_v38 = vmul.f32 %v2125_v12, %v2073_v44 }
  0xc4   :  { %v122_v50 = vpop.permute.xlu1 %121  ;;  %v80_v51 = vpop.permute.xlu0 %79 }
  0xc5   :  { %v125_v53 = vmul.f32 %v122_v50, %v2078_v48  ;;  %v82_v54 = vmul.f32 %v80_v51, %v2081_v49  ;;  %v83_v55 = vmul.f32 %v80_v51, %v2084_v52  ;;  %v124_v60 = vmul.f32 %v122_v50, %v2095_v57 }
  0xc6   :  { %v986_v15 = vmul.f32 %v2122_v11, %v80_v51  ;;  %v987_v16 = vmul.f32 %v2125_v12, %v80_v51  ;;  %v1015_v18 = vmul.f32 %v2130_v13, %v122_v50  ;;  %v1016_v19 = vmul.f32 %v2133_v14, %v122_v50 }
  0xc7   :  { %130 = vrot.lane.b32.xlu0 %v125_v53, %s1919_s2  ;;  %86 = vrot.lane.b32.xlu1 %v82_v54, %s1919_s2 }
  0xc9   :  { %v139_v58 = vpop.permute.xlu1 %138 }
  0xca   :  { %v141_v24 = vmul.f32 %v139_v58, %v2095_v57  ;;  %v142_v31 = vmul.f32 %v139_v58, %v2078_v48  ;;  %v1029_v32 = vmul.f32 %v2133_v14, %v139_v58  ;;  %v1028_v47 = vmul.f32 %v2130_v13, %v139_v58 }
  0xcb   :  { %88 = vrot.lane.b32.xlu1 %v83_v55, %s1919_s2 }
  0xcc   :  { %v143_v35 = vadd.f32 %v141_v24, %v100_v28  ;;  %v1031_v50 = vadd.f32 %v1029_v32, %v1000_v38  ;;  %v144_v55 = vadd.f32 %v142_v31, %v101_v37  ;;  %v1923_v28 = vmov 50  }
  0xcd   :  { %v1928_v38 = vmov 56  }
  0xce   :  { %v163_v62 = vpop.permute.xlu1 %162 }
  0xcf   :  { %128 = vrot.lane.b32.xlu1 %v124_v60, %s1919_s2  ;;  %v166_v63 = vmul.f32 %v163_v62, %v2099_v59  ;;  %v165_v0 = vmul.f32 %v163_v62, %v2103_v61  ;;  %v1044_v25 = vmul.f32 %v2142_v20, %v163_v62  ;;  %v1045_v26 = vmul.f32 %v2145_v21, %v163_v62 }
  0xd0   :  { %v999_v62 = vmul.f32 %v2122_v11, %v2073_v44 }
  0xd1   :  { %171 = vrot.lane.b32.xlu0 %v166_v63, %s1919_s2 }
  0xd3   :  { %v180_v3 = vpop.permute.xlu1 %179  ;;  %169 = vrot.lane.b32.xlu1 %v165_v0, %s1919_s2 }
  0xd4   :  { %v182_v29 = vmul.f32 %v180_v3, %v2103_v61  ;;  %v1058_v40 = vmul.f32 %v2145_v21, %v180_v3  ;;  %v183_v46 = vmul.f32 %v180_v3, %v2099_v59  ;;  %v1057_v58 = vmul.f32 %v2142_v20, %v180_v3  ;;  %v2199_v3 = vpop.permute.xlu0 %105 }
  0xd6   :  { %v184_v39 = vadd.f32 %v182_v29, %v143_v35  ;;  %v1060_v63 = vadd.f32 %v1058_v40, %v1031_v50  ;;  %v185_v0 = vadd.f32 %v183_v46, %v144_v55  ;;  %v1924_v29 = vmov 51  }
  0xd7   :  { %v1929_v40 = vmov 60   ;;  %v1931_v50 = vmov 62   ;;  %v1932_v55 = vmov 54  }
  0xd8   :  { %v204_v8 = vpop.permute.xlu1 %203  ;;  %v2205_v24 = vpop.permute.xlu0 %146 }
  0xd9   :  { %v207_v9 = vmul.f32 %v204_v8, %v2114_v4  ;;  %v206_v10 = vmul.f32 %v204_v8, %v2117_v5  ;;  %v1073_v33 = vmul.f32 %v2152_v23, %v204_v8  ;;  %v1074_v34 = vmul.f32 %v2158_v27, %v204_v8 }
  0xda   :  { %v1030_v8 = vadd.f32 %v1028_v47, %v999_v62  ;;  %v1930_v47 = vmov 57  }
  0xdb   :  { %212 = vrot.lane.b32.xlu0 %v207_v9, %s1919_s2  ;;  %210 = vrot.lane.b32.xlu1 %v206_v10, %s1919_s2 }
  0xdc   :  { %v1059_v44 = vadd.f32 %v1057_v58, %v1030_v8  ;;  %v2213_v32 = vpop.permute.xlu0 %187  ;;  %v1934_v58 = vmov 55   ;;  %v1935_v8 = vmov 61  }
  0xdd   :  { %v221_v17 = vpop.permute.xlu1 %220 }
  0xde   :  { %v223_v36 = vmul.f32 %v221_v17, %v2117_v5  ;;  %v1087_v54 = vmul.f32 %v2158_v27, %v221_v17  ;;  %v224_v60 = vmul.f32 %v221_v17, %v2114_v4  ;;  %v1086_v9 = vmul.f32 %v2152_v23, %v221_v17 }
  0xdf   :  { %990 = vrot.lane.b32.xlu0 %v986_v15, %s1919_s2  ;;  %992 = vrot.lane.b32.xlu1 %v987_v16, %s1919_s2  ;;  %v1920_v15 = vmov 38   ;;  %v1921_v17 = vmov 39  }
  0xe0   :  { %v225_v53 = vadd.f32 %v223_v36, %v184_v39  ;;  %v1089_v6 = vadd.f32 %v1087_v54, %v1060_v63  ;;  %v226_v7 = vadd.f32 %v224_v60, %v185_v0  ;;  %v1088_v16 = vadd.f32 %v1086_v9, %v1059_v44  ;;  %v2220_v37 = vpop.permute.xlu0 %228 }
  0xe1   :  { %v1927_v36 = vmov 58   ;;  %v1933_v63 = vmov 59   ;;  %v1936_v44 = vmov 63  }
  0xe2   :  { %v2147_v22 = vpop.permute.xlu1 %257 }
  0xe3   :  { %1019 = vrot.lane.b32.xlu0 %v1015_v18, %s1919_s2  ;;  %1021 = vrot.lane.b32.xlu1 %v1016_v19, %s1919_s2 }
  0xe4   :  { %v2227_v46 = vpop.permute.xlu0 %251 }
  0xe7   :  { %1048 = vrot.lane.b32.xlu0 %v1044_v25, %s1919_s2  ;;  %1050 = vrot.lane.b32.xlu1 %v1045_v26, %s1919_s2  ;;  %v2165_v30 = vpop.permute.xlu1 %273  ;;  %v1922_v25 = vmov 49  }
  0xe8   :  { %v2233_v54 = vpop.permute.xlu0 %291 }
  0xeb   :  { %1077 = vrot.lane.b32.xlu0 %v1073_v33, %s1919_s2  ;;  %1079 = vrot.lane.b32.xlu1 %v1074_v34, %s1919_s2  ;;  %v1925_v33 = vmov 53   ;;  %v1926_v34 = vmov 52  }
  0xec   :  { %v2181_v51 = vpop.permute.xlu1 %299  ;;  %v2238_v62 = vpop.permute.xlu0 %332 }
  0xef   :  { %545 = vperm.xlu0 %1744, %v2026_v2   ;;  %241 = vrot.lane.b32.xlu1 %v225_v53, %s1919_s2 }
  0xf1   :  { %v2191_v10 = vpop.permute.xlu1 %315 }
  0xf3   :  { %1102 = vrot.lane.b32.xlu0 %v1089_v6, %s1919_s2  ;;  %243 = vrot.lane.b32.xlu1 %v226_v7, %s1919_s2  ;;  %v2243_v6 = vpop.permute.xlu0 %373 }
  0xf4   :  { %1745 = vset.pattern.permute.xlu0 %v1920_v15  ;;  %v1937_v15 = vmov 41  }
  0xf6   :  { %v2195_v18 = vpop.permute.xlu1 %340 }
  0xf7   :  { %1100 = vrot.lane.b32.xlu1 %v1088_v16, %s1919_s2  ;;  %586 = vperm.xlu0 %1745, %v2026_v2   ;;  %v2249_v9 = vpop.permute.xlu0 %414 }
  0xfb   :  { %v2201_v19 = vpop.permute.xlu1 %356  ;;  %625 = vperm.xlu1 %1747, %v2026_v2   ;;  %1746 = vset.pattern.permute.xlu0 %v1921_v17  ;;  %v2254_v17 = vpop.permute.xlu0 %455 }
  0xfc   :  { %609 = vperm.xlu0 %1746, %v2026_v2  }
  0xff   :  { %1748 = vset.pattern.permute.xlu1 %v1922_v25  ;;  %v1938_v25 = vmov 40  }
 0x100   :  { %v2207_v26 = vpop.permute.xlu1 %381  ;;  %663 = vperm.xlu1 %1748, %v2026_v2   ;;  %1749 = vset.pattern.permute.xlu0 %v1923_v28 }
 0x101   :  { %700 = vperm.xlu0 %1749, %v2026_v2  }
 0x104   :  { %1750 = vset.pattern.permute.xlu1 %v1924_v29  ;;  %v2259_v29 = vpop.permute.xlu0 %496 }
 0x105   :  { %v2211_v31 = vpop.permute.xlu1 %397  ;;  %737 = vperm.xlu1 %1750, %v2026_v2   ;;  %1752 = vset.pattern.permute.xlu0 %v1925_v33 }
 0x106   :  { %811 = vperm.xlu0 %1752, %v2026_v2  }
 0x109   :  { %1751 = vset.pattern.permute.xlu1 %v1926_v34  ;;  %v2261_v34 = vpop.permute.xlu0 %537 }
 0x10a   :  { %v2217_v35 = vpop.permute.xlu1 %422  ;;  %774 = vperm.xlu1 %1751, %v2026_v2   ;;  %1755 = vset.pattern.permute.xlu0 %v1927_v36  ;;  %v1939_v36 = vmov 42  }
 0x10b   :  { %719 = vperm.xlu0 %1755, %v2026_v2  }
 0x10e   :  { %1753 = vset.pattern.permute.xlu1 %v1928_v38  ;;  %v75_v38 = vmul.f32 %v2084_v52, %v2075_v45 }
 0x10f   :  { %v2223_v39 = vpop.permute.xlu1 %438  ;;  %645 = vperm.xlu1 %1753, %v2026_v2   ;;  %1758 = vset.pattern.permute.xlu0 %v1929_v40  ;;  %v74_v40 = vmul.f32 %v2081_v49, %v2075_v45  ;;  %v158_v49 = vmul.f32 %v2099_v59, %v2205_v24 }
 0x110   :  { %793 = vperm.xlu0 %1758, %v2026_v2  }
 0x113   :  { %1754 = vset.pattern.permute.xlu1 %v1930_v47 }
 0x114   :  { %682 = vperm.xlu1 %1754, %v2026_v2   ;;  %1761 = vset.pattern.permute.xlu0 %v1931_v50  ;;  %v2230_v53 = vpop.permute.xlu1 %463 }
 0x115   :  { %867 = vperm.xlu0 %1761, %v2026_v2  }
 0x118   :  { %1756 = vset.pattern.permute.xlu1 %v1932_v55  ;;  %v117_v55 = vmul.f32 %v2078_v48, %v2199_v3 }
 0x119   :  { %848 = vperm.xlu1 %1756, %v2026_v2   ;;  %v2236_v60 = vpop.permute.xlu1 %479  ;;  %1764 = vset.pattern.permute.xlu0 %v1937_v15 }
 0x11d   :  { %1757 = vset.pattern.permute.xlu1 %v1933_v63 }
 0x11e   :  { %756 = vperm.xlu1 %1757, %v2026_v2   ;;  %v2241_v0 = vpop.permute.xlu1 %520 }
 0x122   :  { %1759 = vset.pattern.permute.xlu1 %v1934_v58  ;;  %v116_v58 = vmul.f32 %v2095_v57, %v2199_v3 }
 0x123   :  { %885 = vperm.xlu1 %1759, %v2026_v2   ;;  %v2246_v7 = vpop.permute.xlu1 %561 }
 0x127   :  { %1760 = vset.pattern.permute.xlu1 %v1935_v8 }
 0x128   :  { %830 = vperm.xlu1 %1760, %v2026_v2   ;;  %v2251_v16 = vpop.permute.xlu1 %578 }
 0x12c   :  { %1762 = vset.pattern.permute.xlu1 %v1936_v44 }
 0x12d   :  { %904 = vperm.xlu1 %1762, %v2026_v2   ;;  %v2257_v28 = vpop.permute.xlu1 %504 }
 0x12e   :  { %3137 = vst [vmem:[#allocation16_spill] sm:$0xff] %v2257_v28 }
 0x131   :  { %1763 = vset.pattern.permute.xlu1 %v1938_v25 }
 0x132   :  { %615 = vperm.xlu1 %1763, %v2026_v2  }
 0x136   :  { %1765 = vset.pattern.permute.xlu1 %v1939_v36 }
 0x139   :  { %v87_v33 = vpop.permute.xlu1 %86  ;;  %v131_v44 = vpop.permute.xlu0 %130 }
 0x13d   :  { %v89_v47 = vpop.permute.xlu1 %88 }
 0x13e   :  { %v91_v50 = vsel %vm90_vm0, %v87_v33, %v89_v47  ;;  %v95_v2 = vadd.f32 %v89_v47, %v75_v38  ;;  %v157_v33 = vmul.f32 %v2103_v61, %v2205_v24  ;;  %v983_v61 = vmul.f32 %v2125_v12, %v2075_v45 }
 0x13f   :  { %v94_v63 = vadd.f32 %v91_v50, %v74_v40 }
 0x140   :  { %v119_v8 = vadd.f32 %v117_v55, %v95_v2  ;;  %v199_v2 = vmul.f32 %v2114_v4, %v2213_v32  ;;  %v1012_v4 = vmul.f32 %v2133_v14, %v2199_v3  ;;  %v1040_v14 = vmul.f32 %v2142_v20, %v2205_v24 }
 0x141   :  { %v129_v15 = vpop.permute.xlu1 %128  ;;  %v118_v25 = vadd.f32 %v116_v58, %v94_v63  ;;  %v198_v63 = vmul.f32 %v2117_v5, %v2213_v32  ;;  %v1011_v5 = vmul.f32 %v2130_v13, %v2199_v3 }
 0x142   :  { %v132_v52 = vsel %vm90_vm0, %v129_v15, %v131_v44  ;;  %v136_v36 = vadd.f32 %v131_v44, %v119_v8 }
 0x143   :  { %v135_v28 = vadd.f32 %v132_v52, %v118_v25  ;;  %v172_v48 = vpop.permute.xlu0 %171 }
 0x144   :  { %v160_v38 = vadd.f32 %v158_v49, %v136_v36 }
 0x145   :  { %v170_v40 = vpop.permute.xlu1 %169  ;;  %v159_v47 = vadd.f32 %v157_v33, %v135_v28  ;;  %v982_v28 = vmul.f32 %v2122_v11, %v2075_v45  ;;  %v1041_v45 = vmul.f32 %v2145_v21, %v2205_v24  ;;  %v1069_v21 = vmul.f32 %v2152_v23, %v2213_v32 }
 0x146   :  { %v177_v50 = vadd.f32 %v172_v48, %v160_v38  ;;  %v173_v57 = vsel %vm90_vm0, %v170_v40, %v172_v48 }
 0x147   :  { %v176_v55 = vadd.f32 %v173_v57, %v159_v47 }
 0x148   :  { %v201_v58 = vadd.f32 %v199_v2, %v177_v50 }
 0x149   :  { %v200_v59 = vadd.f32 %v198_v63, %v176_v55 }
 0x14d   :  { %v211_v8 = vpop.permute.xlu1 %210  ;;  %v213_v44 = vpop.permute.xlu0 %212 }
 0x14e   :  { %v214_v11 = vsel %vm90_vm0, %v211_v8, %v213_v44  ;;  %v218_v2 = vadd.f32 %v213_v44, %v201_v58 }
 0x14f   :  { %v217_v63 = vadd.f32 %v214_v11, %v200_v59 }
 0x151   :  { %v993_v15 = vpop.permute.xlu1 %992  ;;  %v991_v25 = vpop.permute.xlu0 %990  ;;  %v231_v58 = vadd.f32 %v2220_v37, %v217_v63 }
 0x152   :  { %v998_v52 = vadd.f32 %v993_v15, %v983_v61  ;;  %v994_v36 = vsel %vm90_vm0, %v991_v25, %v993_v15 }
 0x153   :  { %v997_v49 = vadd.f32 %v994_v36, %v982_v28  ;;  %v1070_v28 = vmul.f32 %v2158_v27, %v2213_v32  ;;  %v235_v59 = vmul.f32 0.1, %v231_v58  ;;  %vm233_vm2 = vcmp.ge.f32.partialorder %v231_v58, 0.0 }
 0x154   :  { %v1014_v33 = vadd.f32 %v1012_v4, %v998_v52  ;;  %v232_v52 = vadd.f32 %v2220_v37, %v218_v2 }
 0x155   :  { %v1022_v38 = vpop.permute.xlu1 %1021  ;;  %v1013_v48 = vadd.f32 %v1011_v5, %v997_v49  ;;  %v1020_v40 = vpop.permute.xlu0 %1019  ;;  %v237_v5 = vsel %vm233_vm2, %v231_v58, %v235_v59  ;;  %v2369_v58 = vsub.s32 4, %v2065_v41 }
 0x156   :  { %v1027_v12 = vadd.f32 %v1022_v38, %v1014_v33  ;;  %v1023_v47 = vsel %vm90_vm0, %v1020_v40, %v1022_v38  ;;  %v236_v36 = vmul.f32 0.1, %v232_v52  ;;  %vm234_vm1 = vcmp.ge.f32.partialorder %v232_v52, 0.0 }
 0x157   :  { %v1026_v50 = vadd.f32 %v1023_v47, %v1013_v48  ;;  %v2312_v48 = vsub.s32 7, %v2065_v41  ;;  %3139 = vst [vmem:[#allocation18_spill] sm:$0xff] %v2369_v58 }
 0x158   :  { %v1043_v57 = vadd.f32 %v1041_v45, %v1027_v12  ;;  %v238_v49 = vsel %vm234_vm1, %v232_v52, %v236_v36 }
 0x159   :  { %v1051_v55 = vpop.permute.xlu1 %1050  ;;  %v1042_v13 = vadd.f32 %v1040_v14, %v1026_v50  ;;  %v1049_v3 = vpop.permute.xlu0 %1048  ;;  %3138 = vst [vmem:[#allocation17_spill] sm:$0xff] %v2312_v48 }
 0x15a   :  { %v1056_v61 = vadd.f32 %v1051_v55, %v1043_v57  ;;  %v1052_v15 = vsel %vm90_vm0, %v1049_v3, %v1051_v55 }
 0x15b   :  { %v1055_v25 = vadd.f32 %v1052_v15, %v1042_v13 }
 0x15c   :  { %v1072_v8 = vadd.f32 %v1070_v28, %v1056_v61 }
 0x15d   :  { %v1080_v20 = vpop.permute.xlu1 %1079  ;;  %v1071_v24 = vadd.f32 %v1069_v21, %v1055_v25  ;;  %v1078_v40 = vpop.permute.xlu0 %1077 }
 0x15e   :  { %v1081_v50 = vsel %vm90_vm0, %v1078_v40, %v1080_v20  ;;  %v1085_v25 = vadd.f32 %v1080_v20, %v1072_v8 }
 0x15f   :  { %v1084_v3 = vadd.f32 %v1081_v50, %v1071_v24 }
 0x160   :  { %v1091_v59 = vadd.f32 %v1085_v25, %v2220_v37 }
 0x161   :  { %v242_v44 = vpop.permute.xlu1 %241  ;;  %v1090_v21 = vadd.f32 %v1084_v3, %v2220_v37 }
 0x162   :  { %vm1093_vm4 = vcmp.ge.f32.partialorder %v1091_v59, 0.0 }
 0x163   :  { %vm1092_vm3 = vcmp.ge.f32.partialorder %v1090_v21, 0.0 }
 0x165   :  { %v244_v4 = vpop.permute.xlu1 %243 }
 0x166   :  { %v245_v27 = vsel %vm90_vm0, %v242_v44, %v244_v4  ;;  %v249_v33 = vadd.f32 %v244_v4, %v238_v49  ;;  %v1094_v49 = vmul.f32 0.1, %v1090_v21 }
 0x167   :  { %v248_v38 = vadd.f32 %v245_v27, %v237_v5 }
 0x168   :  { %v2306_v23 = vadd.f32 %v2227_v46, %v249_v33  ;;  %v2391_v33 = vsub.s32 5, %v2065_v41 }
 0x169   :  { %v2309_v32 = vadd.f32 %v2227_v46, %v248_v38  ;;  %v1101_v38 = vpop.permute.xlu1 %1100 }
 0x16a   :  { %v2316_v12 = vrot.slane %v2306_v23, %v2071_v43  ;;  %v2326_v11 = vrot.slane %v2306_v23, %v2068_v42  ;;  %v2351_v61 = vrot.slane %v2306_v23, %v2092_v56  ;;  %v2366_v24 = vrot.slane %v2306_v23, %v2110_v1  ;;  %3140 = vst [vmem:[#allocation19_spill] sm:$0xff] %v2391_v33 }
 0x16b   :  { %v2320_v47 = vrot.slane %v2309_v32, %v2071_v43  ;;  %v2331_v14 = vrot.slane %v2309_v32, %v2312_v48  ;;  %v2337_v2 = vrot.slane %v2309_v32, %v2068_v42  ;;  %v2357_v28 = vrot.slane %v2309_v32, %v2092_v56 }
 0x16c   :  { %v277_v45 = vmul.f32 %v2165_v30, %v2316_v12  ;;  %v319_v63 = vmul.f32 %v2191_v10, %v2326_v11  ;;  %v360_v52 = vmul.f32 %v2201_v19, %v2351_v61  ;;  %v2379_v36 = vrot.slane %v2309_v32, %v2110_v1 }
 0x16d   :  { %v276_v57 = vmul.f32 %v2165_v30, %v2320_v47  ;;  %v318_v15 = vmul.f32 %v2191_v10, %v2337_v2  ;;  %v294_v44 = vmul.f32 %v2233_v54, %v2320_v47  ;;  %v335_v8 = vmul.f32 %v2238_v62, %v2337_v2 }
 0x16e   :  { %282 = vrot.lane.b32.xlu1 %v277_v45, %s1940_s27  ;;  %v2340_v55 = vpop.permute.xlu0 %545  ;;  %v359_v20 = vmul.f32 %v2201_v19, %v2357_v28  ;;  %v401_v5 = vmul.f32 %v2211_v31, %v2366_v24  ;;  %v2388_v27 = vrot.slane %v2306_v23, %v2369_v58  ;;  %v400_v37 = vmul.f32 %v2211_v31, %v2379_v36 }
 0x16f   :  { %v2344_v13 = vmul.f32 %v2331_v14, %v2340_v55  ;;  %280 = vrot.lane.b32.xlu0 %v276_v57, %s1940_s27  ;;  %v337_v40 = vadd.f32 %v335_v8, %v294_v44  ;;  %v2397_v45 = vrot.slane %v2309_v32, %v2369_v58  ;;  %v1095_v57 = vmul.f32 0.1, %v1091_v59 }
 0x170   :  { %v376_v3 = vmul.f32 %v2243_v6, %v2357_v28  ;;  %v442_v25 = vmul.f32 %v2223_v39, %v2388_v27 }
 0x172   :  { %324 = vrot.lane.b32.xlu1 %v319_v63, %s1940_s27  ;;  %v1103_v4 = vpop.permute.xlu0 %1102  ;;  %v2405_v63 = vsub.s32 6, %v2065_v41  ;;  %v378_v8 = vadd.f32 %v376_v3, %v337_v40  ;;  %v1097_v41 = vsel %vm1093_vm4, %v1091_v59, %v1095_v57 }
 0x173   :  { %322 = vrot.lane.b32.xlu0 %v318_v15, %s1940_s27  ;;  %v1104_v50 = vsel %vm90_vm0, %v1101_v38, %v1103_v4  ;;  %v1096_v15 = vsel %vm1092_vm3, %v1090_v21, %v1094_v49  ;;  %v417_v21 = vmul.f32 %v2249_v9, %v2379_v36  ;;  %v1108_v49 = vadd.f32 %v1103_v4, %v1097_v41 }
 0x174   :  { %v1107_v44 = vadd.f32 %v1104_v50, %v1096_v15  ;;  %v2427_v40 = vrot.slane %v2306_v23, %v2405_v63  ;;  %v2436_v57 = vrot.slane %v2309_v32, %v2405_v63  ;;  %v458_v4 = vmul.f32 %v2254_v17, %v2397_v45 }
 0x175   :  { %v419_v50 = vadd.f32 %v417_v21, %v378_v8  ;;  %v2443_v3 = vadd.f32 %v1108_v49, %v2227_v46 }
 0x176   :  { %365 = vrot.lane.b32.xlu1 %v360_v52, %s1940_s27  ;;  %v2411_v52 = vrot.slane %v2306_v23, %v2391_v33  ;;  %v524_v15 = vmul.f32 %v2241_v0, %v2427_v40 }
 0x177   :  { %363 = vrot.lane.b32.xlu0 %v359_v20, %s1940_s27  ;;  %v441_v20 = vmul.f32 %v2223_v39, %v2397_v45  ;;  %v2467_v21 = vrot.slane %v2443_v3, %v2071_v43  ;;  %v2471_v49 = vrot.slane %v2443_v3, %v2068_v42 }
 0x178   :  { %v483_v38 = vmul.f32 %v2236_v60, %v2411_v52 }
 0x179   :  { %3141 = vst [vmem:[#allocation20_spill] sm:$0xff] %v2471_v49 }
 0x17a   :  { %406 = vrot.lane.b32.xlu1 %v401_v5, %s1940_s27  ;;  %v2417_v5 = vrot.slane %v2309_v32, %v2391_v33 }
 0x17b   :  { %404 = vrot.lane.b32.xlu0 %v400_v37, %s1940_s27  ;;  %v2430_v37 = vadd.f32 %v1107_v44, %v2227_v46  ;;  %v523_v44 = vmul.f32 %v2241_v0, %v2436_v57 }
 0x17c   :  { %v482_v59 = vmul.f32 %v2236_v60, %v2417_v5  ;;  %v499_v32 = vmul.f32 %v2259_v29, %v2417_v5 }
 0x17d   :  { %v2457_v8 = vrot.slane %v2430_v37, %v2071_v43 }
 0x17e   :  { %447 = vrot.lane.b32.xlu1 %v442_v25, %s1940_s27  ;;  %v2449_v25 = vrot.slane %v2306_v23, %v2312_v48  ;;  %v540_v23 = vmul.f32 %v2261_v34, %v2436_v57 }
 0x17f   :  { %445 = vrot.lane.b32.xlu0 %v441_v20, %s1940_s27  ;;  %v460_v20 = vadd.f32 %v458_v4, %v419_v50  ;;  %v2477_v50 = vrot.slane %v2430_v37, %v2068_v42  ;;  %v581_v4 = vmul.f32 %v2251_v16, %v2331_v14 }
 0x180   :  { %v565_v41 = vmul.f32 %v2246_v7, %v2449_v25 }
 0x181   :  { %v501_v46 = vadd.f32 %v499_v32, %v460_v20  ;;  %v1124_v32 = vmul.f32 %v2467_v21, %v2165_v30  ;;  %v1137_v20 = vmul.f32 %v2467_v21, %v2233_v54 }
 0x182   :  { %488 = vrot.lane.b32.xlu1 %v483_v38, %s1940_s27  ;;  %v1123_v38 = vmul.f32 %v2457_v8, %v2165_v30  ;;  %v2504_v30 = vrot.slane %v2430_v37, %v2312_v48 }
 0x183   :  { %486 = vrot.lane.b32.xlu0 %v482_v59, %s1940_s27  ;;  %v542_v59 = vadd.f32 %v540_v23, %v501_v46  ;;  %v1152_v46 = vmul.f32 %v2477_v50, %v2191_v10  ;;  %v1166_v23 = vmul.f32 %v2471_v49, %v2238_v62 }
 0x185   :  { %v1168_v43 = vadd.f32 %v1166_v23, %v1137_v20  ;;  %v295_v20 = vmul.f32 %v2233_v54, %v2316_v12  ;;  %v336_v23 = vmul.f32 %v2238_v62, %v2326_v11 }
 0x186   :  { %529 = vrot.lane.b32.xlu1 %v524_v15, %s1940_s27  ;;  %v2483_v15 = vadd.f32 %v581_v4, %v542_v59  ;;  %v2513_v59 = vrot.slane %v2443_v3, %v2092_v56  ;;  %v1153_v4 = vmul.f32 %v2471_v49, %v2191_v10  ;;  %v2535_v10 = vrot.slane %v2443_v3, %v2110_v1  ;;  %v2561_v49 = vpop.permute.xlu1 %625 }
 0x187   :  { %527 = vrot.lane.b32.xlu0 %v523_v44, %s1940_s27  ;;  %v2489_v44 = vrot.slane %v2430_v37, %v2092_v56  ;;  %3145 = vst [vmem:[#allocation24_spill] sm:$0xff] %v2561_v49  ;;  %v418_v49 = vmul.f32 %v2249_v9, %v2366_v24 }
 0x188   :  { %3142 = vst [vmem:[#allocation21_spill] sm:$0xff] %v2513_v59  ;;  %v1195_v56 = vmul.f32 %v2513_v59, %v2243_v6 }
 0x18a   :  { %570 = vrot.lane.b32.xlu1 %v565_v41, %s1940_s27  ;;  %v2499_v41 = vrot.slane %v2443_v3, %v2312_v48  ;;  %v2521_v48 = vrot.slane %v2430_v37, %v2110_v1  ;;  %v1197_v1 = vadd.f32 %v1195_v56, %v1168_v43  ;;  %v2567_v56 = vrot.slane %v2430_v37, %v2391_v33 }
 0x18b   :  { %1127 = vrot.lane.b32.xlu0 %v1123_v38, %s1940_s27  ;;  %v2508_v38 = vmul.f32 %v2449_v25, %v2340_v55 }
 0x18c   :  { %v2525_v42 = vmul.f32 %v2499_v41, %v2340_v55 }
 0x18e   :  { %1129 = vrot.lane.b32.xlu1 %v1124_v32, %s1940_s27  ;;  %v1181_v32 = vmul.f32 %v2489_v44, %v2201_v19  ;;  %3143 = vst [vmem:[#allocation22_spill] sm:$0xff] %v2525_v42  ;;  %v1224_v42 = vmul.f32 %v2535_v10, %v2249_v9 }
 0x18f   :  { %1156 = vrot.lane.b32.xlu0 %v1152_v46, %s1940_s27  ;;  %v2530_v46 = vmul.f32 %v2504_v30, %v2340_v55  ;;  %v1210_v55 = vmul.f32 %v2521_v48, %v2211_v31 }
 0x191   :  { %3144 = vst [vmem:[#allocation23_spill] sm:$0xff] %v2530_v46  ;;  %v2555_v46 = vrot.slane %v2443_v3, %v2369_v58 }
 0x192   :  { %1158 = vrot.lane.b32.xlu1 %v1153_v4, %s1940_s27  ;;  %v1182_v4 = vmul.f32 %v2513_v59, %v2201_v19  ;;  %v338_v19 = vadd.f32 %v336_v23, %v295_v20  ;;  %v1211_v59 = vmul.f32 %v2535_v10, %v2211_v31  ;;  %v2575_v31 = vrot.slane %v2443_v3, %v2391_v33 }
 0x193   :  { %1185 = vrot.lane.b32.xlu0 %v1181_v32, %s1940_s27  ;;  %v2549_v32 = vrot.slane %v2430_v37, %v2369_v58  ;;  %v1253_v20 = vmul.f32 %v2555_v46, %v2254_v17  ;;  %v1136_v23 = vmul.f32 %v2457_v8, %v2233_v54  ;;  %v2594_v54 = vpop.permute.xlu1 %663 }
 0x195   :  { %v1239_v43 = vmul.f32 %v2549_v32, %v2223_v39 }
 0x196   :  { %1187 = vrot.lane.b32.xlu1 %v1182_v4, %s1940_s27  ;;  %v1226_v4 = vadd.f32 %v1224_v42, %v1197_v1  ;;  %v1165_v42 = vmul.f32 %v2477_v50, %v2238_v62  ;;  %v1240_v1 = vmul.f32 %v2555_v46, %v2223_v39  ;;  %v2599_v39 = vrot.slane %v2443_v3, %v2405_v63 }
 0x197   :  { %1214 = vrot.lane.b32.xlu0 %v1210_v55, %s1940_s27  ;;  %v377_v55 = vmul.f32 %v2243_v6, %v2351_v61  ;;  %v1282_v62 = vmul.f32 %v2575_v31, %v2259_v29  ;;  %v459_v3 = vmul.f32 %v2254_v17, %v2388_v27 }
 0x198   :  { %v1255_v33 = vadd.f32 %v1253_v20, %v1226_v4 }
 0x199   :  { %v379_v58 = vadd.f32 %v377_v55, %v338_v19  ;;  %v1167_v19 = vadd.f32 %v1165_v42, %v1136_v23  ;;  %v1311_v23 = vmul.f32 %v2599_v39, %v2261_v34 }
 0x19a   :  { %1216 = vrot.lane.b32.xlu1 %v1211_v59, %s1940_s27  ;;  %v1268_v59 = vmul.f32 %v2567_v56, %v2236_v60  ;;  %v1284_v20 = vadd.f32 %v1282_v62, %v1255_v33  ;;  %v500_v62 = vmul.f32 %v2259_v29, %v2411_v52 }
 0x19b   :  { %1243 = vrot.lane.b32.xlu0 %v1239_v43, %s1940_s27  ;;  %v2589_v43 = vrot.slane %v2430_v37, %v2405_v63  ;;  %v1269_v37 = vmul.f32 %v2575_v31, %v2236_v60  ;;  %v420_v4 = vadd.f32 %v418_v49, %v379_v58  ;;  %v1298_v60 = vmul.f32 %v2599_v39, %v2241_v0  ;;  %v2617_v58 = vpop.permute.xlu1 %737 }
 0x19c   :  { %v1313_v49 = vadd.f32 %v1311_v23, %v1284_v20  ;;  %v1252_v20 = vmul.f32 %v2549_v32, %v2254_v17  ;;  %v582_v17 = vmul.f32 %v2251_v16, %v2449_v25  ;;  %v1339_v25 = vmul.f32 %v2504_v30, %v2251_v16 }
 0x19d   :  { %v1297_v55 = vmul.f32 %v2589_v43, %v2241_v0  ;;  %v461_v33 = vadd.f32 %v459_v3, %v420_v4  ;;  %v1340_v0 = vmul.f32 %v2499_v41, %v2251_v16  ;;  %v564_v3 = vmul.f32 %v2246_v7, %v2331_v14 }
 0x19e   :  { %1245 = vrot.lane.b32.xlu1 %v1240_v1, %s1940_s27  ;;  %v1194_v1 = vmul.f32 %v2489_v44, %v2243_v6  ;;  %v1326_v6 = vmul.f32 %v2504_v30, %v2246_v7  ;;  %v1941_v14 = vmov 44   ;;  %v1944_v16 = vmov 43  }
 0x19f   :  { %1272 = vrot.lane.b32.xlu0 %v1268_v59, %s1940_s27  ;;  %v1223_v59 = vmul.f32 %v2521_v48, %v2249_v9  ;;  %v502_v4 = vadd.f32 %v500_v62, %v461_v33  ;;  %v541_v9 = vmul.f32 %v2261_v34, %v2427_v40  ;;  %v2661_v62 = vpop.permute.xlu0 %586 }
 0x1a0   :  { %v1196_v42 = vadd.f32 %v1194_v1, %v1167_v19  ;;  %v2636_v1 = vpop.permute.xlu1 %774 }
 0x1a1   :  { %v543_v23 = vadd.f32 %v541_v9, %v502_v4 }
 0x1a2   :  { %1274 = vrot.lane.b32.xlu1 %v1269_v37, %s1940_s27  ;;  %v1225_v19 = vadd.f32 %v1223_v59, %v1196_v42  ;;  %v1327_v37 = vmul.f32 %v2499_v41, %v2246_v7  ;;  %v1281_v41 = vmul.f32 %v2567_v56, %v2259_v29  ;;  %v1310_v7 = vmul.f32 %v2589_v43, %v2261_v34 }
 0x1a3   :  { %1301 = vrot.lane.b32.xlu0 %v1297_v55, %s1940_s27  ;;  %v1342_v55 = vadd.f32 %v1340_v0, %v1313_v49  ;;  %v584_v33 = vadd.f32 %v582_v17, %v543_v23  ;;  %v1942_v0 = vmov 45   ;;  %v2667_v4 = vpop.permute.xlu0 %609  ;;  %v1947_v23 = vmov 65  }
 0x1a4   :  { %v1254_v42 = vadd.f32 %v1252_v20, %v1225_v19  ;;  %v1946_v20 = vmov 64  }
 0x1a6   :  { %1303 = vrot.lane.b32.xlu1 %v1298_v60, %s1940_s27  ;;  %v2646_v60 = vld [vmem:[#allocation7] sm:$0xff]  ;;  %v1283_v49 = vadd.f32 %v1281_v41, %v1254_v42 }
 0x1a7   :  { %1330 = vrot.lane.b32.xlu0 %v1326_v6, %s1940_s27  ;;  %v2649_v6 = vpop.permute.xlu1 %645 }
 0x1a8   :  { %v1312_v29 = vadd.f32 %v1310_v7, %v1283_v49 }
 0x1aa   :  { %1332 = vrot.lane.b32.xlu1 %v1327_v37, %s1940_s27  ;;  %v1341_v19 = vadd.f32 %v1339_v25, %v1312_v29  ;;  %v1943_v37 = vmov 46  }
 0x1ab   :  { %1355 = vrot.lane.b32.xlu0 %v1342_v55, %s1940_s27  ;;  %v2659_v59 = vpop.permute.xlu1 %682  ;;  %v2675_v55 = vpop.permute.xlu0 %700 }
 0x1ae   :  { %568 = vrot.lane.b32.xlu1 %v564_v3, %s1940_s27 }
 0x1af   :  { %653 = vperm.xlu0 %1764, %v2646_v60   ;;  %v2665_v34 = vpop.permute.xlu1 %848  ;;  %v2680_v3 = vpop.permute.xlu0 %811 }
 0x1b0   :  { %3146 = vst [vmem:[#allocation25_spill] sm:$0xff] %v2665_v34 }
 0x1b2   :  { %601 = vrot.lane.b32.xlu1 %v584_v33, %s1940_s27 }
 0x1b3   :  { %1767 = vset.pattern.permute.xlu0 %v1941_v14  ;;  %v2671_v30 = vpop.permute.xlu1 %756  ;;  %v2684_v41 = vpop.permute.xlu0 %719  ;;  %v269_v14 = vmul.f32 %v2316_v12, %v2147_v22 }
 0x1b4   :  { %764 = vperm.xlu0 %1767, %v2646_v60  }
 0x1b6   :  { %599 = vrot.lane.b32.xlu1 %v2483_v15, %s1940_s27  ;;  %v1945_v15 = vmov 47  }
 0x1b7   :  { %v2677_v9 = vpop.permute.xlu1 %885  ;;  %v2688_v33 = vpop.permute.xlu0 %793 }
 0x1b8   :  { %1768 = vset.pattern.permute.xlu0 %v1942_v0  ;;  %3147 = vst [vmem:[#allocation26_spill] sm:$0xff] %v2677_v9  ;;  %v268_v0 = vmul.f32 %v2320_v47, %v2147_v22 }
 0x1b9   :  { %801 = vperm.xlu0 %1768, %v2646_v60  }
 0x1ba   :  { %1353 = vrot.lane.b32.xlu1 %v1341_v19, %s1940_s27 }
 0x1bb   :  { %v2682_v42 = vpop.permute.xlu1 %830  ;;  %v2692_v7 = vpop.permute.xlu0 %867 }
 0x1bc   :  { %3150 = vst [vmem:[#allocation29_spill] sm:$0xff] %v2692_v7 }
 0x1bd   :  { %1769 = vset.pattern.permute.xlu0 %v1943_v37  ;;  %v311_v37 = vmul.f32 %v2326_v11, %v2181_v51  ;;  %v351_v11 = vmul.f32 %v2357_v28, %v2195_v18  ;;  %v434_v28 = vmul.f32 %v2388_v27, %v2217_v35  ;;  %v474_v27 = vmul.f32 %v2417_v5, %v2230_v53 }
 0x1be   :  { %690 = vperm.xlu1 %1765, %v2646_v60   ;;  %838 = vperm.xlu0 %1769, %v2646_v60  }
 0x1bf   :  { %v2686_v17 = vpop.permute.xlu1 %904 }
 0x1c0   :  { %3148 = vst [vmem:[#allocation27_spill] sm:$0xff] %v2686_v17 }
 0x1c2   :  { %1766 = vset.pattern.permute.xlu1 %v1944_v16  ;;  %1770 = vset.pattern.permute.xlu0 %v1945_v15 }
 0x1c3   :  { %727 = vperm.xlu1 %1766, %v2646_v60   ;;  %875 = vperm.xlu0 %1770, %v2646_v60   ;;  %v2690_v49 = vpop.permute.xlu1 %615 }
 0x1c4   :  { %3149 = vst [vmem:[#allocation28_spill] sm:$0xff] %v2690_v49 }
 0x1c7   :  { %1771 = vset.pattern.permute.xlu0 %v1946_v20 }
 0x1c8   :  { %912 = vperm.xlu0 %1771, %v2646_v60  }
 0x1cc   :  { %1772 = vset.pattern.permute.xlu0 %v1947_v23  ;;  %v310_v23 = vmul.f32 %v2337_v2, %v2181_v51  ;;  %v393_v2 = vmul.f32 %v2366_v24, %v2207_v26  ;;  %v433_v24 = vmul.f32 %v2397_v45, %v2217_v35 }
 0x1e0   :  { %v283_v29 = vpop.permute.xlu1 %282 }
 0x1e1   :  { %v289_v25 = vadd.f32 %v283_v29, %v269_v14  ;;  %v281_v19 = vpop.permute.xlu0 %280  ;;  %v352_v14 = vmul.f32 %v2351_v61, %v2195_v18  ;;  %v392_v61 = vmul.f32 %v2379_v36, %v2207_v26  ;;  %v475_v36 = vmul.f32 %v2411_v52, %v2230_v53 }
 0x1e2   :  { %v285_v16 = vsel %vm284_vm5, %v281_v19, %v283_v29 }
 0x1e3   :  { %v288_v15 = vadd.f32 %v285_v16, %v268_v0  ;;  %v313_v20 = vadd.f32 %v311_v37, %v289_v25 }
 0x1e4   :  { %v325_v49 = vpop.permute.xlu1 %324 }
 0x1e5   :  { %v330_v17 = vadd.f32 %v325_v49, %v313_v20  ;;  %v312_v12 = vadd.f32 %v310_v23, %v288_v15  ;;  %v323_v9 = vpop.permute.xlu0 %322 }
 0x1e6   :  { %v326_v47 = vsel %vm284_vm5, %v323_v9, %v325_v49 }
 0x1e7   :  { %v329_v7 = vadd.f32 %v326_v47, %v312_v12  ;;  %v354_v34 = vadd.f32 %v352_v14, %v330_v17 }
 0x1e8   :  { %v366_v29 = vpop.permute.xlu1 %365 }
 0x1e9   :  { %v371_v0 = vadd.f32 %v366_v29, %v354_v34  ;;  %v353_v25 = vadd.f32 %v351_v11, %v329_v7  ;;  %v364_v19 = vpop.permute.xlu0 %363 }
 0x1ea   :  { %v367_v37 = vsel %vm284_vm5, %v364_v19, %v366_v29 }
 0x1eb   :  { %v370_v16 = vadd.f32 %v367_v37, %v353_v25  ;;  %v395_v15 = vadd.f32 %v393_v2, %v371_v0 }
 0x1ec   :  { %v407_v9 = vpop.permute.xlu1 %406 }
 0x1ed   :  { %v412_v49 = vadd.f32 %v407_v9, %v395_v15  ;;  %v394_v17 = vadd.f32 %v392_v61, %v370_v16  ;;  %v405_v20 = vpop.permute.xlu0 %404  ;;  %v3151_v15 = vld [vmem:[#allocation16_spill] sm:$0xff] }
 0x1ee   :  { %v408_v34 = vsel %vm284_vm5, %v405_v20, %v407_v9  ;;  %v516_v45 = vmul.f32 %v2427_v40, %v3151_v15  ;;  %v515_v52 = vmul.f32 %v2436_v57, %v3151_v15  ;;  %v1120_v57 = vmul.f32 %v2467_v21, %v2147_v22 }
 0x1ef   :  { %v411_v7 = vadd.f32 %v408_v34, %v394_v17  ;;  %v436_v23 = vadd.f32 %v434_v28, %v412_v49 }
 0x1f0   :  { %v448_v12 = vpop.permute.xlu1 %447 }
 0x1f1   :  { %v453_v14 = vadd.f32 %v448_v12, %v436_v23  ;;  %v435_v47 = vadd.f32 %v433_v24, %v411_v7  ;;  %v446_v11 = vpop.permute.xlu0 %445 }
 0x1f2   :  { %v449_v29 = vsel %vm284_vm5, %v446_v11, %v448_v12  ;;  %v1119_v11 = vmul.f32 %v2457_v8, %v2147_v22  ;;  %v3153_v22 = vld [vmem:[#allocation21_spill] sm:$0xff] }
 0x1f3   :  { %v452_v0 = vadd.f32 %v449_v29, %v435_v47  ;;  %v477_v25 = vadd.f32 %v475_v36, %v453_v14  ;;  %v1948_v14 = vmov 66   ;;  %v1178_v8 = vmul.f32 %v3153_v22, %v2195_v18 }
 0x1f4   :  { %v489_v19 = vpop.permute.xlu1 %488  ;;  %1773 = vset.pattern.permute.xlu1 %v1948_v14 }
 0x1f5   :  { %v494_v2 = vadd.f32 %v489_v19, %v477_v25  ;;  %v476_v37 = vadd.f32 %v474_v27, %v452_v0  ;;  %v487_v16 = vpop.permute.xlu0 %486 }
 0x1f6   :  { %v490_v61 = vsel %vm284_vm5, %v487_v16, %v489_v19 }
 0x1f7   :  { %v493_v9 = vadd.f32 %v490_v61, %v476_v37  ;;  %v518_v49 = vadd.f32 %v516_v45, %v494_v2 }
 0x1f8   :  { %v530_v17 = vpop.permute.xlu1 %529 }
 0x1f9   :  { %v535_v20 = vadd.f32 %v530_v17, %v518_v49  ;;  %v517_v28 = vadd.f32 %v515_v52, %v493_v9  ;;  %v528_v34 = vpop.permute.xlu0 %527  ;;  %v1177_v9 = vmul.f32 %v2489_v44, %v2195_v18 }
 0x1fa   :  { %v531_v5 = vsel %vm284_vm5, %v528_v34, %v530_v17 }
 0x1fb   :  { %v534_v7 = vadd.f32 %v531_v5, %v517_v28  ;;  %v559_v23 = vadd.f32 %v2508_v38, %v535_v20  ;;  %v3152_v38 = vld [vmem:[#allocation20_spill] sm:$0xff]  ;;  %v1207_v28 = vmul.f32 %v2535_v10, %v2207_v26  ;;  %v1206_v5 = vmul.f32 %v2521_v48, %v2207_v26 }
 0x1fc   :  { %v2730_v24 = vpop.permute.xlu1 %570  ;;  %v1149_v25 = vmul.f32 %v3152_v38, %v2181_v51 }
 0x1fd   :  { %v1128_v12 = vpop.permute.xlu0 %1127  ;;  %v2733_v40 = vadd.f32 %v2344_v13, %v534_v7  ;;  %v1148_v13 = vmul.f32 %v2477_v50, %v2181_v51 }
 0x200   :  { %v1130_v47 = vpop.permute.xlu1 %1129 }
 0x201   :  { %v1131_v36 = vsel %vm284_vm5, %v1128_v12, %v1130_v47  ;;  %v1135_v29 = vadd.f32 %v1130_v47, %v1120_v57  ;;  %v1157_v0 = vpop.permute.xlu0 %1156  ;;  %v1236_v47 = vmul.f32 %v2555_v46, %v2217_v35 }
 0x202   :  { %v1134_v27 = vadd.f32 %v1131_v36, %v1119_v11  ;;  %v1235_v36 = vmul.f32 %v2549_v32, %v2217_v35  ;;  %v1294_v32 = vmul.f32 %v2599_v39, %v3151_v15  ;;  %v3155_v39 = vld [vmem:[#allocation23_spill] sm:$0xff] }
 0x203   :  { %v1151_v19 = vadd.f32 %v1149_v25, %v1135_v29  ;;  %v1265_v25 = vmul.f32 %v2575_v31, %v2230_v53  ;;  %v576_v31 = vadd.f32 %v2730_v24, %v559_v23 }
 0x204   :  { %v1159_v2 = vpop.permute.xlu1 %1158  ;;  %v1150_v37 = vadd.f32 %v1148_v13, %v1134_v27  ;;  %v1264_v13 = vmul.f32 %v2567_v56, %v2230_v53 }
 0x205   :  { %v1160_v21 = vsel %vm284_vm5, %v1157_v0, %v1159_v2  ;;  %v1164_v16 = vadd.f32 %v1159_v2, %v1151_v19  ;;  %v1186_v45 = vpop.permute.xlu0 %1185 }
 0x206   :  { %v1163_v61 = vadd.f32 %v1160_v21, %v1150_v37 }
 0x207   :  { %v1180_v49 = vadd.f32 %v1178_v8, %v1164_v16  ;;  %v1293_v16 = vmul.f32 %v2589_v43, %v3151_v15 }
 0x208   :  { %v1188_v52 = vpop.permute.xlu1 %1187  ;;  %v1179_v17 = vadd.f32 %v1177_v9, %v1163_v61 }
 0x209   :  { %v1189_v20 = vsel %vm284_vm5, %v1186_v45, %v1188_v52  ;;  %v1193_v51 = vadd.f32 %v1188_v52, %v1180_v49  ;;  %v1215_v50 = vpop.permute.xlu0 %1214  ;;  %v3154_v49 = vld [vmem:[#allocation22_spill] sm:$0xff] }
 0x20a   :  { %v1192_v34 = vadd.f32 %v1189_v20, %v1179_v17  ;;  %v590_v17 = vadd.f32 %v2661_v62, %v576_v31  ;;  %v3159_v31 = vld [vmem:[#allocation14_spill] sm:$0xff] }
 0x20b   :  { %v1209_v7 = vadd.f32 %v1207_v28, %v1193_v51 }
 0x20c   :  { %v1217_v12 = vpop.permute.xlu1 %1216  ;;  %v1208_v14 = vadd.f32 %v1206_v5, %v1192_v34  ;;  %v594_v34 = vmul.f32 0.1, %v590_v17  ;;  %vm592_vm7 = vcmp.ge.f32.partialorder %v590_v17, 0.0 }
 0x20d   :  { %v1218_v57 = vsel %vm284_vm5, %v1215_v50, %v1217_v12  ;;  %v1222_v18 = vadd.f32 %v1217_v12, %v1209_v7  ;;  %v1244_v44 = vpop.permute.xlu0 %1243 }
 0x20e   :  { %v1221_v11 = vadd.f32 %v1218_v57, %v1208_v14 }
 0x20f   :  { %v1238_v29 = vadd.f32 %v1236_v47, %v1222_v18 }
 0x210   :  { %v1246_v10 = vpop.permute.xlu1 %1245  ;;  %v1237_v0 = vadd.f32 %v1235_v36, %v1221_v11  ;;  %v596_v36 = vsel %vm592_vm7, %v590_v17, %v594_v34 }
 0x211   :  { %v1247_v38 = vsel %vm284_vm5, %v1244_v44, %v1246_v10  ;;  %v1251_v26 = vadd.f32 %v1246_v10, %v1238_v29  ;;  %v1273_v48 = vpop.permute.xlu0 %1272 }
 0x212   :  { %v1250_v27 = vadd.f32 %v1247_v38, %v1237_v0 }
 0x213   :  { %v1267_v19 = vadd.f32 %v1265_v25, %v1251_v26  ;;  %v3156_v25 = vld [vmem:[#allocation12_spill] sm:$0xff] }
 0x214   :  { %v1275_v46 = vpop.permute.xlu1 %1274  ;;  %v1266_v2 = vadd.f32 %v1264_v13, %v1250_v27  ;;  %v3157_v13 = vld [vmem:[#allocation13_spill] sm:$0xff] }
 0x215   :  { %v1276_v37 = vsel %vm284_vm5, %v1273_v48, %v1275_v46  ;;  %v1280_v35 = vadd.f32 %v1275_v46, %v1267_v19  ;;  %v1302_v45 = vpop.permute.xlu0 %1301 }
 0x216   :  { %v1279_v21 = vadd.f32 %v1276_v37, %v1266_v2 }
 0x217   :  { %v1296_v22 = vadd.f32 %v1294_v32, %v1280_v35  ;;  %v3158_v35 = vld [vmem:[#allocation24_spill] sm:$0xff] }
 0x218   :  { %v1304_v8 = vpop.permute.xlu1 %1303  ;;  %v1295_v61 = vadd.f32 %v1293_v16, %v1279_v21 }
 0x219   :  { %v1305_v53 = vsel %vm284_vm5, %v1302_v45, %v1304_v8  ;;  %v1309_v56 = vadd.f32 %v1304_v8, %v1296_v22  ;;  %v1331_v50 = vpop.permute.xlu0 %1330 }
 0x21a   :  { %v1308_v9 = vadd.f32 %v1305_v53, %v1295_v61 }
 0x21b   :  { %v1325_v52 = vadd.f32 %v3154_v49, %v1309_v56 }
 0x21c   :  { %v1333_v20 = vpop.permute.xlu1 %1332  ;;  %v1324_v51 = vadd.f32 %v3155_v39, %v1308_v9 }
 0x21d   :  { %v1338_v28 = vadd.f32 %v1333_v20, %v1325_v52  ;;  %v1334_v43 = vsel %vm284_vm5, %v1331_v50, %v1333_v20  ;;  %v1356_v18 = vpop.permute.xlu0 %1355  ;;  %v3160_v50 = vld [vmem:[#allocation15_spill] sm:$0xff] }
 0x21e   :  { %v1337_v12 = vadd.f32 %v1334_v43, %v1324_v51 }
 0x21f   :  { %v1344_v15 = vadd.f32 %v1338_v28, %v2661_v62 }
 0x220   :  { %v569_v23 = vpop.permute.xlu1 %568  ;;  %v1343_v10 = vadd.f32 %v1337_v12, %v2661_v62 }
 0x221   :  { %vm1346_vm6 = vcmp.ge.f32.partialorder %v1344_v15, 0.0  ;;  %v1348_v5 = vmul.f32 0.1, %v1344_v15  ;;  %v572_v7 = vsel %vm284_vm5, %v569_v23, %v2730_v24  ;;  %v1950_v23 = vmov 67  }
 0x222   :  { %v575_v14 = vadd.f32 %v572_v7, %v2733_v40  ;;  %vm1345_vm9 = vcmp.ge.f32.partialorder %v1343_v10, 0.0 }
 0x223   :  { %v1350_v57 = vsel %vm1346_vm6, %v1344_v15, %v1348_v5 }
 0x224   :  { %v1361_v44 = vadd.f32 %v1356_v18, %v1350_v57  ;;  %v589_v47 = vadd.f32 %v2661_v62, %v575_v14  ;;  %v602_v11 = vpop.permute.xlu1 %601  ;;  %v1347_v62 = vmul.f32 0.1, %v1343_v10 }
 0x225   :  { %v607_v29 = vadd.f32 %v602_v11, %v596_v36 }
 0x226   :  { %v2782_v0 = vadd.f32 %v1361_v44, %v2667_v4  ;;  %vm591_vm8 = vcmp.ge.f32.partialorder %v589_v47, 0.0  ;;  %v593_v38 = vmul.f32 0.1, %v589_v47  ;;  %v1349_v22 = vsel %vm1345_vm9, %v1343_v10, %v1347_v62 }
 0x227   :  { %v2785_v24 = vadd.f32 %v2667_v4, %v607_v29 }
 0x228   :  { %v600_v26 = vpop.permute.xlu1 %599  ;;  %v595_v40 = vsel %vm591_vm8, %v589_v47, %v593_v38  ;;  %v1398_v46 = vrot.slane %v2782_v0, %v3156_v25  ;;  %v1373_v21 = vrot.slane %v2782_v0, %v3157_v13  ;;  %v1423_v20 = vrot.slane %v2782_v0, %v3159_v31  ;;  %v3161_v38 = vld [vmem:[#allocation18_spill] sm:$0xff] }
 0x229   :  { %v603_v48 = vsel %vm284_vm5, %v600_v26, %v602_v11  ;;  %v669_v27 = vrot.slane %v2785_v24, %v3156_v25  ;;  %v631_v19 = vrot.slane %v2785_v24, %v3157_v13  ;;  %v706_v8 = vrot.slane %v2785_v24, %v3159_v31 }
 0x22a   :  { %v606_v2 = vadd.f32 %v603_v48, %v595_v40  ;;  %v1400_v56 = vmul.f32 %v1398_v46, %v2594_v54  ;;  %v1375_v9 = vmul.f32 %v1373_v21, %v3158_v35  ;;  %v743_v28 = vrot.slane %v2785_v24, %v3160_v50 }
 0x22b   :  { %v671_v37 = vmul.f32 %v669_v27, %v2594_v54  ;;  %v633_v32 = vmul.f32 %v631_v19, %v3158_v35  ;;  %v708_v17 = vmul.f32 %v706_v8, %v2675_v55  ;;  %v686_v43 = vmul.f32 %v2659_v59, %v669_v27 }
 0x22c   :  { %v1354_v16 = vpop.permute.xlu1 %1353  ;;  %v2804_v61 = vadd.f32 %v2667_v4, %v606_v2  ;;  %v649_v15 = vmul.f32 %v2649_v6, %v631_v19  ;;  %v745_v5 = vmul.f32 %v743_v28, %v2617_v58  ;;  %v1448_v12 = vrot.slane %v2782_v0, %v3160_v50 }
 0x22d   :  { %v1357_v45 = vsel %vm284_vm5, %v1354_v16, %v1356_v18  ;;  %676 = vrot.lane.b32.xlu1 %v671_v37, %s1949_s28  ;;  %638 = vrot.lane.b32.xlu0 %v633_v32, %s1949_s28  ;;  %v1411_v57 = vmul.f32 %v1398_v46, %v2659_v59  ;;  %v1386_v47 = vmul.f32 %v1373_v21, %v2649_v6 }
 0x22e   :  { %v1360_v53 = vadd.f32 %v1357_v45, %v1349_v22  ;;  %v2815_v52 = vrot.slane %v2804_v61, %v3156_v25  ;;  %v2845_v14 = vrot.slane %v2804_v61, %v3159_v31  ;;  %v688_v44 = vadd.f32 %v686_v43, %v649_v15 }
 0x22f   :  { %v1450_v36 = vmul.f32 %v1448_v12, %v2617_v58  ;;  %v780_v26 = vrot.slane %v2785_v24, %v3161_v38  ;;  %v2866_v40 = vrot.slane %v2804_v61, %v3161_v38  ;;  %v723_v48 = vmul.f32 %v2684_v41, %v706_v8 }
 0x230   :  { %v2811_v49 = vadd.f32 %v1360_v53, %v2667_v4  ;;  %v1425_v4 = vmul.f32 %v1423_v20, %v2675_v55  ;;  %v670_v51 = vmul.f32 %v2594_v54, %v2815_v52  ;;  %v1413_v19 = vadd.f32 %v1411_v57, %v1386_v47 }
 0x231   :  { %1405 = vrot.lane.b32.xlu1 %v1400_v56, %s1949_s28  ;;  %1380 = vrot.lane.b32.xlu0 %v1375_v9, %s1949_s28  ;;  %v725_v62 = vadd.f32 %v723_v48, %v688_v44  ;;  %v782_v2 = vmul.f32 %v780_v26, %v2636_v1  ;;  %v1473_v32 = vrot.slane %v2782_v0, %v3161_v38 }
 0x232   :  { %v2824_v39 = vrot.slane %v2811_v49, %v3156_v25  ;;  %v1417_v34 = vrot.slane %v2811_v49, %v3159_v31  ;;  %v2860_v10 = vrot.slane %v2811_v49, %v3160_v50  ;;  %v3162_v25 = vld [vmem:[#allocation19_spill] sm:$0xff]  ;;  %v2877_v46 = vrot.slane %v2811_v49, %v3161_v38 }
 0x233   :  { %v2871_v27 = vrot.slane %v2804_v61, %v3162_v25  ;;  %v685_v21 = vmul.f32 %v2659_v59, %v2815_v52  ;;  %v796_v16 = vmul.f32 %v2688_v33, %v2866_v40  ;;  %v1436_v45 = vmul.f32 %v1423_v20, %v2684_v41 }
 0x234   :  { %v1399_v7 = vmul.f32 %v2824_v39, %v2594_v54  ;;  %v1424_v29 = vmul.f32 %v1417_v34, %v2675_v55  ;;  %v1449_v37 = vmul.f32 %v2860_v10, %v2617_v58  ;;  %v2891_v22 = vrot.slane %v2804_v61, %v3157_v13 }
 0x235   :  { %713 = vrot.lane.b32.xlu1 %v708_v17, %s1949_s28  ;;  %929 = vperm.xlu0 %1772, %v2646_v60   ;;  %v1410_v31 = vmul.f32 %v2824_v39, %v2659_v59  ;;  %v833_v8 = vmul.f32 %v2682_v42, %v2871_v27  ;;  %v2901_v53 = vrot.slane %v2811_v49, %v3157_v13 }
 0x236   :  { %v2905_v56 = vrot.slane %v2811_v49, %v3162_v25  ;;  %v1438_v9 = vadd.f32 %v1436_v45, %v1413_v19  ;;  %v2909_v17 = vrot.slane %v2804_v61, %v3160_v50  ;;  %v648_v59 = vmul.f32 %v2649_v6, %v2891_v22 }
 0x237   :  { %v1475_v20 = vmul.f32 %v1473_v32, %v2636_v1  ;;  %v817_v13 = vrot.slane %v2785_v24, %v3162_v25  ;;  %v722_v43 = vmul.f32 %v2684_v41, %v2845_v14  ;;  %v760_v50 = vmul.f32 %v2671_v30, %v743_v28 }
 0x238   :  { %v2925_v15 = vrot.slane %v2804_v61, %v2405_v63  ;;  %v2930_v57 = vrot.slane %v2811_v49, %v2405_v63  ;;  %v759_v28 = vmul.f32 %v2671_v30, %v2909_v17  ;;  %v1460_v44 = vmul.f32 %v2860_v10, %v2671_v30 }
 0x239   :  { %1430 = vrot.lane.b32.xlu1 %v1425_v4, %s1949_s28  ;;  %674 = vrot.lane.b32.xlu0 %v670_v51, %s1949_s28  ;;  %v1474_v4 = vmul.f32 %v2877_v46, %v2636_v1  ;;  %v1385_v51 = vmul.f32 %v2901_v53, %v2649_v6  ;;  %v1485_v38 = vmul.f32 %v2877_v46, %v2688_v33 }
 0x23a   :  { %1775 = vset.pattern.permute.xlu0 %v1950_v23  ;;  %v1510_v48 = vmul.f32 %v2905_v56, %v2682_v42  ;;  %v1461_v19 = vmul.f32 %v1448_v12, %v2671_v30  ;;  %v854_v30 = vrot.slane %v2785_v24, %v2405_v63 }
 0x23b   :  { %v1412_v6 = vadd.f32 %v1410_v31, %v1385_v51  ;;  %v3165_v51 = vld [vmem:[#allocation29_spill] sm:$0xff] }
 0x23c   :  { %v1463_v45 = vadd.f32 %v1461_v19, %v1438_v9  ;;  %v1535_v9 = vmul.f32 %v2930_v57, %v3165_v51 }
 0x23d   :  { %v691_v18 = vpop.permute.xlu1 %690  ;;  %750 = vrot.lane.b32.xlu1 %v745_v5, %s1949_s28  ;;  %1403 = vrot.lane.b32.xlu0 %v1399_v7, %s1949_s28  ;;  %v687_v5 = vadd.f32 %v685_v21, %v648_v59  ;;  %v1435_v7 = vmul.f32 %v1417_v34, %v2684_v41  ;;  %v1499_v41 = vmul.f32 %v2905_v56, %v2680_v3 }
 0x23e   :  { %v2852_v11 = vmul.f32 %v2845_v14, %v691_v18  ;;  %v2854_v54 = vmul.f32 %v1417_v34, %v691_v18  ;;  %v762_v18 = vadd.f32 %v760_v50, %v725_v62  ;;  %v1498_v34 = vrot.slane %v2782_v0, %v3162_v25 }
 0x23f   :  { %v724_v47 = vadd.f32 %v722_v43, %v687_v5  ;;  %v797_v21 = vmul.f32 %v2688_v33, %v780_v26  ;;  %v870_v43 = vmul.f32 %v3165_v51, %v2925_v15  ;;  %v834_v5 = vmul.f32 %v2682_v42, %v817_v13 }
 0x240   :  { %v1500_v59 = vmul.f32 %v1498_v34, %v2680_v3 }
 0x241   :  { %1455 = vrot.lane.b32.xlu1 %v1450_v36, %s1949_s28  ;;  %1428 = vrot.lane.b32.xlu0 %v1424_v29, %s1949_s28  ;;  %v819_v36 = vmul.f32 %v817_v13, %v2680_v3  ;;  %v1437_v29 = vadd.f32 %v1435_v7, %v1412_v6  ;;  %v761_v62 = vadd.f32 %v759_v28, %v724_v47  ;;  %v3167_v47 = vld [vmem:[#allocation27_spill] sm:$0xff] }
 0x242   :  { %v799_v26 = vadd.f32 %v797_v21, %v762_v18  ;;  %v1523_v28 = vrot.slane %v2782_v0, %v2405_v63  ;;  %v871_v63 = vmul.f32 %v3165_v51, %v854_v30 }
 0x243   :  { %v1462_v25 = vadd.f32 %v1460_v44, %v1437_v29  ;;  %v798_v12 = vadd.f32 %v796_v16, %v761_v62  ;;  %v3166_v16 = vld [vmem:[#allocation26_spill] sm:$0xff] }
 0x245   :  { %787 = vrot.lane.b32.xlu1 %v782_v2, %s1949_s28  ;;  %1453 = vrot.lane.b32.xlu0 %v1449_v37, %s1949_s28  ;;  %v3163_v2 = vld [vmem:[#allocation17_spill] sm:$0xff]  ;;  %v835_v50 = vadd.f32 %v833_v8, %v798_v12 }
 0x246   :  { %v2950_v37 = vrot.slane %v2804_v61, %v3163_v2  ;;  %v2957_v31 = vrot.slane %v2811_v49, %v3163_v2  ;;  %v3164_v61 = vld [vmem:[#allocation25_spill] sm:$0xff]  ;;  %v1486_v49 = vmul.f32 %v1473_v32, %v2688_v33  ;;  %v836_v32 = vadd.f32 %v834_v5, %v799_v26 }
 0x247   :  { %v856_v18 = vmul.f32 %v854_v30, %v3164_v61  ;;  %v872_v44 = vadd.f32 %v870_v43, %v835_v50  ;;  %v1525_v19 = vmul.f32 %v1523_v28, %v3164_v61  ;;  %v781_v43 = vmul.f32 %v2636_v1, %v2866_v40  ;;  %v728_v1 = vpop.permute.xlu1 %727 }
 0x248   :  { %v892_v7 = vmul.f32 %v3166_v16, %v2950_v37  ;;  %v907_v33 = vmul.f32 %v3167_v47, %v2950_v37  ;;  %v1488_v8 = vadd.f32 %v1486_v49, %v1463_v45  ;;  %v1549_v62 = vmul.f32 %v2957_v31, %v3166_v16 }
 0x249   :  { %1480 = vrot.lane.b32.xlu1 %v1475_v20, %s1949_s28  ;;  %1478 = vrot.lane.b32.xlu0 %v1474_v4, %s1949_s28  ;;  %v855_v20 = vmul.f32 %v3164_v61, %v2925_v15  ;;  %v1487_v4 = vadd.f32 %v1485_v38, %v1462_v25  ;;  %v1511_v38 = vmul.f32 %v1498_v34, %v2682_v42 }
 0x24a   :  { %v909_v29 = vadd.f32 %v907_v33, %v872_v44  ;;  %v873_v21 = vadd.f32 %v871_v63, %v836_v32  ;;  %v1548_v34 = vrot.slane %v2782_v0, %v3163_v2  ;;  %v1374_v0 = vmul.f32 %v2901_v53, %v3158_v35 }
 0x24b   :  { %v1512_v6 = vadd.f32 %v1510_v48, %v1487_v4  ;;  %v1513_v25 = vadd.f32 %v1511_v38, %v1488_v8  ;;  %v707_v4 = vmul.f32 %v2675_v55, %v2845_v14  ;;  %v1524_v55 = vmul.f32 %v2930_v57, %v3164_v61  ;;  %v3168_v38 = vld [vmem:[#allocation28_spill] sm:$0xff] }
 0x24c   :  { %v622_v63 = vmul.f32 %v2891_v22, %v3168_v38 }
 0x24d   :  { %824 = vrot.lane.b32.xlu1 %v819_v36, %s1949_s28  ;;  %1503 = vrot.lane.b32.xlu0 %v1499_v41, %s1949_s28  ;;  %v1537_v13 = vadd.f32 %v1535_v9, %v1512_v6  ;;  %v1560_v36 = vmul.f32 %v2957_v31, %v3167_v47  ;;  %v891_v41 = vrot.slane %v2785_v24, %v3163_v2 }
 0x24e   :  { %v1536_v24 = vmul.f32 %v1523_v28, %v3165_v51  ;;  %v1550_v2 = vmul.f32 %v1548_v34, %v3166_v16  ;;  %v744_v51 = vmul.f32 %v2617_v58, %v2909_v17  ;;  %v654_v58 = vpop.permute.xlu0 %653 }
 0x24f   :  { %v1562_v48 = vadd.f32 %v1560_v36, %v1537_v13  ;;  %v908_v42 = vmul.f32 %v3167_v47, %v891_v41  ;;  %v893_v45 = vmul.f32 %v891_v41, %v3166_v16 }
 0x250   :  { %v1538_v12 = vadd.f32 %v1536_v24, %v1513_v25 }
 0x251   :  { %1505 = vrot.lane.b32.xlu1 %v1500_v59, %s1949_s28  ;;  %859 = vrot.lane.b32.xlu0 %v855_v20, %s1949_s28  ;;  %v910_v30 = vadd.f32 %v908_v42, %v873_v21  ;;  %v1561_v59 = vmul.f32 %v1548_v34, %v3167_v47  ;;  %v632_v20 = vmul.f32 %v3158_v35, %v2891_v22 }
 0x252   :  { %v818_v35 = vmul.f32 %v2680_v3, %v2871_v27  ;;  %v765_v3 = vpop.permute.xlu0 %764  ;;  %v1368_v34 = vmul.f32 %v2901_v53, %v3168_v38 }
 0x253   :  { %v1563_v26 = vadd.f32 %v1561_v59, %v1538_v12  ;;  %v1393_v12 = vmul.f32 %v2824_v39, %v654_v58  ;;  %v1443_v39 = vmul.f32 %v2860_v10, %v728_v1 }
 0x255   :  { %861 = vrot.lane.b32.xlu1 %v856_v18, %s1949_s28  ;;  %896 = vrot.lane.b32.xlu0 %v892_v7, %s1949_s28 }
 0x256   :  { %v3029_v9 = vpop.permute.xlu0 %801 }
 0x259   :  { %1530 = vrot.lane.b32.xlu1 %v1525_v19, %s1949_s28  ;;  %1553 = vrot.lane.b32.xlu0 %v1549_v62, %s1949_s28  ;;  %v660_v62 = vmul.f32 %v2815_v52, %v654_v58 }
 0x25a   :  { %v3031_v50 = vpop.permute.xlu0 %838 }
 0x25d   :  { %898 = vrot.lane.b32.xlu1 %v893_v45, %s1949_s28  ;;  %923 = vrot.lane.b32.xlu0 %v910_v30, %s1949_s28 }
 0x25e   :  { %v3033_v16 = vpop.permute.xlu0 %875 }
 0x261   :  { %636 = vrot.lane.b32.xlu1 %v632_v20, %s1949_s28  ;;  %1572 = vrot.lane.b32.xlu0 %v1563_v26, %s1949_s28 }
 0x262   :  { %v3035_v6 = vpop.permute.xlu0 %912 }
 0x265   :  { %1378 = vrot.lane.b32.xlu1 %v1374_v0, %s1949_s28 }
 0x269   :  { %1555 = vrot.lane.b32.xlu1 %v1550_v2, %s1949_s28 }
 0x26d   :  { %711 = vrot.lane.b32.xlu1 %v707_v4, %s1949_s28 }
 0x271   :  { %748 = vrot.lane.b32.xlu1 %v744_v51, %s1949_s28 }
 0x275   :  { %785 = vrot.lane.b32.xlu1 %v781_v43, %s1949_s28 }
 0x279   :  { %822 = vrot.lane.b32.xlu1 %v818_v35, %s1949_s28 }
 0x27d   :  { %1528 = vrot.lane.b32.xlu1 %v1524_v55, %s1949_s28  ;;  %v734_v55 = vmul.f32 %v2909_v17, %v728_v1 }
 0x281   :  { %934 = vperm.xlu1 %1773, %v2646_v60  }
 0x285   :  { %921 = vrot.lane.b32.xlu1 %v909_v29, %s1949_s28 }
 0x286   :  { %1774 = vset.pattern.permute.xlu1 %v1950_v23 }
 0x289   :  { %1570 = vrot.lane.b32.xlu1 %v1562_v48, %s1949_s28 }
 0x28d   :  { %962 = vperm.xlu1 %1774, %v2646_v60  }
 0x29f   :  { %v677_v14 = vpop.permute.xlu1 %676  ;;  %v639_v28 = vpop.permute.xlu0 %638 }
 0x2a3   :  { %v1406_v49 = vpop.permute.xlu1 %1405  ;;  %v1381_v44 = vpop.permute.xlu0 %1380 }
 0x2a7   :  { %v714_v61 = vpop.permute.xlu1 %713 }
 0x2ab   :  { %v1431_v5 = vpop.permute.xlu1 %1430 }
 0x2af   :  { %v751_v7 = vpop.permute.xlu1 %750 }
 0x2b3   :  { %v1456_v23 = vpop.permute.xlu1 %1455 }
 0x2b4   :  { %v3037_v33 = vpop.permute.xlu0 %929 }
 0x2b7   :  { %v788_v18 = vpop.permute.xlu1 %787 }
 0x2b8   :  { %v675_v13 = vpop.permute.xlu0 %674 }
 0x2b9   :  { %v678_v45 = vsel %vm640_vm10, %v675_v13, %v677_v14 }
 0x2bb   :  { %v1481_v60 = vpop.permute.xlu1 %1480 }
 0x2bc   :  { %v1404_v41 = vpop.permute.xlu0 %1403 }
 0x2bd   :  { %v1407_v2 = vsel %vm640_vm10, %v1404_v41, %v1406_v49 }
 0x2bf   :  { %v825_v47 = vpop.permute.xlu1 %824 }
 0x2c0   :  { %v1429_v21 = vpop.permute.xlu0 %1428 }
 0x2c1   :  { %v1432_v53 = vsel %vm640_vm10, %v1429_v21, %v1431_v5  ;;  %v1468_v5 = vmul.f32 %v2877_v46, %v765_v3 }
 0x2c3   :  { %v1506_v32 = vpop.permute.xlu1 %1505 }
 0x2c4   :  { %v1454_v20 = vpop.permute.xlu0 %1453 }
 0x2c5   :  { %v1457_v49 = vsel %vm640_vm10, %v1454_v20, %v1456_v23 }
 0x2c7   :  { %v3039_v8 = vpop.permute.xlu1 %861 }
 0x2c8   :  { %v1479_v58 = vpop.permute.xlu0 %1478 }
 0x2c9   :  { %v1482_v1 = vsel %vm640_vm10, %v1479_v58, %v1481_v60  ;;  %v845_v60 = vmul.f32 %v2925_v15, %v3031_v50  ;;  %v1543_v15 = vmul.f32 %v2957_v31, %v3033_v16 }
 0x2cb   :  { %v3041_v36 = vpop.permute.xlu1 %1530 }
 0x2cf   :  { %v3043_v29 = vpop.permute.xlu1 %898 }
 0x2d3   :  { %v637_v48 = vpop.permute.xlu1 %636 }
 0x2d4   :  { %v641_v19 = vsel %vm640_vm10, %v637_v48, %v639_v28 }
 0x2d5   :  { %v643_v25 = vadd.f32 %v641_v19, %v622_v63  ;;  %v1504_v63 = vpop.permute.xlu0 %1503 }
 0x2d7   :  { %v661_v42 = vadd.f32 %v660_v62, %v643_v25  ;;  %v1379_v24 = vpop.permute.xlu1 %1378  ;;  %v808_v62 = vmul.f32 %v2871_v27, %v3029_v9  ;;  %v1507_v25 = vsel %vm640_vm10, %v1504_v63, %v1506_v32 }
 0x2d8   :  { %v1382_v30 = vsel %vm640_vm10, %v1379_v24, %v1381_v44 }
 0x2d9   :  { %v1384_v59 = vadd.f32 %v1382_v30, %v1368_v34  ;;  %v680_v22 = vadd.f32 %v678_v45, %v661_v42  ;;  %v860_v24 = vpop.permute.xlu0 %859 }
 0x2da   :  { %v863_v30 = vsel %vm640_vm10, %v860_v24, %v3039_v8 }
 0x2db   :  { %v1394_v26 = vadd.f32 %v1393_v12, %v1384_v59  ;;  %v1556_v0 = vpop.permute.xlu1 %1555  ;;  %v698_v52 = vadd.f32 %v2852_v11, %v680_v22 }
 0x2dd   :  { %v1409_v4 = vadd.f32 %v1407_v2, %v1394_v26  ;;  %v897_v22 = vpop.permute.xlu0 %896 }
 0x2de   :  { %v900_v20 = vsel %vm640_vm10, %v897_v22, %v3043_v29 }
 0x2df   :  { %v1419_v51 = vadd.f32 %v2854_v54, %v1409_v4  ;;  %v712_v43 = vpop.permute.xlu1 %711  ;;  %v771_v54 = vmul.f32 %v2866_v40, %v765_v3 }
 0x2e0   :  { %v715_v35 = vsel %vm640_vm10, %v712_v43, %v714_v61 }
 0x2e1   :  { %v1434_v14 = vadd.f32 %v1432_v53, %v1419_v51  ;;  %v717_v28 = vadd.f32 %v715_v35, %v698_v52  ;;  %v1554_v52 = vpop.permute.xlu0 %1553 }
 0x2e2   :  { %v1557_v8 = vsel %vm640_vm10, %v1554_v52, %v1556_v0 }
 0x2e3   :  { %v1444_v44 = vadd.f32 %v1443_v39, %v1434_v14  ;;  %v749_v13 = vpop.permute.xlu1 %748  ;;  %v735_v11 = vadd.f32 %v734_v55, %v717_v28 }
 0x2e4   :  { %v752_v41 = vsel %vm640_vm10, %v749_v13, %v751_v7  ;;  %v1493_v7 = vmul.f32 %v2905_v56, %v3029_v9 }
 0x2e5   :  { %v754_v38 = vadd.f32 %v752_v41, %v735_v11  ;;  %v1459_v61 = vadd.f32 %v1457_v49, %v1444_v44  ;;  %v924_v31 = vpop.permute.xlu0 %923 }
 0x2e7   :  { %v786_v17 = vpop.permute.xlu1 %785  ;;  %v772_v48 = vadd.f32 %v771_v54, %v754_v38  ;;  %v1469_v10 = vadd.f32 %v1468_v5, %v1459_v61 }
 0x2e8   :  { %v789_v19 = vsel %vm640_vm10, %v786_v17, %v788_v18  ;;  %v1518_v18 = vmul.f32 %v2930_v57, %v3031_v50 }
 0x2e9   :  { %v791_v23 = vadd.f32 %v789_v19, %v772_v48  ;;  %v1484_v40 = vadd.f32 %v1482_v1, %v1469_v10  ;;  %v1573_v29 = vpop.permute.xlu0 %1572 }
 0x2eb   :  { %v823_v21 = vpop.permute.xlu1 %822  ;;  %v809_v46 = vadd.f32 %v808_v62, %v791_v23  ;;  %v1494_v3 = vadd.f32 %v1493_v7, %v1484_v40 }
 0x2ec   :  { %v826_v42 = vsel %vm640_vm10, %v823_v21, %v825_v47  ;;  %v882_v47 = vmul.f32 %v2950_v37, %v3033_v16 }
 0x2ed   :  { %v828_v27 = vadd.f32 %v826_v42, %v809_v46  ;;  %v1509_v34 = vadd.f32 %v1507_v25, %v1494_v3 }
 0x2ef   :  { %v846_v45 = vadd.f32 %v845_v60, %v828_v27  ;;  %v1529_v56 = vpop.permute.xlu1 %1528  ;;  %v1519_v9 = vadd.f32 %v1518_v18, %v1509_v34 }
 0x2f0   :  { %v1532_v32 = vsel %vm640_vm10, %v1529_v56, %v3041_v36 }
 0x2f1   :  { %v865_v12 = vadd.f32 %v863_v30, %v846_v45  ;;  %v1534_v57 = vadd.f32 %v1532_v32, %v1519_v9 }
 0x2f3   :  { %v883_v50 = vadd.f32 %v882_v47, %v865_v12  ;;  %v1544_v59 = vadd.f32 %v1543_v15, %v1534_v57 }
 0x2f5   :  { %v902_v26 = vadd.f32 %v900_v20, %v883_v50  ;;  %v1559_v2 = vadd.f32 %v1557_v8, %v1544_v59 }
 0x2f7   :  { %v915_v36 = vadd.f32 %v3035_v6, %v902_v26  ;;  %v1564_v51 = vadd.f32 %v1559_v2, %v3035_v6 }
 0x2f9   :  { %v917_v37 = vmul.f32 0.1, %v915_v36  ;;  %vm916_vm11 = vcmp.ge.f32.partialorder %v915_v36, 0.0  ;;  %v1566_v35 = vmul.f32 0.1, %v1564_v51  ;;  %vm1565_vm12 = vcmp.ge.f32.partialorder %v1564_v51, 0.0 }
 0x2fb   :  { %v918_v43 = vsel %vm916_vm11, %v915_v36, %v917_v37  ;;  %v1567_v58 = vsel %vm1565_vm12, %v1564_v51, %v1566_v35 }
 0x300   :  { %v935_v4 = vpop.permute.xlu1 %934 }
 0x304   :  { %v922_v16 = vpop.permute.xlu1 %921 }
 0x305   :  { %v925_v53 = vsel %vm640_vm10, %v922_v16, %v924_v31 }
 0x306   :  { %v927_v55 = vadd.f32 %v925_v53, %v918_v43 }
 0x308   :  { %v932_v39 = vadd.f32 %v3037_v33, %v927_v55  ;;  %v1571_v0 = vpop.permute.xlu1 %1570 }
 0x309   :  { %v1574_v14 = vsel %vm640_vm10, %v1571_v0, %v1573_v29 }
 0x30a   :  { %v937_v28 = vmul.f32 %v935_v4, %v932_v39  ;;  %v1576_v44 = vadd.f32 %v1574_v14, %v1567_v58 }
 0x30c   :  { %v1577_v6 = vadd.f32 %v1576_v44, %v3037_v33  ;;  %v940_v13 = vrot.slane %v937_v28, 1  ;;  %v943_v41 = vrot.slane %v937_v28, 2  ;;  %v946_v5 = vrot.slane %v937_v28, 3  ;;  %v963_v42 = vpop.permute.xlu1 %962 }
 0x30d   :  { %v949_v63 = vrot.slane %v937_v28, 4  ;;  %v952_v1 = vrot.slane %v937_v28, 5  ;;  %v955_v23 = vrot.slane %v937_v28, 6  ;;  %v958_v46 = vrot.slane %v937_v28, 7 }
 0x30e   :  { %v1578_v11 = vmul.f32 %v1577_v6, %v935_v4  ;;  %v942_v49 = vadd.f32 %v940_v13, %v937_v28 }
 0x310   :  { %v945_v54 = vadd.f32 %v943_v41, %v942_v49  ;;  %v1581_v38 = vrot.slane %v1578_v11, 1  ;;  %v1584_v48 = vrot.slane %v1578_v11, 2  ;;  %v1587_v62 = vrot.slane %v1578_v11, 3 }
 0x311   :  { %v1590_v21 = vrot.slane %v1578_v11, 4  ;;  %v1593_v25 = vrot.slane %v1578_v11, 5  ;;  %v1596_v24 = vrot.slane %v1578_v11, 6  ;;  %v1599_v45 = vrot.slane %v1578_v11, 7 }
 0x312   :  { %v948_v61 = vadd.f32 %v946_v5, %v945_v54  ;;  %v1583_v17 = vadd.f32 %v1581_v38, %v1578_v11 }
 0x314   :  { %v951_v10 = vadd.f32 %v949_v63, %v948_v61  ;;  %v1586_v19 = vadd.f32 %v1584_v48, %v1583_v17 }
 0x316   :  { %v954_v7 = vadd.f32 %v952_v1, %v951_v10  ;;  %v1589_v40 = vadd.f32 %v1587_v62, %v1586_v19 }
 0x318   :  { %v957_v33 = vadd.f32 %v955_v23, %v954_v7  ;;  %v1592_v3 = vadd.f32 %v1590_v21, %v1589_v40 }
 0x31a   :  { %v960_v60 = vadd.f32 %v958_v46, %v957_v33  ;;  %v1595_v18 = vadd.f32 %v1593_v25, %v1592_v3 }
 0x31c   :  { %v965_v27 = vadd.f32 %v963_v42, %v960_v60  ;;  %v1598_v34 = vadd.f32 %v1596_v24, %v1595_v18 }
 0x31e   :  { %vm966_vm13 = vcmp.ge.f32.partialorder %v965_v27, 0.0  ;;  %v967_v56 = vmul.f32 0.1, %v965_v27  ;;  %v1601_v9 = vadd.f32 %v1599_v45, %v1598_v34 }
 0x320   :  { %v968_v30 = vsel %vm966_vm13, %v965_v27, %v967_v56  ;;  %v1602_v32 = vadd.f32 %v1601_v9, %v963_v42 }
 0x321   :  { %969 = vst [vmem:[#allocation8] sm:$0x1] %v968_v30 }
 0x322   :  { %vm1603_vm14 = vcmp.ge.f32.partialorder %v1602_v32, 0.0  ;;  %v1604_v47 = vmul.f32 0.1, %v1602_v32 }
 0x324   :  { %v1605_v15 = vsel %vm1603_vm14, %v1602_v32, %v1604_v47 }
 0x325   :  { %1607 = vst [vmem:[#allocation8 + $0x1] sm:$0x1] %v1605_v15 }
 0x326   :  { %1857 = shalt.err (!%p1854_p6)
}
 0x327   :  { %s1858_s6 = scalar_lea.hbm %s3109_s3, 32 }
 0x328   :  { %p1859_p7 = scmp.ne.s32.totalorder %s3109_s3, %s1858_s6  ;;  %p1862_p8 = scmp.lt.u32.totalorder %s1858_s6, %s3109_s3 }
 0x32a   :  { %p1864_p9 = pnand %p1862_p8, %p1859_p7 }
 0x32c   :  { %1867 = shalt.err (!%p1864_p9)
}
 0x32d   :  { %s1952_s11 = smov 16   ;;  %s1953_s12 = smov 1  }
 0x32e   :  { %1619 = dma.vmem_to_hbm [thread:$0]  %s1614_s30, 32, %s3109_s3, [#allocation4], %s1952_s11, %s1952_s11, %s1953_s12  }
 0x32f   :  { %1872 = dma.done.wait [#allocation4], 32  }
 0x330   :  { %1873 = vsyncadd [#allocation4], 4294967264 }
 0x331   :  { %1623 = vsyncpa [#allocation3], 1 }
 0x332   :  { %1624 = vsyncpa [#allocation6], 1 }
 0x333   :  { %1625 = vsyncpa [#allocation4], 1 }

</bundles_post_ra>
